<compile_context>
chip_gen: v5e
topology: v5e:2x2
jax: 0.10.0
libtpu: 0.0.40
codegen_flags: <defaults>
</compile_context>

<pallas_src>
import functools
import numpy as np
import jax
import jax.numpy as jnp
from jax.experimental import pallas as pl
from jax.experimental.pallas import tpu as pltpu


def _round_up(x, m):
    return (x + m - 1) // m * m


# ------------------------------ Pallas kernel ------------------------------

def _g_mapping_kernel(x_ref, w_ref, b_ref, o_ref, *,
                      n_feat, n_layers, normalize_latents, eps):
    """Fused PixelNorm + chained Linear layers for one batch tile.

    grid = (batch_tiles,): axis 0 is "parallel".  Weight/bias stacks are
    VMEM-resident (constant index_map); the layer loop is statically unrolled
    and activations flow through as values (no per-layer VMEM round trip).
    """
    x = x_ref[...].astype(jnp.float32)                 # (TM, Dp) f32
    if normalize_latents:
        # PixelNorm over the *real* feature count (padded lanes are zero,
        # so the sum of squares is unaffected by lane padding).
        ms = jnp.sum(x * x, axis=-1, keepdims=True) * (1.0 / n_feat)
        x = x * jax.lax.rsqrt(ms + eps)

    h = x
    for l in range(n_layers):                          # static unroll
        w = w_ref[l]                                   # (Dp, Dp) bf16
        b = b_ref[l]                                   # (1, Dp)  f32
        h = jnp.dot(h.astype(jnp.bfloat16), w,
                    preferred_element_type=jnp.float32) + b

    o_ref[...] = h.astype(o_ref.dtype)


# ------------------------------ parameters ------------------------------

def make_g_mapping_params(key, mapping_fmaps=512, dlatent_size=512,
                          n_hidden_layers=4):
    """nn.Linear-style params (stored as (in, out), i.e. already transposed
    relative to PyTorch's (out, in) weight so that forward is x @ W + b)."""
    dims = [(mapping_fmaps, dlatent_size)] + \
           [(dlatent_size, dlatent_size)] * n_hidden_layers
    ws, bs = [], []
    for fan_in, fan_out in dims:
        key, kw, kb = jax.random.split(key, 3)
        bound = 1.0 / np.sqrt(fan_in)
        ws.append(jax.random.uniform(kw, (fan_in, fan_out), jnp.float32,
                                     -bound, bound))
        bs.append(jax.random.uniform(kb, (fan_out,), jnp.float32,
                                     -bound, bound))
    return ws, bs


def pack_g_mapping_params(ws, bs):
    """One-time packing into a persistent, lane-padded, VMEM-friendly layout:
       W: (L, Dp, Dp) bf16   B: (L, 1, Dp) f32."""
    L = len(ws)
    Dp = _round_up(max(max(w.shape[0] for w in ws),
                       max(w.shape[1] for w in ws)), 128)
    W = jnp.zeros((L, Dp, Dp), jnp.float32)
    Bv = jnp.zeros((L, 1, Dp), jnp.float32)
    for i, (w, b) in enumerate(zip(ws, bs)):
        W = W.at[i, :w.shape[0], :w.shape[1]].set(w)
        Bv = Bv.at[i, 0, :b.shape[0]].set(b)
    return W.astype(jnp.bfloat16), Bv


# ------------------------------ forward pass ------------------------------

def g_mapping_forward(x, w_stack, b_stack, *, dlatent_size,
                      normalize_latents=True, resolution=512, eps=1e-8,
                      out_dtype=jnp.float32):
    """Pallas forward of G_mapping.forward: returns (out, num_layers)."""
    B, F = x.shape
    L, Dp, _ = w_stack.shape

    # Batch tile: 256 matches the 2x256x256 MXU on v6e/v7x and guarantees
    # >=2 "parallel" tiles (both v7x TensorCores) for large B; small batches
    # are only rounded to the sublane multiple (8), never padded to 128+.
    if B >= 256:
        TM = 256
    else:
        TM = _round_up(B, 8)
    Bp = _round_up(B, TM)

    xp = x
    if (Bp, Dp) != (B, F):
        xp = jnp.zeros((Bp, Dp), x.dtype).at[:B, :F].set(x)

    kernel = functools.partial(_g_mapping_kernel, n_feat=F, n_layers=L,
                               normalize_latents=normalize_latents, eps=eps)

    out = pl.pallas_call(
        kernel,
        out_shape=jax.ShapeDtypeStruct((Bp, Dp), out_dtype),
        grid_spec=pltpu.PrefetchScalarGridSpec(
            num_scalar_prefetch=0,
            grid=(Bp // TM,),
            in_specs=[
                pl.BlockSpec((TM, Dp), lambda i: (i, 0)),        # x tile
                pl.BlockSpec((L, Dp, Dp), lambda i: (0, 0, 0)),  # resident W
                pl.BlockSpec((L, 1, Dp), lambda i: (0, 0, 0)),   # resident b
            ],
            out_specs=pl.BlockSpec((TM, Dp), lambda i: (i, 0)),
        ),
        compiler_params=pltpu.CompilerParams(
            dimension_semantics=("parallel",)),
    )(xp, w_stack, b_stack)

    out = out[:B, :dlatent_size]
    num_layers = int(np.log2(resolution)) * 2 - 2
    return out, num_layers


# ------------------------------ reference ------------------------------

def g_mapping_ref(x, ws, bs, normalize_latents=True, eps=1e-8):
    if normalize_latents:
        x = x * jax.lax.rsqrt(jnp.mean(x * x, axis=1, keepdims=True) + eps)
    h = x
    for w, b in zip(ws, bs):
        h = h @ w + b
    return h


if __name__ == "__main__":
    mapping_fmaps = 512
    dlatent_size = 512
    resolution = 512
    B = 8

    key = jax.random.PRNGKey(0)
    kp, kx = jax.random.split(key)
    ws, bs = make_g_mapping_params(kp, mapping_fmaps, dlatent_size)
    w_stack, b_stack = pack_g_mapping_params(ws, bs)
    x = jax.random.normal(kx, (B, mapping_fmaps), jnp.float32)

    fwd = jax.jit(functools.partial(
        g_mapping_forward, dlatent_size=dlatent_size,
        normalize_latents=True, resolution=resolution))
    out, num_layers = fwd(x, w_stack, b_stack)
    jax.block_until_ready(out)

    ref = g_mapping_ref(x, ws, bs)
    assert out.shape == (B, dlatent_size), out.shape
    assert int(num_layers) == int(np.log2(resolution)) * 2 - 2 == 16
    assert bool(jnp.all(jnp.isfinite(out)))
    max_err = float(jnp.max(jnp.abs(out - ref)))
    assert max_err < 5e-2, max_err   # bf16 MXU inputs, f32 accumulation
    print("KERNEL_OK")
</pallas_src>

<mosaic_0001>
module attributes {stable_mosaic.version = 11 : i64} {
  func.func @_g_mapping_kernel(%arg0: i32, %arg1: memref<8x512xf32, #tpu.memory_space<vmem>>, %arg2: memref<5x512x512xbf16, #tpu.memory_space<vmem>>, %arg3: memref<5x1x512xf32, #tpu.memory_space<vmem>>, %arg4: memref<8x512xf32, #tpu.memory_space<vmem>>) attributes {dimension_semantics = [#tpu.dimension_semantics<parallel>], iteration_bounds = array<i64: 1>, scalar_prefetch = 0 : i64, scratch_operands = 0 : i64, tpu.core_type = #tpu.core_type<tc>, window_params = [{transform_indices = @transform_0, window_bounds = array<i64: 8, 512>}, {pipeline_mode = #tpu.pipeline_mode<synchronous>, transform_indices = @transform_1, window_bounds = array<i64: 5, 512, 512>}, {pipeline_mode = #tpu.pipeline_mode<synchronous>, transform_indices = @transform_2, window_bounds = array<i64: 5, 1, 512>}, {transform_indices = @transform_3, window_bounds = array<i64: 8, 512>}]} {
    %c0 = arith.constant 0 : index
    %c0_0 = arith.constant 0 : index
    %0 = vector.load %arg1[%c0, %c0_0] : memref<8x512xf32, #tpu.memory_space<vmem>>, vector<8x512xf32>
    %1 = arith.mulf %0, %0 : vector<8x512xf32>
    %cst = arith.constant dense<0.000000e+00> : vector<8xf32>
    %2 = vector.multi_reduction <add>, %1, %cst [1] : vector<8x512xf32> to vector<8xf32>
    %3 = vector.shape_cast %2 : vector<8xf32> to vector<8x1xf32>
    %cst_1 = arith.constant 0.001953125 : f32
    %4 = vector.broadcast %cst_1 : f32 to vector<8x1xf32>
    %5 = arith.mulf %3, %4 : vector<8x1xf32>
    %cst_2 = arith.constant 9.99999993E-9 : f32
    %6 = vector.broadcast %cst_2 : f32 to vector<8x1xf32>
    %7 = arith.addf %5, %6 : vector<8x1xf32>
    %8 = math.rsqrt %7 : vector<8x1xf32>
    %9 = vector.broadcast %8 : vector<8x1xf32> to vector<8x512xf32>
    %10 = arith.mulf %0, %9 : vector<8x512xf32>
    %c0_3 = arith.constant 0 : index
    %c0_4 = arith.constant 0 : index
    %c0_5 = arith.constant 0 : index
    %11 = vector.load %arg2[%c0_3, %c0_4, %c0_5] : memref<5x512x512xbf16, #tpu.memory_space<vmem>>, vector<1x512x512xbf16>
    %12 = vector.shape_cast %11 : vector<1x512x512xbf16> to vector<512x512xbf16>
    %c0_6 = arith.constant 0 : index
    %c0_7 = arith.constant 0 : index
    %c0_8 = arith.constant 0 : index
    %13 = vector.load %arg3[%c0_6, %c0_7, %c0_8] : memref<5x1x512xf32, #tpu.memory_space<vmem>>, vector<1x1x512xf32>
    %14 = vector.shape_cast %13 : vector<1x1x512xf32> to vector<1x512xf32>
    %15 = arith.truncf %10 : vector<8x512xf32> to vector<8x512xbf16>
    %cst_9 = arith.constant dense<0.000000e+00> : vector<8x512xf32>
    %16 = tpu.matmul %15, %12, %cst_9 {dimension_numbers = #tpu.dot_dimension_numbers<[1], [0], [0], [1], [0, 0, 1, 1], [], []>} : vector<8x512xbf16>, vector<512x512xbf16>, vector<8x512xf32> -> vector<8x512xf32>
    %17 = vector.broadcast %14 : vector<1x512xf32> to vector<8x512xf32>
    %18 = arith.addf %16, %17 : vector<8x512xf32>
    %c1 = arith.constant 1 : index
    %c0_10 = arith.constant 0 : index
    %c0_11 = arith.constant 0 : index
    %19 = vector.load %arg2[%c1, %c0_10, %c0_11] : memref<5x512x512xbf16, #tpu.memory_space<vmem>>, vector<1x512x512xbf16>
    %20 = vector.shape_cast %19 : vector<1x512x512xbf16> to vector<512x512xbf16>
    %c1_12 = arith.constant 1 : index
    %c0_13 = arith.constant 0 : index
    %c0_14 = arith.constant 0 : index
    %21 = vector.load %arg3[%c1_12, %c0_13, %c0_14] : memref<5x1x512xf32, #tpu.memory_space<vmem>>, vector<1x1x512xf32>
    %22 = vector.shape_cast %21 : vector<1x1x512xf32> to vector<1x512xf32>
    %23 = arith.truncf %18 : vector<8x512xf32> to vector<8x512xbf16>
    %cst_15 = arith.constant dense<0.000000e+00> : vector<8x512xf32>
    %24 = tpu.matmul %23, %20, %cst_15 {dimension_numbers = #tpu.dot_dimension_numbers<[1], [0], [0], [1], [0, 0, 1, 1], [], []>} : vector<8x512xbf16>, vector<512x512xbf16>, vector<8x512xf32> -> vector<8x512xf32>
    %25 = vector.broadcast %22 : vector<1x512xf32> to vector<8x512xf32>
    %26 = arith.addf %24, %25 : vector<8x512xf32>
    %c2 = arith.constant 2 : index
    %c0_16 = arith.constant 0 : index
    %c0_17 = arith.constant 0 : index
    %27 = vector.load %arg2[%c2, %c0_16, %c0_17] : memref<5x512x512xbf16, #tpu.memory_space<vmem>>, vector<1x512x512xbf16>
    %28 = vector.shape_cast %27 : vector<1x512x512xbf16> to vector<512x512xbf16>
    %c2_18 = arith.constant 2 : index
    %c0_19 = arith.constant 0 : index
    %c0_20 = arith.constant 0 : index
    %29 = vector.load %arg3[%c2_18, %c0_19, %c0_20] : memref<5x1x512xf32, #tpu.memory_space<vmem>>, vector<1x1x512xf32>
    %30 = vector.shape_cast %29 : vector<1x1x512xf32> to vector<1x512xf32>
    %31 = arith.truncf %26 : vector<8x512xf32> to vector<8x512xbf16>
    %cst_21 = arith.constant dense<0.000000e+00> : vector<8x512xf32>
    %32 = tpu.matmul %31, %28, %cst_21 {dimension_numbers = #tpu.dot_dimension_numbers<[1], [0], [0], [1], [0, 0, 1, 1], [], []>} : vector<8x512xbf16>, vector<512x512xbf16>, vector<8x512xf32> -> vector<8x512xf32>
    %33 = vector.broadcast %30 : vector<1x512xf32> to vector<8x512xf32>
    %34 = arith.addf %32, %33 : vector<8x512xf32>
    %c3 = arith.constant 3 : index
    %c0_22 = arith.constant 0 : index
    %c0_23 = arith.constant 0 : index
    %35 = vector.load %arg2[%c3, %c0_22, %c0_23] : memref<5x512x512xbf16, #tpu.memory_space<vmem>>, vector<1x512x512xbf16>
    %36 = vector.shape_cast %35 : vector<1x512x512xbf16> to vector<512x512xbf16>
    %c3_24 = arith.constant 3 : index
    %c0_25 = arith.constant 0 : index
    %c0_26 = arith.constant 0 : index
    %37 = vector.load %arg3[%c3_24, %c0_25, %c0_26] : memref<5x1x512xf32, #tpu.memory_space<vmem>>, vector<1x1x512xf32>
    %38 = vector.shape_cast %37 : vector<1x1x512xf32> to vector<1x512xf32>
    %39 = arith.truncf %34 : vector<8x512xf32> to vector<8x512xbf16>
    %cst_27 = arith.constant dense<0.000000e+00> : vector<8x512xf32>
    %40 = tpu.matmul %39, %36, %cst_27 {dimension_numbers = #tpu.dot_dimension_numbers<[1], [0], [0], [1], [0, 0, 1, 1], [], []>} : vector<8x512xbf16>, vector<512x512xbf16>, vector<8x512xf32> -> vector<8x512xf32>
    %41 = vector.broadcast %38 : vector<1x512xf32> to vector<8x512xf32>
    %42 = arith.addf %40, %41 : vector<8x512xf32>
    %c4 = arith.constant 4 : index
    %c0_28 = arith.constant 0 : index
    %c0_29 = arith.constant 0 : index
    %43 = vector.load %arg2[%c4, %c0_28, %c0_29] : memref<5x512x512xbf16, #tpu.memory_space<vmem>>, vector<1x512x512xbf16>
    %44 = vector.shape_cast %43 : vector<1x512x512xbf16> to vector<512x512xbf16>
    %c4_30 = arith.constant 4 : index
    %c0_31 = arith.constant 0 : index
    %c0_32 = arith.constant 0 : index
    %45 = vector.load %arg3[%c4_30, %c0_31, %c0_32] : memref<5x1x512xf32, #tpu.memory_space<vmem>>, vector<1x1x512xf32>
    %46 = vector.shape_cast %45 : vector<1x1x512xf32> to vector<1x512xf32>
    %47 = arith.truncf %42 : vector<8x512xf32> to vector<8x512xbf16>
    %cst_33 = arith.constant dense<0.000000e+00> : vector<8x512xf32>
    %48 = tpu.matmul %47, %44, %cst_33 {dimension_numbers = #tpu.dot_dimension_numbers<[1], [0], [0], [1], [0, 0, 1, 1], [], []>} : vector<8x512xbf16>, vector<512x512xbf16>, vector<8x512xf32> -> vector<8x512xf32>
    %49 = vector.broadcast %46 : vector<1x512xf32> to vector<8x512xf32>
    %50 = arith.addf %48, %49 : vector<8x512xf32>
    %c0_34 = arith.constant 0 : index
    %c0_35 = arith.constant 0 : index
    %51 = vector.load %arg4[%c0_34, %c0_35] : memref<8x512xf32, #tpu.memory_space<vmem>>, vector<8x512xf32>
    tpu.vector_store %arg4[%c0_34, %c0_35], %50 {strides = array<i32>} : memref<8x512xf32, #tpu.memory_space<vmem>>, vector<8x512xf32>,
    return
  }
  func.func @transform_0(%arg0: i32) -> (i32, i32) {
    %c0_i32 = arith.constant 0 : i32
    %c0_i32_0 = arith.constant 0 : i32
    return %arg0, %c0_i32 : i32, i32
  }
  func.func @transform_1(%arg0: i32) -> (i32, i32, i32) {
    %c0_i32 = arith.constant 0 : i32
    %c0_i32_0 = arith.constant 0 : i32
    %c0_i32_1 = arith.constant 0 : i32
    %c0_i32_2 = arith.constant 0 : i32
    return %c0_i32, %c0_i32_0, %c0_i32_1 : i32, i32, i32
  }
  func.func @transform_2(%arg0: i32) -> (i32, i32, i32) {
    %c0_i32 = arith.constant 0 : i32
    %c0_i32_0 = arith.constant 0 : i32
    %c0_i32_1 = arith.constant 0 : i32
    %c0_i32_2 = arith.constant 0 : i32
    return %c0_i32, %c0_i32_0, %c0_i32_1 : i32, i32, i32
  }
  func.func @transform_3(%arg0: i32) -> (i32, i32) {
    %c0_i32 = arith.constant 0 : i32
    %c0_i32_0 = arith.constant 0 : i32
    return %arg0, %c0_i32 : i32, i32
  }
}

</mosaic_0001>

<bundles_post_ra>
// kernel: g_mapping_forward.1
= control target key start
LH: loop header
LB: loop body
LE: loop exit
PB: predicated region body
PF: predicated region fallthrough
CT: control target
= control target key end

     0   :  { %8 = vsyncpa [#allocation3], 0  ;;  %s8693_s0 = inlined_call_operand.hbm [shape: f32[8,512], index: 0, kind: input, shape index: {}]   ;;  %s8694_s1 = inlined_call_operand.hbm [shape: bf16[5,512,512], index: 1, kind: input, shape index: {}]   ;;  %s8695_s2 = inlined_call_operand.hbm [shape: f32[5,1,512], index: 2, kind: input, shape index: {}]   ;;  %s8696_s3 = inlined_call_operand.hbm [shape: f32[8,512], index: 3, kind: output, shape index: {}]  }
   0x1   :  { %9 = vsyncpa [#allocation6], 0  ;;  %s26_s14 = sshll.u32 %s8694_s1, 4  ;;  %s27_s14 = int_to_ptr.hbm [resolvable:$true] %s26_s14 }
   0x2   :  { %10 = vsyncpa [#allocation4], 0  ;;  %s8381_s15 = smov [#allocation5]   ;;  %s16_s19 = sshll.u32 %s8693_s0, 4  ;;  %s17_s19 = int_to_ptr.hbm [resolvable:$true] %s16_s19 }
   0x3   :  { %s28_s16 = sshll.u32 %s8381_s15, 4  ;;  %s8382_s20 = smov 256   ;;  %s29_s16 = int_to_ptr.vmem [resolvable:$true] %s28_s16 }
   0x4   :  { %s8383_s21 = smov 16   ;;  %s8384_s22 = smov [#allocation2]  }
   0x5   :  { %34 = dma.hbm_to_vmem [thread:$0]  %s27_s14, 81920, %s29_s16, [#allocation6], %s8382_s20, %s8382_s20, %s8383_s21  }
   0x6   :  { %s18_s23 = sshll.u32 %s8384_s22, 4  ;;  %s39_s26 = sshll.u32 %s8695_s2, 4  ;;  %s19_s23 = int_to_ptr.vmem [resolvable:$true] %s18_s23  ;;  %s40_s26 = int_to_ptr.hbm [resolvable:$true] %s39_s26 }
   0x7   :  { %21 = dma.hbm_to_vmem [thread:$0]  %s17_s19, 512, %s19_s23, [#allocation3]  }
   0x8   :  { %s8385_s1 = smov [#allocation7]   ;;  %s8386_s28 = smov 64  }
   0x9   :  { %s41_s27 = sshll.u32 %s8385_s1, 4  ;;  %s8387_s29 = smov 4   ;;  %s42_s27 = int_to_ptr.vmem [resolvable:$true] %s41_s27 }
   0xa   :  { %47 = dma.hbm_to_vmem [thread:$0]  %s40_s26, 320, %s42_s27, [#allocation6], %s8386_s28, %s8386_s28, %s8387_s29  }
   0xb   :  { %8375 = dma.done.wait [#allocation3], 512  }
   0xc   :  { %8376 = vsyncadd [#allocation3], 4294966784 }
   0xd   :  { %8377 = dma.done.wait [#allocation6], 82240  }
   0xe   :  { %8378 = vsyncadd [#allocation6], 4294885056  ;;  %v8418_v0 = vld [vmem:[#allocation2] sm:$0xff]  ;;  %v8420_v1 = vld [vmem:[#allocation2 + $0x8] sm:$0xff]  ;;  %s8388_s0 = smov [#allocation8]   ;;  %s5058_s5 = sshll.u32 %s8696_s3, 4  ;;  %s5059_s5 = int_to_ptr.hbm [resolvable:$true] %s5058_s5 }
   0xf   :  { %v8422_v2 = vld [vmem:[#allocation2 + $0x10] sm:$0xff]  ;;  %v8424_v3 = vld [vmem:[#allocation2 + $0x18] sm:$0xff]  ;;  %v64_v4 = vmul.f32 %v8418_v0, %v8418_v0  ;;  %v65_v5 = vmul.f32 %v8420_v1, %v8420_v1  ;;  %v5183_v7 = vld [vmem:[#allocation5 + $0xe0] sm:$0xf]  ;;  %s5056_s2 = sshll.u32 %s8388_s0, 4  ;;  %s5057_s2 = int_to_ptr.vmem [resolvable:$true] %s5056_s2 }
  0x10   :  { %v66_v6 = vmul.f32 %v8422_v2, %v8422_v2  ;;  %v7659_v8 = vld [vmem:[#allocation5 + $0xec] sm:$0xf0]  ;;  %v5311_v10 = vld [vmem:[#allocation5 + $0x1e0] sm:$0xf]  ;;  %v67_v13 = vmul.f32 %v8424_v3, %v8424_v3 }
  0x11   :  { %v5184_v9 = vor.u32 %v7659_v8, %v5183_v7  ;;  %v7691_v11 = vld [vmem:[#allocation5 + $0x1ec] sm:$0xf0]  ;;  %v5439_v12 = vld [vmem:[#allocation5 + $0x2e0] sm:$0xf]  ;;  %v68_v14 = vadd.f32 %v65_v5, %v64_v4 }
  0x12   :  { %v5312_v15 = vor.u32 %v7691_v11, %v5311_v10  ;;  %v7723_v16 = vld [vmem:[#allocation5 + $0x2ec] sm:$0xf0]  ;;  %v5567_v17 = vld [vmem:[#allocation5 + $0x3e0] sm:$0xf] }
  0x13   :  { %v7755_v18 = vld [vmem:[#allocation5 + $0x3ec] sm:$0xf0]  ;;  %871 = vmatpush.bf16.msra.mxu0 %v5184_v9  ;;  %v5440_v19 = vor.u32 %v7723_v16, %v5439_v12  ;;  %v5167_v21 = vld [vmem:[#allocation5 + $0xc0] sm:$0xf]  ;;  %v69_v24 = vadd.f32 %v68_v14, %v66_v6 }
  0x14   :  { %v5568_v20 = vor.u32 %v7755_v18, %v5567_v17  ;;  %v7655_v22 = vld [vmem:[#allocation5 + $0xcc] sm:$0xf0]  ;;  %v5295_v23 = vld [vmem:[#allocation5 + $0x1c0] sm:$0xf]  ;;  %884 = vmatpush.bf16.msra.mxu1 %v5312_v15 }
  0x15   :  { %v5168_v25 = vor.u32 %v7655_v22, %v5167_v21  ;;  %v7687_v26 = vld [vmem:[#allocation5 + $0x1cc] sm:$0xf0]  ;;  %v5423_v27 = vld [vmem:[#allocation5 + $0x2c0] sm:$0xf]  ;;  %897 = vmatpush.bf16.msra.mxu2 %v5440_v19  ;;  %v70_v34 = vadd.f32 %v69_v24, %v67_v13 }
  0x16   :  { %v7719_v28 = vld [vmem:[#allocation5 + $0x2cc] sm:$0xf0]  ;;  %910 = vmatpush.bf16.msra.mxu3 %v5568_v20  ;;  %v5296_v29 = vor.u32 %v7687_v26, %v5295_v23  ;;  %v5551_v31 = vld [vmem:[#allocation5 + $0x3c0] sm:$0xf] }
  0x17   :  { %v5424_v30 = vor.u32 %v7719_v28, %v5423_v27  ;;  %v7751_v32 = vld [vmem:[#allocation5 + $0x3cc] sm:$0xf0]  ;;  %v5151_v33 = vld [vmem:[#allocation5 + $0xa0] sm:$0xf]  ;;  %872 = vmatpush.bf16.msra.mxu0 %v5168_v25  ;;  %71 = vadd.xlane.f32.xlu0 %v70_v34 }
  0x18   :  { %v5552_v35 = vor.u32 %v7751_v32, %v5551_v31  ;;  %v7651_v36 = vld [vmem:[#allocation5 + $0xac] sm:$0xf0]  ;;  %v5279_v37 = vld [vmem:[#allocation5 + $0x1a0] sm:$0xf]  ;;  %885 = vmatpush.bf16.msra.mxu1 %v5296_v29 }
  0x19   :  { %v7683_v38 = vld [vmem:[#allocation5 + $0x1ac] sm:$0xf0]  ;;  %v5152_v39 = vor.u32 %v7651_v36, %v5151_v33  ;;  %v5407_v40 = vld [vmem:[#allocation5 + $0x2a0] sm:$0xf]  ;;  %898 = vmatpush.bf16.msra.mxu2 %v5424_v30 }
  0x1a   :  { %v7715_v41 = vld [vmem:[#allocation5 + $0x2ac] sm:$0xf0]  ;;  %v5535_v42 = vld [vmem:[#allocation5 + $0x3a0] sm:$0xf]  ;;  %v5280_v43 = vor.u32 %v7683_v38, %v5279_v37  ;;  %911 = vmatpush.bf16.msra.mxu3 %v5552_v35 }
  0x1b   :  { %v7747_v44 = vld [vmem:[#allocation5 + $0x3ac] sm:$0xf0]  ;;  %v5135_v45 = vld [vmem:[#allocation5 + $0x80] sm:$0xf]  ;;  %v5408_v47 = vor.u32 %v7715_v41, %v5407_v40  ;;  %873 = vmatpush.bf16.msra.mxu0 %v5152_v39  ;;  %v7657_v41 = vld [vmem:[#allocation5 + $0xe4] sm:$0xf] }
  0x1c   :  { %v7647_v46 = vld [vmem:[#allocation5 + $0x8c] sm:$0xf0]  ;;  %v5536_v48 = vor.u32 %v7747_v44, %v5535_v42  ;;  %v5263_v49 = vld [vmem:[#allocation5 + $0x180] sm:$0xf]  ;;  %886 = vmatpush.bf16.msra.mxu1 %v5280_v43  ;;  %v5185_v42 = vld [vmem:[#allocation5 + $0xf0] sm:$0xf0] }
  0x1d   :  { %v7679_v50 = vld [vmem:[#allocation5 + $0x18c] sm:$0xf0]  ;;  %v5391_v51 = vld [vmem:[#allocation5 + $0x280] sm:$0xf]  ;;  %v5136_v55 = vor.u32 %v7647_v46, %v5135_v45  ;;  %899 = vmatpush.bf16.msra.mxu2 %v5408_v47  ;;  %v7689_v45 = vld [vmem:[#allocation5 + $0x1e4] sm:$0xf] }
  0x1e   :  { %v7711_v52 = vld [vmem:[#allocation5 + $0x28c] sm:$0xf0]  ;;  %v5519_v53 = vld [vmem:[#allocation5 + $0x380] sm:$0xf]  ;;  %v5264_v56 = vor.u32 %v7679_v50, %v5263_v49  ;;  %912 = vmatpush.bf16.msra.mxu3 %v5536_v48  ;;  %v5313_v47 = vld [vmem:[#allocation5 + $0x1f0] sm:$0xf0] }
  0x1f   :  { %v7743_v54 = vld [vmem:[#allocation5 + $0x38c] sm:$0xf0]  ;;  %v5119_v57 = vld [vmem:[#allocation5 + $0x60] sm:$0xf]  ;;  %v5392_v59 = vor.u32 %v7711_v52, %v5391_v51  ;;  %874 = vmatpush.bf16.msra.mxu0 %v5136_v55  ;;  %v7721_v48 = vld [vmem:[#allocation5 + $0x2e4] sm:$0xf]  ;;  %v5188_v51 = vor.u32 %v7657_v41, %v5185_v42 }
  0x20   :  { %v7643_v58 = vld [vmem:[#allocation5 + $0x6c] sm:$0xf0]  ;;  %v5520_v60 = vor.u32 %v7743_v54, %v5519_v53  ;;  %v5247_v61 = vld [vmem:[#allocation5 + $0x160] sm:$0xf]  ;;  %887 = vmatpush.bf16.msra.mxu1 %v5264_v56  ;;  %v5441_v49 = vld [vmem:[#allocation5 + $0x2f0] sm:$0xf0]  ;;  %v5316_v56 = vor.u32 %v7689_v45, %v5313_v47 }
  0x21   :  { %v7675_v62 = vld [vmem:[#allocation5 + $0x16c] sm:$0xf0]  ;;  %v5375_v63 = vld [vmem:[#allocation5 + $0x260] sm:$0xf]  ;;  %v5120_v7 = vor.u32 %v7643_v58, %v5119_v57  ;;  %900 = vmatpush.bf16.msra.mxu2 %v5392_v59  ;;  %v7753_v52 = vld [vmem:[#allocation5 + $0x3e4] sm:$0xf]  ;;  %v5444_v57 = vor.u32 %v7721_v48, %v5441_v49 }
  0x22   :  { %v7707_v4 = vld [vmem:[#allocation5 + $0x26c] sm:$0xf0]  ;;  %v5503_v5 = vld [vmem:[#allocation5 + $0x360] sm:$0xf]  ;;  %v5248_v8 = vor.u32 %v7675_v62, %v5247_v61  ;;  %913 = vmatpush.bf16.msra.mxu3 %v5520_v60  ;;  %v5569_v53 = vld [vmem:[#allocation5 + $0x3f0] sm:$0xf0] }
  0x23   :  { %v7739_v6 = vld [vmem:[#allocation5 + $0x36c] sm:$0xf0]  ;;  %v5103_v9 = vld [vmem:[#allocation5 + $0x40] sm:$0xf]  ;;  %v5376_v11 = vor.u32 %v7707_v4, %v5375_v63  ;;  %875 = vmatpush.bf16.msra.mxu0 %v5120_v7  ;;  %v5572_v58 = vor.u32 %v7753_v52, %v5569_v53  ;;  %v7653_v59 = vld [vmem:[#allocation5 + $0xc4] sm:$0xf] }
  0x24   :  { %v7639_v10 = vld [vmem:[#allocation5 + $0x4c] sm:$0xf0]  ;;  %v5504_v12 = vor.u32 %v7739_v6, %v5503_v5  ;;  %v5231_v13 = vld [vmem:[#allocation5 + $0x140] sm:$0xf]  ;;  %888 = vmatpush.bf16.msra.mxu1 %v5248_v8  ;;  %v5169_v60 = vld [vmem:[#allocation5 + $0xd0] sm:$0xf0] }
  0x25   :  { %v7671_v14 = vld [vmem:[#allocation5 + $0x14c] sm:$0xf0]  ;;  %v5359_v15 = vld [vmem:[#allocation5 + $0x240] sm:$0xf]  ;;  %v5104_v19 = vor.u32 %v7639_v10, %v5103_v9  ;;  %901 = vmatpush.bf16.msra.mxu2 %v5376_v11  ;;  %v7685_v61 = vld [vmem:[#allocation5 + $0x1c4] sm:$0xf]  ;;  %v5172_v62 = vor.u32 %v7653_v59, %v5169_v60 }
  0x26   :  { %v7703_v16 = vld [vmem:[#allocation5 + $0x24c] sm:$0xf0]  ;;  %v5487_v17 = vld [vmem:[#allocation5 + $0x340] sm:$0xf]  ;;  %v5232_v20 = vor.u32 %v7671_v14, %v5231_v13  ;;  %914 = vmatpush.bf16.msra.mxu3 %v5504_v12  ;;  %v5297_v63 = vld [vmem:[#allocation5 + $0x1d0] sm:$0xf0] }
  0x27   :  { %v7735_v18 = vld [vmem:[#allocation5 + $0x34c] sm:$0xf0]  ;;  %v5087_v21 = vld [vmem:[#allocation5 + $0x20] sm:$0xf]  ;;  %v5360_v23 = vor.u32 %v7703_v16, %v5359_v15  ;;  %876 = vmatpush.bf16.msra.mxu0 %v5104_v19  ;;  %v7717_v4 = vld [vmem:[#allocation5 + $0x2c4] sm:$0xf]  ;;  %v5300_v6 = vor.u32 %v7685_v61, %v5297_v63 }
  0x28   :  { %v7635_v22 = vld [vmem:[#allocation5 + $0x2c] sm:$0xf0]  ;;  %v5488_v24 = vor.u32 %v7735_v18, %v5487_v17  ;;  %v5215_v25 = vld [vmem:[#allocation5 + $0x120] sm:$0xf]  ;;  %889 = vmatpush.bf16.msra.mxu1 %v5232_v20  ;;  %v5425_v5 = vld [vmem:[#allocation5 + $0x2d0] sm:$0xf0] }
  0x29   :  { %v7667_v26 = vld [vmem:[#allocation5 + $0x12c] sm:$0xf0]  ;;  %v5343_v27 = vld [vmem:[#allocation5 + $0x220] sm:$0xf]  ;;  %v5088_v31 = vor.u32 %v7635_v22, %v5087_v21  ;;  %902 = vmatpush.bf16.msra.mxu2 %v5360_v23  ;;  %v5428_v7 = vor.u32 %v7717_v4, %v5425_v5  ;;  %v7749_v8 = vld [vmem:[#allocation5 + $0x3c4] sm:$0xf] }
  0x2a   :  { %v7699_v28 = vld [vmem:[#allocation5 + $0x22c] sm:$0xf0]  ;;  %v5471_v29 = vld [vmem:[#allocation5 + $0x320] sm:$0xf]  ;;  %v5216_v34 = vor.u32 %v7667_v26, %v5215_v25  ;;  %915 = vmatpush.bf16.msra.mxu3 %v5488_v24  ;;  %v5553_v9 = vld [vmem:[#allocation5 + $0x3d0] sm:$0xf0] }
  0x2b   :  { %v7731_v30 = vld [vmem:[#allocation5 + $0x32c] sm:$0xf0]  ;;  %v5071_v32 = vld [vmem:[#allocation5] sm:$0xf]  ;;  %v5344_v38 = vor.u32 %v7699_v28, %v5343_v27  ;;  %877 = vmatpush.bf16.msra.mxu0 %v5088_v31  ;;  %v5556_v10 = vor.u32 %v7749_v8, %v5553_v9  ;;  %v7649_v11 = vld [vmem:[#allocation5 + $0xa4] sm:$0xf] }
  0x2c   :  { %v7631_v33 = vld [vmem:[#allocation5 + $0xc] sm:$0xf0]  ;;  %v5199_v35 = vld [vmem:[#allocation5 + $0x100] sm:$0xf]  ;;  %v5472_v39 = vor.u32 %v7731_v30, %v5471_v29  ;;  %890 = vmatpush.bf16.msra.mxu1 %v5216_v34  ;;  %v5153_v12 = vld [vmem:[#allocation5 + $0xb0] sm:$0xf0] }
  0x2d   :  { %v7663_v36 = vld [vmem:[#allocation5 + $0x10c] sm:$0xf0]  ;;  %v5327_v37 = vld [vmem:[#allocation5 + $0x200] sm:$0xf]  ;;  %v5072_v46 = vor.u32 %v7631_v33, %v5071_v32  ;;  %903 = vmatpush.bf16.msra.mxu2 %v5344_v38  ;;  %v7681_v13 = vld [vmem:[#allocation5 + $0x1a4] sm:$0xf]  ;;  %v5156_v14 = vor.u32 %v7649_v11, %v5153_v12 }
  0x2e   :  { %v7695_v40 = vld [vmem:[#allocation5 + $0x20c] sm:$0xf0]  ;;  %v5455_v43 = vld [vmem:[#allocation5 + $0x300] sm:$0xf]  ;;  %v5200_v50 = vor.u32 %v7663_v36, %v5199_v35  ;;  %916 = vmatpush.bf16.msra.mxu3 %v5472_v39  ;;  %v5281_v15 = vld [vmem:[#allocation5 + $0x1b0] sm:$0xf0] }
  0x2f   :  { %v7727_v44 = vld [vmem:[#allocation5 + $0x30c] sm:$0xf0]  ;;  %v5328_v54 = vor.u32 %v7695_v40, %v5327_v37  ;;  %878 = vmatpush.bf16.msra.mxu0 %v5072_v46  ;;  %v7713_v16 = vld [vmem:[#allocation5 + $0x2a4] sm:$0xf]  ;;  %v5409_v17 = vld [vmem:[#allocation5 + $0x2b0] sm:$0xf0]  ;;  %v5284_v18 = vor.u32 %v7681_v13, %v5281_v15 }
  0x30   :  { %v5456_v55 = vor.u32 %v7727_v44, %v5455_v43  ;;  %891 = vmatpush.bf16.msra.mxu1 %v5200_v50  ;;  %v5412_v19 = vor.u32 %v7713_v16, %v5409_v17  ;;  %v7745_v20 = vld [vmem:[#allocation5 + $0x3a4] sm:$0xf]  ;;  %v5537_v21 = vld [vmem:[#allocation5 + $0x3b0] sm:$0xf0] }
  0x31   :  { %904 = vmatpush.bf16.msra.mxu2 %v5328_v54  ;;  %v5540_v22 = vor.u32 %v7745_v20, %v5537_v21  ;;  %v7645_v23 = vld [vmem:[#allocation5 + $0x84] sm:$0xf]  ;;  %v5137_v24 = vld [vmem:[#allocation5 + $0x90] sm:$0xf0] }
  0x32   :  { %917 = vmatpush.bf16.msra.mxu3 %v5456_v55  ;;  %v7677_v25 = vld [vmem:[#allocation5 + $0x184] sm:$0xf]  ;;  %v5140_v26 = vor.u32 %v7645_v23, %v5137_v24  ;;  %v5265_v27 = vld [vmem:[#allocation5 + $0x190] sm:$0xf0] }
  0x33   :  { %923 = vmatpush.bf16.msrb.mxu0 %v5188_v51  ;;  %v7709_v28 = vld [vmem:[#allocation5 + $0x284] sm:$0xf]  ;;  %v5393_v29 = vld [vmem:[#allocation5 + $0x290] sm:$0xf0]  ;;  %v5268_v30 = vor.u32 %v7677_v25, %v5265_v27 }
  0x34   :  { %936 = vmatpush.bf16.msrb.mxu1 %v5316_v56  ;;  %v5396_v31 = vor.u32 %v7709_v28, %v5393_v29  ;;  %v7741_v32 = vld [vmem:[#allocation5 + $0x384] sm:$0xf]  ;;  %v5521_v33 = vld [vmem:[#allocation5 + $0x390] sm:$0xf0] }
  0x35   :  { %949 = vmatpush.bf16.msrb.mxu2 %v5444_v57  ;;  %v5524_v34 = vor.u32 %v7741_v32, %v5521_v33  ;;  %v7641_v35 = vld [vmem:[#allocation5 + $0x64] sm:$0xf]  ;;  %v5121_v36 = vld [vmem:[#allocation5 + $0x70] sm:$0xf0]  ;;  %v5191_v32 = vld [vmem:[#allocation5 + $0xe8] sm:$0xf] }
  0x36   :  { %962 = vmatpush.bf16.msrb.mxu3 %v5572_v58  ;;  %v7673_v37 = vld [vmem:[#allocation5 + $0x164] sm:$0xf]  ;;  %v5124_v38 = vor.u32 %v7641_v35, %v5121_v36  ;;  %v5249_v39 = vld [vmem:[#allocation5 + $0x170] sm:$0xf0]  ;;  %v7660_v33 = vld [vmem:[#allocation5 + $0xf4] sm:$0xf0] }
  0x37   :  { %924 = vmatpush.bf16.msrb.mxu0 %v5172_v62  ;;  %v7705_v40 = vld [vmem:[#allocation5 + $0x264] sm:$0xf]  ;;  %v5377_v41 = vld [vmem:[#allocation5 + $0x270] sm:$0xf0]  ;;  %v5252_v42 = vor.u32 %v7673_v37, %v5249_v39  ;;  %v7692_v35 = vld [vmem:[#allocation5 + $0x1f4] sm:$0xf0] }
  0x38   :  { %937 = vmatpush.bf16.msrb.mxu1 %v5300_v6  ;;  %v5380_v43 = vor.u32 %v7705_v40, %v5377_v41  ;;  %v7737_v44 = vld [vmem:[#allocation5 + $0x364] sm:$0xf]  ;;  %v5505_v45 = vld [vmem:[#allocation5 + $0x370] sm:$0xf0]  ;;  %v5447_v37 = vld [vmem:[#allocation5 + $0x2e8] sm:$0xf] }
  0x39   :  { %950 = vmatpush.bf16.msrb.mxu2 %v5428_v7  ;;  %v5508_v46 = vor.u32 %v7737_v44, %v5505_v45  ;;  %v7637_v47 = vld [vmem:[#allocation5 + $0x44] sm:$0xf]  ;;  %v5105_v48 = vld [vmem:[#allocation5 + $0x50] sm:$0xf0]  ;;  %v7756_v44 = vld [vmem:[#allocation5 + $0x3f4] sm:$0xf0]  ;;  %v5192_v45 = vor.u32 %v7660_v33, %v5191_v32 }
  0x3a   :  { %963 = vmatpush.bf16.msrb.mxu3 %v5556_v10  ;;  %v7669_v49 = vld [vmem:[#allocation5 + $0x144] sm:$0xf]  ;;  %v5108_v50 = vor.u32 %v7637_v47, %v5105_v48  ;;  %v5233_v51 = vld [vmem:[#allocation5 + $0x150] sm:$0xf0]  ;;  %v7740_v32 = vld [vmem:[#allocation5 + $0x374] sm:$0xf0] }
  0x3b   :  { %925 = vmatpush.bf16.msrb.mxu0 %v5156_v14  ;;  %v7701_v52 = vld [vmem:[#allocation5 + $0x244] sm:$0xf]  ;;  %v5361_v53 = vld [vmem:[#allocation5 + $0x250] sm:$0xf0]  ;;  %v5236_v54 = vor.u32 %v7669_v49, %v5233_v51  ;;  %v7656_v51 = vld [vmem:[#allocation5 + $0xd4] sm:$0xf0] }
  0x3c   :  { %938 = vmatpush.bf16.msrb.mxu1 %v5284_v18  ;;  %v5364_v55 = vor.u32 %v7701_v52, %v5361_v53  ;;  %v7733_v56 = vld [vmem:[#allocation5 + $0x344] sm:$0xf]  ;;  %v5489_v57 = vld [vmem:[#allocation5 + $0x350] sm:$0xf0]  ;;  %v7688_v53 = vld [vmem:[#allocation5 + $0x1d4] sm:$0xf0] }
  0x3d   :  { %951 = vmatpush.bf16.msrb.mxu2 %v5412_v19  ;;  %v5492_v58 = vor.u32 %v7733_v56, %v5489_v57  ;;  %v7633_v59 = vld [vmem:[#allocation5 + $0x24] sm:$0xf]  ;;  %v5089_v60 = vld [vmem:[#allocation5 + $0x30] sm:$0xf0]  ;;  %v7752_v56 = vld [vmem:[#allocation5 + $0x3d4] sm:$0xf0] }
  0x3e   :  { %964 = vmatpush.bf16.msrb.mxu3 %v5540_v22  ;;  %v7665_v61 = vld [vmem:[#allocation5 + $0x124] sm:$0xf]  ;;  %v5092_v62 = vor.u32 %v7633_v59, %v5089_v60  ;;  %v5217_v63 = vld [vmem:[#allocation5 + $0x130] sm:$0xf0]  ;;  %v5159_v59 = vld [vmem:[#allocation5 + $0xa8] sm:$0xf] }
  0x3f   :  { %926 = vmatpush.bf16.msrb.mxu0 %v5140_v26  ;;  %v7697_v4 = vld [vmem:[#allocation5 + $0x224] sm:$0xf]  ;;  %v5345_v5 = vld [vmem:[#allocation5 + $0x230] sm:$0xf0]  ;;  %v5220_v6 = vor.u32 %v7665_v61, %v5217_v63  ;;  %v7652_v60 = vld [vmem:[#allocation5 + $0xb4] sm:$0xf0] }
  0x40   :  { %939 = vmatpush.bf16.msrb.mxu1 %v5268_v30  ;;  %v5348_v7 = vor.u32 %v7697_v4, %v5345_v5  ;;  %v7729_v8 = vld [vmem:[#allocation5 + $0x324] sm:$0xf]  ;;  %v5473_v9 = vld [vmem:[#allocation5 + $0x330] sm:$0xf0]  ;;  %v5287_v63 = vld [vmem:[#allocation5 + $0x1a8] sm:$0xf] }
  0x41   :  { %952 = vmatpush.bf16.msrb.mxu2 %v5396_v31  ;;  %v5476_v10 = vor.u32 %v7729_v8, %v5473_v9  ;;  %v7629_v11 = vld [vmem:[#allocation5 + $0x4] sm:$0xf]  ;;  %v5073_v12 = vld [vmem:[#allocation5 + $0x10] sm:$0xf0]  ;;  %v7684_v4 = vld [vmem:[#allocation5 + $0x1b4] sm:$0xf0]  ;;  %v5160_v9 = vor.u32 %v7652_v60, %v5159_v59 }
  0x42   :  { %965 = vmatpush.bf16.msrb.mxu3 %v5524_v34  ;;  %v7661_v13 = vld [vmem:[#allocation5 + $0x104] sm:$0xf]  ;;  %v5076_v14 = vor.u32 %v7629_v11, %v5073_v12  ;;  %v5201_v15 = vld [vmem:[#allocation5 + $0x110] sm:$0xf0]  ;;  %v5319_v34 = vld [vmem:[#allocation5 + $0x1e8] sm:$0xf] }
  0x43   :  { %927 = vmatpush.bf16.msrb.mxu0 %v5124_v38  ;;  %v7693_v16 = vld [vmem:[#allocation5 + $0x204] sm:$0xf]  ;;  %v5329_v17 = vld [vmem:[#allocation5 + $0x210] sm:$0xf0]  ;;  %v5204_v18 = vor.u32 %v7661_v13, %v5201_v15  ;;  %v5415_v5 = vld [vmem:[#allocation5 + $0x2a8] sm:$0xf] }
  0x44   :  { %940 = vmatpush.bf16.msrb.mxu1 %v5252_v42  ;;  %v5332_v19 = vor.u32 %v7693_v16, %v5329_v17  ;;  %v7725_v20 = vld [vmem:[#allocation5 + $0x304] sm:$0xf]  ;;  %v5457_v21 = vld [vmem:[#allocation5 + $0x310] sm:$0xf0]  ;;  %v7724_v42 = vld [vmem:[#allocation5 + $0x2f4] sm:$0xf0] }
  0x45   :  { %953 = vmatpush.bf16.msrb.mxu2 %v5380_v43  ;;  %v5460_v22 = vor.u32 %v7725_v20, %v5457_v21  ;;  %v5575_v43 = vld [vmem:[#allocation5 + $0x3e8] sm:$0xf]  ;;  %v7748_v8 = vld [vmem:[#allocation5 + $0x3b4] sm:$0xf0] }
  0x46   :  { %966 = vmatpush.bf16.msrb.mxu3 %v5508_v46  ;;  %v5320_v46 = vor.u32 %v7692_v35, %v5319_v34  ;;  %v5576_v52 = vor.u32 %v7756_v44, %v5575_v43  ;;  %v5143_v11 = vld [vmem:[#allocation5 + $0x88] sm:$0xf]  ;;  %v7648_v12 = vld [vmem:[#allocation5 + $0x94] sm:$0xf0] }
  0x47   :  { %928 = vmatpush.bf16.msrb.mxu0 %v5108_v50  ;;  %v5271_v15 = vld [vmem:[#allocation5 + $0x188] sm:$0xf]  ;;  %v7680_v16 = vld [vmem:[#allocation5 + $0x194] sm:$0xf0]  ;;  %v5144_v21 = vor.u32 %v7648_v12, %v5143_v11  ;;  %v7690_v11 = vld [vmem:[#allocation5 + $0x1ec] sm:$0xf] }
  0x48   :  { %941 = vmatpush.bf16.msrb.mxu1 %v5236_v54  ;;  %v7720_v54 = vld [vmem:[#allocation5 + $0x2d4] sm:$0xf0]  ;;  %v5399_v17 = vld [vmem:[#allocation5 + $0x288] sm:$0xf]  ;;  %v5321_v12 = vld [vmem:[#allocation5 + $0x1f8] sm:$0xf0] }
  0x49   :  { %954 = vmatpush.bf16.msrb.mxu2 %v5364_v55  ;;  %v5559_v55 = vld [vmem:[#allocation5 + $0x3c8] sm:$0xf]  ;;  %v7744_v20 = vld [vmem:[#allocation5 + $0x394] sm:$0xf0] }
  0x4a   :  { %967 = vmatpush.bf16.msrb.mxu3 %v5492_v58  ;;  %v5111_v35 = vld [vmem:[#allocation5 + $0x48] sm:$0xf]  ;;  %v7736_v44 = vld [vmem:[#allocation5 + $0x354] sm:$0xf0] }
  0x4b   :  { %929 = vmatpush.bf16.msrb.mxu0 %v5092_v62  ;;  %v5560_v62 = vor.u32 %v7752_v56, %v5559_v55  ;;  %v5495_v43 = vld [vmem:[#allocation5 + $0x348] sm:$0xf]  ;;  %v7732_v56 = vld [vmem:[#allocation5 + $0x334] sm:$0xf0] }
  0x4c   :  { %942 = vmatpush.bf16.msrb.mxu1 %v5220_v6  ;;  %v7716_v6 = vld [vmem:[#allocation5 + $0x2b4] sm:$0xf0]  ;;  %v5479_v55 = vld [vmem:[#allocation5 + $0x328] sm:$0xf] }
  0x4d   :  { %955 = vmatpush.bf16.msrb.mxu2 %v5348_v7  ;;  %v5543_v7 = vld [vmem:[#allocation5 + $0x3a8] sm:$0xf]  ;;  %v5416_v13 = vor.u32 %v7716_v6, %v5415_v5  ;;  %v7632_v60 = vld [vmem:[#allocation5 + $0x14] sm:$0xf0] }
  0x4e   :  { %968 = vmatpush.bf16.msrb.mxu3 %v5476_v10  ;;  %v5288_v10 = vor.u32 %v7684_v4, %v5287_v63  ;;  %v5480_v4 = vor.u32 %v7732_v56, %v5479_v55  ;;  %v5335_v5 = vld [vmem:[#allocation5 + $0x208] sm:$0xf]  ;;  %v7696_v6 = vld [vmem:[#allocation5 + $0x214] sm:$0xf0]  ;;  %v7742_v55 = vld [vmem:[#allocation5 + $0x38c] sm:$0xf] }
  0x4f   :  { %930 = vmatpush.bf16.msrb.mxu0 %v5076_v14  ;;  %v5544_v14 = vor.u32 %v7748_v8, %v5543_v7  ;;  %v5463_v7 = vld [vmem:[#allocation5 + $0x308] sm:$0xf]  ;;  %v7728_v8 = vld [vmem:[#allocation5 + $0x314] sm:$0xf0]  ;;  %v5529_v56 = vld [vmem:[#allocation5 + $0x398] sm:$0xf0] }
  0x50   :  { %943 = vmatpush.bf16.msrb.mxu1 %v5204_v18  ;;  %v7712_v18 = vld [vmem:[#allocation5 + $0x294] sm:$0xf0] }
  0x51   :  { %956 = vmatpush.bf16.msrb.mxu2 %v5332_v19  ;;  %v5527_v19 = vld [vmem:[#allocation5 + $0x388] sm:$0xf] }
  0x52   :  { %969 = vmatpush.bf16.msrb.mxu3 %v5460_v22  ;;  %v5272_v22 = vor.u32 %v7680_v16, %v5271_v15  ;;  %v5449_v16 = vld [vmem:[#allocation5 + $0x2f8] sm:$0xf0] }
  0x8a   :  { %v72_v23 = vpop.xlane.xlu0 %71 }
  0x8b   :  { %v73_v24 = vmul.f32 0.001953125, %v72_v23  ;;  %v5127_v23 = vld [vmem:[#allocation5 + $0x68] sm:$0xf] }
  0x8d   :  { %v74_v25 = vadd.f32 1e-08, %v73_v24  ;;  %v7644_v24 = vld [vmem:[#allocation5 + $0x74] sm:$0xf0] }
  0x8e   :  { %v5128_v33 = vor.u32 %v7644_v24, %v5127_v23  ;;  %v7654_v23 = vld [vmem:[#allocation5 + $0xcc] sm:$0xf]  ;;  %v5177_v24 = vld [vmem:[#allocation5 + $0xd8] sm:$0xf0] }
  0x8f   :  { %8277 = vrsqrt.f32 %v74_v25  ;;  %vm81_vm1 = vweird.f32 %v74_v25 }
  0x95   :  { %v8278_v26 = vpop.eup %8277 }
  0x96   :  { %v76_v27 = vmul.f32 %v8278_v26, %v74_v25  ;;  %vm82_vm0 = vweird.f32 %v8278_v26  ;;  %v5400_v25 = vor.u32 %v7712_v18, %v5399_v17  ;;  %v7754_v17 = vld [vmem:[#allocation5 + $0x3ec] sm:$0xf]  ;;  %v5577_v18 = vld [vmem:[#allocation5 + $0x3f8] sm:$0xf0] }
  0x97   :  { %vm83_vm2 = vmor %vm81_vm1, %vm82_vm0 }
  0x98   :  { %v77_v28 = vmul.f32 %v8278_v26, %v76_v27  ;;  %v5255_v27 = vld [vmem:[#allocation5 + $0x168] sm:$0xf] }
  0x9a   :  { %v78_v29 = vmul.f32 0.5, %v77_v28  ;;  %v7676_v28 = vld [vmem:[#allocation5 + $0x174] sm:$0xf0] }
  0x9b   :  { %v5256_v34 = vor.u32 %v7676_v28, %v5255_v27  ;;  %v7686_v27 = vld [vmem:[#allocation5 + $0x1cc] sm:$0xf]  ;;  %v5305_v28 = vld [vmem:[#allocation5 + $0x1d8] sm:$0xf0] }
  0x9c   :  { %v79_v30 = vsub.f32 1.5, %v78_v29  ;;  %v5383_v29 = vld [vmem:[#allocation5 + $0x268] sm:$0xf] }
  0x9e   :  { %v80_v31 = vmul.f32 %v8278_v26, %v79_v30  ;;  %v7708_v30 = vld [vmem:[#allocation5 + $0x274] sm:$0xf0] }
  0xa0   :  { %v84_v36 = vsel %vm83_vm2, %v8278_v26, %v80_v31  ;;  %v5528_v26 = vor.u32 %v7744_v20, %v5527_v19  ;;  %v5511_v31 = vld [vmem:[#allocation5 + $0x368] sm:$0xf]  ;;  %v5336_v19 = vor.u32 %v7696_v6, %v5335_v5  ;;  %v5464_v20 = vor.u32 %v7728_v8, %v5463_v7  ;;  %v7706_v5 = vld [vmem:[#allocation5 + $0x26c] sm:$0xf]  ;;  %v5385_v6 = vld [vmem:[#allocation5 + $0x278] sm:$0xf0] }
  0xa1   :  { %v85_v38 = vmul.f32 %v84_v36, %v8418_v0  ;;  %v86_v39 = vmul.f32 %v84_v36, %v8420_v1  ;;  %v87_v40 = vmul.f32 %v84_v36, %v8422_v2  ;;  %v88_v41 = vmul.f32 %v84_v36, %v8424_v3  ;;  %v5175_v0 = vld [vmem:[#allocation5 + $0xc8] sm:$0xf]  ;;  %v7640_v36 = vld [vmem:[#allocation5 + $0x54] sm:$0xf0]  ;;  %v7738_v7 = vld [vmem:[#allocation5 + $0x36c] sm:$0xf] }
  0xa2   :  { %v5448_v1 = vor.u32 %v7724_v42, %v5447_v37  ;;  %v5303_v2 = vld [vmem:[#allocation5 + $0x1c8] sm:$0xf]  ;;  %v5176_v57 = vor.u32 %v7656_v51, %v5175_v0  ;;  %v5384_v37 = vor.u32 %v7708_v30, %v5383_v29  ;;  %v7704_v42 = vld [vmem:[#allocation5 + $0x254] sm:$0xf0]  ;;  %v7718_v29 = vld [vmem:[#allocation5 + $0x2cc] sm:$0xf] }
  0xa3   :  { %v8438_v47 = vpack.c.bf16 %v85_v38, %v85_v38  ;;  %v8440_v48 = vpack.c.bf16 %v86_v39, %v86_v39  ;;  %v8442_v49 = vpack.c.bf16 %v87_v40, %v87_v40  ;;  %v8444_v50 = vpack.c.bf16 %v88_v41, %v88_v41  ;;  %v5431_v3 = vld [vmem:[#allocation5 + $0x2c8] sm:$0xf]  ;;  %v7672_v40 = vld [vmem:[#allocation5 + $0x154] sm:$0xf0]  ;;  %v5433_v30 = vld [vmem:[#allocation5 + $0x2d8] sm:$0xf0] }
  0xa4   :  { %v5304_v58 = vor.u32 %v7688_v53, %v5303_v2  ;;  %v5432_v61 = vor.u32 %v7720_v54, %v5431_v3  ;;  %v5512_v38 = vor.u32 %v7740_v32, %v5511_v31  ;;  %v5239_v39 = vld [vmem:[#allocation5 + $0x148] sm:$0xf]  ;;  %v7636_v51 = vld [vmem:[#allocation5 + $0x34] sm:$0xf0]  ;;  %v7750_v31 = vld [vmem:[#allocation5 + $0x3cc] sm:$0xf] }
  0xa5   :  { %879 = vmatmul.bf16.vlgmr.msra.gmra.mxu0 %v8438_v47  ;;  %892 = vmatmul.bf16.vlgmr.msra.gmra.mxu1 %v8440_v48  ;;  %v5367_v41 = vld [vmem:[#allocation5 + $0x248] sm:$0xf]  ;;  %v7668_v53 = vld [vmem:[#allocation5 + $0x134] sm:$0xf0]  ;;  %v5561_v32 = vld [vmem:[#allocation5 + $0x3d8] sm:$0xf0] }
  0xa6   :  { %905 = vmatmul.bf16.vlgmr.msra.gmra.mxu2 %v8442_v49  ;;  %918 = vmatmul.bf16.vlgmr.msra.gmra.mxu3 %v8444_v50  ;;  %v5095_v0 = vld [vmem:[#allocation5 + $0x28] sm:$0xf]  ;;  %v7700_v54 = vld [vmem:[#allocation5 + $0x234] sm:$0xf0]  ;;  %v5513_v8 = vld [vmem:[#allocation5 + $0x378] sm:$0xf0] }
  0xa7   :  { %975 = vmatpush.bf16.msra.mxu0 %v5192_v45  ;;  %988 = vmatpush.bf16.msra.mxu1 %v5320_v46  ;;  %v5112_v45 = vor.u32 %v7640_v36, %v5111_v35  ;;  %v5240_v46 = vor.u32 %v7672_v40, %v5239_v39  ;;  %v5223_v2 = vld [vmem:[#allocation5 + $0x128] sm:$0xf]  ;;  %v7650_v35 = vld [vmem:[#allocation5 + $0xac] sm:$0xf]  ;;  %v5161_v36 = vld [vmem:[#allocation5 + $0xb8] sm:$0xf0] }
  0xa8   :  { %1001 = vmatpush.bf16.msra.mxu2 %v5448_v1  ;;  %1014 = vmatpush.bf16.msra.mxu3 %v5576_v52  ;;  %v5368_v1 = vor.u32 %v7704_v42, %v5367_v41  ;;  %v5496_v52 = vor.u32 %v7736_v44, %v5495_v43  ;;  %v5351_v3 = vld [vmem:[#allocation5 + $0x228] sm:$0xf]  ;;  %v5224_v59 = vor.u32 %v7668_v53, %v5223_v2  ;;  %v7682_v39 = vld [vmem:[#allocation5 + $0x1ac] sm:$0xf]  ;;  %v5289_v40 = vld [vmem:[#allocation5 + $0x1b8] sm:$0xf0] }
  0xa9   :  { %v5352_v63 = vor.u32 %v7700_v54, %v5351_v3  ;;  %v7714_v41 = vld [vmem:[#allocation5 + $0x2ac] sm:$0xf]  ;;  %v5417_v42 = vld [vmem:[#allocation5 + $0x2b8] sm:$0xf0] }
  0xaa   :  { %v7746_v43 = vld [vmem:[#allocation5 + $0x3ac] sm:$0xf]  ;;  %v5545_v44 = vld [vmem:[#allocation5 + $0x3b8] sm:$0xf0] }
  0xab   :  { %976 = vmatpush.bf16.msra.mxu0 %v5176_v57  ;;  %989 = vmatpush.bf16.msra.mxu1 %v5304_v58  ;;  %v5079_v57 = vld [vmem:[#allocation5 + $0x8] sm:$0xf]  ;;  %v5096_v58 = vor.u32 %v7636_v51, %v5095_v0  ;;  %v7646_v0 = vld [vmem:[#allocation5 + $0x8c] sm:$0xf]  ;;  %v5145_v51 = vld [vmem:[#allocation5 + $0x98] sm:$0xf0] }
  0xac   :  { %1002 = vmatpush.bf16.msra.mxu2 %v5432_v61  ;;  %1015 = vmatpush.bf16.msra.mxu3 %v5560_v62  ;;  %v5207_v61 = vld [vmem:[#allocation5 + $0x108] sm:$0xf]  ;;  %v7664_v62 = vld [vmem:[#allocation5 + $0x114] sm:$0xf0]  ;;  %v7678_v2 = vld [vmem:[#allocation5 + $0x18c] sm:$0xf] }
  0xad   :  { %v5208_v15 = vor.u32 %v7664_v62, %v5207_v61  ;;  %v5273_v53 = vld [vmem:[#allocation5 + $0x198] sm:$0xf0]  ;;  %v7710_v3 = vld [vmem:[#allocation5 + $0x28c] sm:$0xf]  ;;  %v5532_v62 = vor.u32 %v7742_v55, %v5529_v56  ;;  %v7783_v56 = vld [vmem:[#allocation5 + $0x4cc] sm:$0xf0] }
  0xae   :  { %v5401_v54 = vld [vmem:[#allocation5 + $0x298] sm:$0xf0] }
  0xaf   :  { %977 = vmatpush.bf16.msra.mxu0 %v5160_v9  ;;  %990 = vmatpush.bf16.msra.mxu1 %v5288_v10  ;;  %v7658_v9 = vld [vmem:[#allocation5 + $0xec] sm:$0xf]  ;;  %v5193_v10 = vld [vmem:[#allocation5 + $0xf8] sm:$0xf0]  ;;  %v5404_v61 = vor.u32 %v7710_v3, %v5401_v54  ;;  %v5679_v54 = vld [vmem:[#allocation5 + $0x4c0] sm:$0xf] }
  0xb0   :  { %1003 = vmatpush.bf16.msra.mxu2 %v5416_v13  ;;  %1016 = vmatpush.bf16.msra.mxu3 %v5544_v14  ;;  %v7722_v13 = vld [vmem:[#allocation5 + $0x2ec] sm:$0xf]  ;;  %v5080_v14 = vor.u32 %v7632_v60, %v5079_v57  ;;  %v5148_v57 = vor.u32 %v7646_v0, %v5145_v51  ;;  %v5129_v60 = vld [vmem:[#allocation5 + $0x78] sm:$0xf0]  ;;  %v5823_v0 = vld [vmem:[#allocation5 + $0x5e0] sm:$0xf] }
  0xb1   :  { %v7819_v51 = vld [vmem:[#allocation5 + $0x5ec] sm:$0xf0] }
  0xb2   :  { %v5824_v55 = vor.u32 %v7819_v51, %v5823_v0  ;;  %v7781_v51 = vld [vmem:[#allocation5 + $0x4c4] sm:$0xf] }
  0xb3   :  { %978 = vmatpush.bf16.msra.mxu0 %v5144_v21  ;;  %991 = vmatpush.bf16.msra.mxu1 %v5272_v22  ;;  %v5196_v21 = vor.u32 %v7658_v9, %v5193_v10  ;;  %v5324_v22 = vor.u32 %v7690_v11, %v5321_v12  ;;  %v7638_v11 = vld [vmem:[#allocation5 + $0x4c] sm:$0xf]  ;;  %v5113_v12 = vld [vmem:[#allocation5 + $0x58] sm:$0xf0] }
  0xb4   :  { %1004 = vmatpush.bf16.msra.mxu2 %v5400_v25  ;;  %1017 = vmatpush.bf16.msra.mxu3 %v5528_v26  ;;  %v5452_v25 = vor.u32 %v7722_v13, %v5449_v16  ;;  %v5580_v26 = vor.u32 %v7754_v17, %v5577_v18  ;;  %v5388_v13 = vor.u32 %v7706_v5, %v5385_v6  ;;  %v5241_v16 = vld [vmem:[#allocation5 + $0x158] sm:$0xf0]  ;;  %v7702_v17 = vld [vmem:[#allocation5 + $0x24c] sm:$0xf]  ;;  %v5791_v6 = vld [vmem:[#allocation5 + $0x5a0] sm:$0xf] }
  0xb5   :  { %931 = vmatmul.bf16.vlgmr.msrb.gmra.mxu0 %v8438_v47  ;;  %944 = vmatmul.bf16.vlgmr.msrb.gmra.mxu1 %v8440_v48  ;;  %v5369_v18 = vld [vmem:[#allocation5 + $0x258] sm:$0xf0] }
  0xb6   :  { %957 = vmatmul.bf16.vlgmr.msrb.gmra.mxu2 %v8442_v49  ;;  %970 = vmatmul.bf16.vlgmr.msrb.gmra.mxu3 %v8444_v50 }
  0xb7   :  { %979 = vmatpush.bf16.msra.mxu0 %v5128_v33  ;;  %992 = vmatpush.bf16.msra.mxu1 %v5256_v34  ;;  %v5180_v33 = vor.u32 %v7654_v23, %v5177_v24  ;;  %v5308_v34 = vor.u32 %v7686_v27, %v5305_v28  ;;  %v7634_v23 = vld [vmem:[#allocation5 + $0x2c] sm:$0xf]  ;;  %v5097_v24 = vld [vmem:[#allocation5 + $0x38] sm:$0xf0] }
  0xb8   :  { %1005 = vmatpush.bf16.msra.mxu2 %v5384_v37  ;;  %1018 = vmatpush.bf16.msra.mxu3 %v5512_v38  ;;  %v5436_v37 = vor.u32 %v7718_v29, %v5433_v30  ;;  %v5564_v38 = vor.u32 %v7750_v31, %v5561_v32  ;;  %v7666_v27 = vld [vmem:[#allocation5 + $0x12c] sm:$0xf]  ;;  %v5225_v28 = vld [vmem:[#allocation5 + $0x138] sm:$0xf0] }
  0xb9   :  { %v7698_v29 = vld [vmem:[#allocation5 + $0x22c] sm:$0xf]  ;;  %v5353_v30 = vld [vmem:[#allocation5 + $0x238] sm:$0xf0] }
  0xba   :  { %v7730_v31 = vld [vmem:[#allocation5 + $0x32c] sm:$0xf]  ;;  %v5481_v32 = vld [vmem:[#allocation5 + $0x338] sm:$0xf0] }
  0xbb   :  { %980 = vmatpush.bf16.msra.mxu0 %v5112_v45  ;;  %993 = vmatpush.bf16.msra.mxu1 %v5240_v46  ;;  %v5164_v45 = vor.u32 %v7650_v35, %v5161_v36  ;;  %v5292_v46 = vor.u32 %v7682_v39, %v5289_v40  ;;  %v7630_v35 = vld [vmem:[#allocation5 + $0xc] sm:$0xf]  ;;  %v5081_v36 = vld [vmem:[#allocation5 + $0x18] sm:$0xf0]  ;;  %v5484_v39 = vor.u32 %v7730_v31, %v5481_v32  ;;  %v5599_v32 = vld [vmem:[#allocation5 + $0x420] sm:$0xf] }
  0xbc   :  { %1006 = vmatpush.bf16.msra.mxu2 %v5368_v1  ;;  %1019 = vmatpush.bf16.msra.mxu3 %v5496_v52  ;;  %v5420_v1 = vor.u32 %v7714_v41, %v5417_v42  ;;  %v5548_v52 = vor.u32 %v7746_v43, %v5545_v44  ;;  %v5209_v40 = vld [vmem:[#allocation5 + $0x118] sm:$0xf0]  ;;  %v7694_v41 = vld [vmem:[#allocation5 + $0x20c] sm:$0xf] }
  0xbd   :  { %v5337_v42 = vld [vmem:[#allocation5 + $0x218] sm:$0xf0]  ;;  %v7726_v43 = vld [vmem:[#allocation5 + $0x30c] sm:$0xf] }
  0xbe   :  { %v5465_v44 = vld [vmem:[#allocation5 + $0x318] sm:$0xf0] }
  0xbf   :  { %981 = vmatpush.bf16.msra.mxu0 %v5096_v58  ;;  %994 = vmatpush.bf16.msra.mxu1 %v5224_v59  ;;  %v5276_v58 = vor.u32 %v7678_v2, %v5273_v53  ;;  %v7642_v59 = vld [vmem:[#allocation5 + $0x6c] sm:$0xf]  ;;  %v5340_v2 = vor.u32 %v7694_v41, %v5337_v42  ;;  %v5468_v53 = vor.u32 %v7726_v43, %v5465_v44  ;;  %v5711_v41 = vld [vmem:[#allocation5 + $0x500] sm:$0xf]  ;;  %v7791_v42 = vld [vmem:[#allocation5 + $0x50c] sm:$0xf0] }
  0xc0   :  { %1007 = vmatpush.bf16.msra.mxu2 %v5352_v63  ;;  %1020 = vmatpush.bf16.msra.mxu3 %v5480_v4  ;;  %v7674_v63 = vld [vmem:[#allocation5 + $0x16c] sm:$0xf]  ;;  %v5257_v4 = vld [vmem:[#allocation5 + $0x178] sm:$0xf0]  ;;  %v5132_v9 = vor.u32 %v7642_v59, %v5129_v60  ;;  %v5951_v59 = vld [vmem:[#allocation5 + $0x6e0] sm:$0xf] }
  0xc1   :  { %v5260_v10 = vor.u32 %v7674_v63, %v5257_v4  ;;  %v7851_v60 = vld [vmem:[#allocation5 + $0x6ec] sm:$0xf0]  ;;  %v5663_v63 = vld [vmem:[#allocation5 + $0x4a0] sm:$0xf]  ;;  %v7785_v43 = vld [vmem:[#allocation5 + $0x4e4] sm:$0xf] }
  0xc2   :  { %v7779_v4 = vld [vmem:[#allocation5 + $0x4ac] sm:$0xf0]  ;;  %v5697_v44 = vld [vmem:[#allocation5 + $0x4f0] sm:$0xf0] }
  0xc3   :  { %982 = vmatpush.bf16.msra.mxu0 %v5080_v14  ;;  %995 = vmatpush.bf16.msra.mxu1 %v5208_v15  ;;  %v5516_v14 = vor.u32 %v7738_v7, %v5513_v8  ;;  %v7670_v15 = vld [vmem:[#allocation5 + $0x14c] sm:$0xf]  ;;  %v7811_v7 = vld [vmem:[#allocation5 + $0x5ac] sm:$0xf0]  ;;  %v5935_v8 = vld [vmem:[#allocation5 + $0x6c0] sm:$0xf]  ;;  %v5700_v0 = vor.u32 %v7785_v43, %v5697_v44 }
  0xc4   :  { %1008 = vmatpush.bf16.msra.mxu2 %v5336_v19  ;;  %1021 = vmatpush.bf16.msra.mxu3 %v5464_v20  ;;  %v7734_v19 = vld [vmem:[#allocation5 + $0x34c] sm:$0xf]  ;;  %v5497_v20 = vld [vmem:[#allocation5 + $0x358] sm:$0xf0]  ;;  %v5937_v43 = vld [vmem:[#allocation5 + $0x6d0] sm:$0xf0] }
  0xc6   :  { %983 = vmatmul.bf16.vlgmr.msra.gmra.mxu0 %v8438_v47  ;;  %996 = vmatmul.bf16.vlgmr.msra.gmra.mxu1 %v8440_v48 }
  0xc7   :  { %1027 = vmatpush.bf16.msrb.mxu0 %v5196_v21  ;;  %1040 = vmatpush.bf16.msrb.mxu1 %v5324_v22  ;;  %v5116_v21 = vor.u32 %v7638_v11, %v5113_v12  ;;  %v5244_v22 = vor.u32 %v7670_v15, %v5241_v16  ;;  %v5664_v11 = vor.u32 %v7779_v4, %v5663_v63  ;;  %v5647_v12 = vld [vmem:[#allocation5 + $0x480] sm:$0xf]  ;;  %v5809_v63 = vld [vmem:[#allocation5 + $0x5d0] sm:$0xf0] }
  0xc8   :  { %1053 = vmatpush.bf16.msrb.mxu2 %v5452_v25  ;;  %1066 = vmatpush.bf16.msrb.mxu3 %v5580_v26  ;;  %v5372_v25 = vor.u32 %v7702_v17, %v5369_v18  ;;  %v5500_v26 = vor.u32 %v7734_v19, %v5497_v20  ;;  %v5775_v15 = vld [vmem:[#allocation5 + $0x580] sm:$0xf]  ;;  %v7771_v19 = vld [vmem:[#allocation5 + $0x46c] sm:$0xf0] }
  0xc9   :  { %1009 = vmatmul.bf16.vlgmr.msra.gmra.mxu2 %v8442_v49  ;;  %1022 = vmatmul.bf16.vlgmr.msra.gmra.mxu3 %v8444_v50  ;;  %v5919_v16 = vld [vmem:[#allocation5 + $0x6a0] sm:$0xf] }
  0xca   :  { %v5759_v20 = vld [vmem:[#allocation5 + $0x560] sm:$0xf] }
  0xcb   :  { %1028 = vmatpush.bf16.msrb.mxu0 %v5180_v33  ;;  %1041 = vmatpush.bf16.msrb.mxu1 %v5308_v34  ;;  %v5100_v33 = vor.u32 %v7634_v23, %v5097_v24  ;;  %v5228_v34 = vor.u32 %v7666_v27, %v5225_v28  ;;  %v7839_v23 = vld [vmem:[#allocation5 + $0x68c] sm:$0xf0] }
  0xcc   :  { %1054 = vmatpush.bf16.msrb.mxu2 %v5436_v37  ;;  %1067 = vmatpush.bf16.msrb.mxu3 %v5564_v38  ;;  %v7662_v37 = vld [vmem:[#allocation5 + $0x10c] sm:$0xf]  ;;  %v5356_v38 = vor.u32 %v7698_v29, %v5353_v30  ;;  %v7767_v28 = vld [vmem:[#allocation5 + $0x44c] sm:$0xf0]  ;;  %v5743_v29 = vld [vmem:[#allocation5 + $0x540] sm:$0xf] }
  0xcd   :  { %v7799_v30 = vld [vmem:[#allocation5 + $0x54c] sm:$0xf0] }
  0xcf   :  { %1029 = vmatpush.bf16.msrb.mxu0 %v5164_v45  ;;  %1042 = vmatpush.bf16.msrb.mxu1 %v5292_v46  ;;  %v5695_v45 = vld [vmem:[#allocation5 + $0x4e0] sm:$0xf]  ;;  %v7787_v46 = vld [vmem:[#allocation5 + $0x4ec] sm:$0xf0] }
  0xd0   :  { %1055 = vmatpush.bf16.msrb.mxu2 %v5420_v1  ;;  %1068 = vmatpush.bf16.msrb.mxu3 %v5548_v52  ;;  %v5084_v1 = vor.u32 %v7630_v35, %v5081_v36  ;;  %v5212_v52 = vor.u32 %v7662_v37, %v5209_v40  ;;  %v5696_v3 = vor.u32 %v7787_v46, %v5695_v45  ;;  %v5727_v35 = vld [vmem:[#allocation5 + $0x520] sm:$0xf]  ;;  %v7795_v36 = vld [vmem:[#allocation5 + $0x52c] sm:$0xf0] }
  0xd1   :  { %v7759_v40 = vld [vmem:[#allocation5 + $0x40c] sm:$0xf0]  ;;  %v5712_v46 = vor.u32 %v7791_v42, %v5711_v41  ;;  %v5745_v41 = vld [vmem:[#allocation5 + $0x550] sm:$0xf0]  ;;  %v7845_v42 = vld [vmem:[#allocation5 + $0x6c4] sm:$0xf] }
  0xd3   :  { %1030 = vmatpush.bf16.msrb.mxu0 %v5148_v57  ;;  %1043 = vmatpush.bf16.msrb.mxu1 %v5276_v58  ;;  %v5807_v57 = vld [vmem:[#allocation5 + $0x5c0] sm:$0xf]  ;;  %v7815_v58 = vld [vmem:[#allocation5 + $0x5cc] sm:$0xf0] }
  0xd4   :  { %1056 = vmatpush.bf16.msrb.mxu2 %v5404_v61  ;;  %1069 = vmatpush.bf16.msrb.mxu3 %v5532_v62  ;;  %v5952_v61 = vor.u32 %v7851_v60, %v5951_v59  ;;  %v5680_v62 = vor.u32 %v7783_v56, %v5679_v54  ;;  %v5808_v5 = vor.u32 %v7815_v58, %v5807_v57  ;;  %v5825_v56 = vld [vmem:[#allocation5 + $0x5f0] sm:$0xf0]  ;;  %v5887_v59 = vld [vmem:[#allocation5 + $0x660] sm:$0xf]  ;;  %v7835_v60 = vld [vmem:[#allocation5 + $0x66c] sm:$0xf0] }
  0xd5   :  { %v5649_v57 = vld [vmem:[#allocation5 + $0x490] sm:$0xf0] }
  0xd7   :  { %1031 = vmatpush.bf16.msrb.mxu0 %v5132_v9  ;;  %1044 = vmatpush.bf16.msrb.mxu1 %v5260_v10  ;;  %v7847_v9 = vld [vmem:[#allocation5 + $0x6cc] sm:$0xf0] }
  0xd8   :  { %1057 = vmatpush.bf16.msrb.mxu2 %v5388_v13  ;;  %1070 = vmatpush.bf16.msrb.mxu3 %v5516_v14  ;;  %v5936_v10 = vor.u32 %v7847_v9, %v5935_v8  ;;  %v7775_v13 = vld [vmem:[#allocation5 + $0x48c] sm:$0xf0]  ;;  %v5792_v14 = vor.u32 %v7811_v7, %v5791_v6  ;;  %v7769_v6 = vld [vmem:[#allocation5 + $0x464] sm:$0xf]  ;;  %v5633_v7 = vld [vmem:[#allocation5 + $0x470] sm:$0xf0] }
  0xd9   :  { %v5648_v18 = vor.u32 %v7775_v13, %v5647_v12  ;;  %v5871_v8 = vld [vmem:[#allocation5 + $0x640] sm:$0xf]  ;;  %v7831_v9 = vld [vmem:[#allocation5 + $0x64c] sm:$0xf0]  ;;  %v5636_v12 = vor.u32 %v7769_v6, %v5633_v7  ;;  %v5793_v13 = vld [vmem:[#allocation5 + $0x5b0] sm:$0xf0] }
  0xda   :  { %v6015_v7 = vld [vmem:[#allocation5 + $0x760] sm:$0xf] }
  0xdb   :  { %1032 = vmatpush.bf16.msrb.mxu0 %v5116_v21  ;;  %1045 = vmatpush.bf16.msrb.mxu1 %v5244_v22  ;;  %v7803_v21 = vld [vmem:[#allocation5 + $0x56c] sm:$0xf0]  ;;  %v5903_v22 = vld [vmem:[#allocation5 + $0x680] sm:$0xf] }
  0xdc   :  { %1058 = vmatpush.bf16.msrb.mxu2 %v5372_v25  ;;  %1071 = vmatpush.bf16.msrb.mxu3 %v5500_v26  ;;  %v5904_v24 = vor.u32 %v7839_v23, %v5903_v22  ;;  %v5615_v26 = vld [vmem:[#allocation5 + $0x440] sm:$0xf]  ;;  %v5760_v27 = vor.u32 %v7803_v21, %v5759_v20  ;;  %v5601_v20 = vld [vmem:[#allocation5 + $0x430] sm:$0xf0]  ;;  %v7823_v23 = vld [vmem:[#allocation5 + $0x60c] sm:$0xf0] }
  0xdd   :  { %v5616_v31 = vor.u32 %v7767_v28, %v5615_v26  ;;  %v5839_v22 = vld [vmem:[#allocation5 + $0x600] sm:$0xf]  ;;  %v7883_v26 = vld [vmem:[#allocation5 + $0x7ec] sm:$0xf0]  ;;  %v7801_v28 = vld [vmem:[#allocation5 + $0x564] sm:$0xf] }
  0xdf   :  { %1033 = vmatpush.bf16.msrb.mxu0 %v5100_v33  ;;  %1046 = vmatpush.bf16.msrb.mxu1 %v5228_v34  ;;  %v5744_v33 = vor.u32 %v7799_v30, %v5743_v29  ;;  %v7763_v34 = vld [vmem:[#allocation5 + $0x42c] sm:$0xf0]  ;;  %v5761_v29 = vld [vmem:[#allocation5 + $0x570] sm:$0xf0]  ;;  %v7849_v30 = vld [vmem:[#allocation5 + $0x6e4] sm:$0xf] }
  0xe0   :  { %1059 = vmatpush.bf16.msrb.mxu2 %v5356_v38  ;;  %1072 = vmatpush.bf16.msrb.mxu3 %v5484_v39  ;;  %v5600_v37 = vor.u32 %v7763_v34, %v5599_v32  ;;  %v5583_v38 = vld [vmem:[#allocation5 + $0x400] sm:$0xf]  ;;  %v5728_v39 = vor.u32 %v7795_v36, %v5727_v35  ;;  %v7757_v32 = vld [vmem:[#allocation5 + $0x404] sm:$0xf]  ;;  %v5764_v34 = vor.u32 %v7801_v28, %v5761_v29  ;;  %v5953_v35 = vld [vmem:[#allocation5 + $0x6f0] sm:$0xf0] }
  0xe1   :  { %v5584_v45 = vor.u32 %v7759_v40, %v5583_v38  ;;  %v5956_v36 = vor.u32 %v7849_v30, %v5953_v35  ;;  %v7879_v38 = vld [vmem:[#allocation5 + $0x7cc] sm:$0xf0]  ;;  %v7825_v29 = vld [vmem:[#allocation5 + $0x624] sm:$0xf]  ;;  %v5857_v30 = vld [vmem:[#allocation5 + $0x630] sm:$0xf0] }
  0xe3   :  { %1034 = vmatpush.bf16.msrb.mxu0 %v5084_v1  ;;  %1047 = vmatpush.bf16.msrb.mxu1 %v5212_v52  ;;  %v5681_v1 = vld [vmem:[#allocation5 + $0x4d0] sm:$0xf0] }
  0xe4   :  { %1060 = vmatpush.bf16.msrb.mxu2 %v5340_v2  ;;  %1073 = vmatpush.bf16.msrb.mxu3 %v5468_v53  ;;  %v5684_v52 = vor.u32 %v7781_v51, %v5681_v1  ;;  %v7777_v2 = vld [vmem:[#allocation5 + $0x4a4] sm:$0xf]  ;;  %v5665_v53 = vld [vmem:[#allocation5 + $0x4b0] sm:$0xf0]  ;;  %v7875_v51 = vld [vmem:[#allocation5 + $0x7ac] sm:$0xf0] }
  0xe5   :  { %v5668_v54 = vor.u32 %v7777_v2, %v5665_v53  ;;  %v5729_v2 = vld [vmem:[#allocation5 + $0x530] sm:$0xf0]  ;;  %v7841_v53 = vld [vmem:[#allocation5 + $0x6a4] sm:$0xf] }
  0xe6   :  { %1035 = vmatmul.bf16.vlgmr.msrb.gmra.mxu0 %v8438_v47  ;;  %1048 = vmatmul.bf16.vlgmr.msrb.gmra.mxu1 %v8440_v48  ;;  %v7807_v47 = vld [vmem:[#allocation5 + $0x58c] sm:$0xf0] }
  0xe7   :  { %1863 = vmatpush.bf16.msra.mxu0 %v5696_v3  ;;  %1876 = vmatpush.bf16.msra.mxu1 %v5824_v55  ;;  %v7843_v48 = vld [vmem:[#allocation5 + $0x6ac] sm:$0xf0]  ;;  %v7817_v3 = vld [vmem:[#allocation5 + $0x5e4] sm:$0xf] }
  0xe8   :  { %1061 = vmatmul.bf16.vlgmr.msrb.gmra.mxu2 %v8442_v49  ;;  %1074 = vmatmul.bf16.vlgmr.msrb.gmra.mxu3 %v8444_v50  ;;  %v5920_v17 = vor.u32 %v7843_v48, %v5919_v16  ;;  %v5631_v49 = vld [vmem:[#allocation5 + $0x460] sm:$0xf]  ;;  %v5776_v50 = vor.u32 %v7807_v47, %v5775_v15  ;;  %v7773_v55 = vld [vmem:[#allocation5 + $0x484] sm:$0xf]  ;;  %v5828_v58 = vor.u32 %v7817_v3, %v5825_v56  ;;  %v5617_v15 = vld [vmem:[#allocation5 + $0x450] sm:$0xf0] }
  0xe9   :  { %1889 = vmatpush.bf16.msra.mxu2 %v5952_v61  ;;  %v5632_v25 = vor.u32 %v7771_v19, %v5631_v49  ;;  %v5888_v61 = vor.u32 %v7835_v60, %v5887_v59  ;;  %v5855_v16 = vld [vmem:[#allocation5 + $0x620] sm:$0xf]  ;;  %v7827_v48 = vld [vmem:[#allocation5 + $0x62c] sm:$0xf0]  ;;  %v5777_v49 = vld [vmem:[#allocation5 + $0x590] sm:$0xf0] }
  0xea   :  { %v7789_v59 = vld [vmem:[#allocation5 + $0x504] sm:$0xf] }
  0xeb   :  { %1864 = vmatpush.bf16.msra.mxu0 %v5680_v62  ;;  %1877 = vmatpush.bf16.msra.mxu1 %v5808_v5  ;;  %v7813_v62 = vld [vmem:[#allocation5 + $0x5c4] sm:$0xf]  ;;  %v5652_v5 = vor.u32 %v7773_v55, %v5649_v57  ;;  %v8462_v55 = vld [vmem:[#allocation7] sm:$0xf] }
  0xec   :  { %v5812_v4 = vor.u32 %v7813_v62, %v5809_v63  ;;  %v6031_v57 = vld [vmem:[#allocation5 + $0x780] sm:$0xf]  ;;  %v7837_v62 = vld [vmem:[#allocation5 + $0x684] sm:$0xf]  ;;  %v5905_v63 = vld [vmem:[#allocation5 + $0x690] sm:$0xf0] }
  0xed   :  { %1890 = vmatpush.bf16.msra.mxu2 %v5936_v10  ;;  %v5872_v10 = vor.u32 %v7831_v9, %v5871_v8  ;;  %v5908_v6 = vor.u32 %v7837_v62, %v5905_v63  ;;  %v7867_v8 = vld [vmem:[#allocation5 + $0x76c] sm:$0xf0]  ;;  %v7873_v62 = vld [vmem:[#allocation5 + $0x7a4] sm:$0xf]  ;;  %v6049_v63 = vld [vmem:[#allocation5 + $0x7b0] sm:$0xf0] }
  0xef   :  { %1865 = vmatpush.bf16.msra.mxu0 %v5664_v11  ;;  %1878 = vmatpush.bf16.msra.mxu1 %v5792_v14  ;;  %v7809_v11 = vld [vmem:[#allocation5 + $0x5a4] sm:$0xf] }
  0xf0   :  { %v7765_v14 = vld [vmem:[#allocation5 + $0x444] sm:$0xf]  ;;  %v5796_v47 = vor.u32 %v7809_v11, %v5793_v13  ;;  %v6016_v11 = vor.u32 %v7867_v8, %v6015_v7  ;;  %v5889_v13 = vld [vmem:[#allocation5 + $0x670] sm:$0xf0] }
  0xf1   :  { %1891 = vmatpush.bf16.msra.mxu2 %v5920_v17  ;;  %v5856_v17 = vor.u32 %v7827_v48, %v5855_v16  ;;  %v5620_v19 = vor.u32 %v7765_v14, %v5617_v15  ;;  %v7863_v16 = vld [vmem:[#allocation5 + $0x74c] sm:$0xf0] }
  0xf3   :  { %1866 = vmatpush.bf16.msra.mxu0 %v5648_v18  ;;  %1879 = vmatpush.bf16.msra.mxu1 %v5776_v50  ;;  %v7805_v18 = vld [vmem:[#allocation5 + $0x584] sm:$0xf] }
  0xf4   :  { %v7761_v50 = vld [vmem:[#allocation5 + $0x424] sm:$0xf]  ;;  %v5780_v21 = vor.u32 %v7805_v18, %v5777_v49  ;;  %v5873_v18 = vld [vmem:[#allocation5 + $0x650] sm:$0xf0] }
  0xf5   :  { %1892 = vmatpush.bf16.msra.mxu2 %v5904_v24  ;;  %v6079_v24 = vld [vmem:[#allocation5 + $0x7e0] sm:$0xf] }
  0xf7   :  { %1867 = vmatpush.bf16.msra.mxu0 %v5632_v25  ;;  %1880 = vmatpush.bf16.msra.mxu1 %v5760_v27  ;;  %v5840_v25 = vor.u32 %v7823_v23, %v5839_v22  ;;  %v6080_v27 = vor.u32 %v7883_v26, %v6079_v24  ;;  %v5983_v26 = vld [vmem:[#allocation5 + $0x720] sm:$0xf] }
  0xf9   :  { %1893 = vmatpush.bf16.msra.mxu2 %v5888_v61  ;;  %1902 = vmatpush.bf16.msra.mxu3 %v6080_v27  ;;  %v5713_v61 = vld [vmem:[#allocation5 + $0x510] sm:$0xf0]  ;;  %v7859_v27 = vld [vmem:[#allocation5 + $0x72c] sm:$0xf0] }
  0xfa   :  { %v5984_v28 = vor.u32 %v7859_v27, %v5983_v26 }
  0xfb   :  { %1868 = vmatpush.bf16.msra.mxu0 %v5616_v31  ;;  %1881 = vmatpush.bf16.msra.mxu1 %v5744_v33  ;;  %v5604_v31 = vor.u32 %v7761_v50, %v5601_v20  ;;  %v5585_v33 = vld [vmem:[#allocation5 + $0x410] sm:$0xf0] }
  0xfd   :  { %1894 = vmatpush.bf16.msra.mxu2 %v5872_v10 }
  0xff   :  { %1869 = vmatpush.bf16.msra.mxu0 %v5600_v37  ;;  %1882 = vmatpush.bf16.msra.mxu1 %v5728_v39  ;;  %v6063_v37 = vld [vmem:[#allocation5 + $0x7c0] sm:$0xf]  ;;  %v7797_v39 = vld [vmem:[#allocation5 + $0x544] sm:$0xf] }
 0x100   :  { %v6064_v40 = vor.u32 %v7879_v38, %v6063_v37  ;;  %v5748_v44 = vor.u32 %v7797_v39, %v5745_v41  ;;  %v5967_v37 = vld [vmem:[#allocation5 + $0x700] sm:$0xf]  ;;  %v7855_v38 = vld [vmem:[#allocation5 + $0x70c] sm:$0xf0]  ;;  %v5841_v41 = vld [vmem:[#allocation5 + $0x610] sm:$0xf0] }
 0x101   :  { %1895 = vmatpush.bf16.msra.mxu2 %v5856_v17  ;;  %v7829_v17 = vld [vmem:[#allocation5 + $0x644] sm:$0xf]  ;;  %v5968_v39 = vor.u32 %v7855_v38, %v5967_v37  ;;  %v6001_v37 = vld [vmem:[#allocation5 + $0x750] sm:$0xf0] }
 0x102   :  { %1903 = vmatpush.bf16.msra.mxu3 %v6064_v40  ;;  %v7821_v40 = vld [vmem:[#allocation5 + $0x604] sm:$0xf] }
 0x103   :  { %1870 = vmatpush.bf16.msra.mxu0 %v5584_v45  ;;  %1883 = vmatpush.bf16.msra.mxu1 %v5712_v46  ;;  %v5940_v45 = vor.u32 %v7845_v42, %v5937_v43  ;;  %v5588_v46 = vor.u32 %v7757_v32, %v5585_v33  ;;  %v5860_v32 = vor.u32 %v7825_v29, %v5857_v30  ;;  %v7881_v42 = vld [vmem:[#allocation5 + $0x7e4] sm:$0xf]  ;;  %v224_v43 = vperm.slane %v8462_v55, 1 }
 0x105   :  { %1896 = vmatpush.bf16.msra.mxu2 %v5840_v25  ;;  %v7788_v25 = vld [vmem:[#allocation5 + $0x4f4] sm:$0xf0] }
 0x107   :  { %1915 = vmatpush.bf16.msrb.mxu0 %v5700_v0  ;;  %1928 = vmatpush.bf16.msrb.mxu1 %v5828_v58  ;;  %v6047_v0 = vld [vmem:[#allocation5 + $0x7a0] sm:$0xf]  ;;  %v7871_v58 = vld [vmem:[#allocation5 + $0x78c] sm:$0xf0] }
 0x108   :  { %v6048_v1 = vor.u32 %v7875_v51, %v6047_v0  ;;  %v6032_v60 = vor.u32 %v7871_v58, %v6031_v57 }
 0x109   :  { %1941 = vmatpush.bf16.msrb.mxu2 %v5956_v36  ;;  %v7784_v36 = vld [vmem:[#allocation5 + $0x4d4] sm:$0xf0] }
 0x10a   :  { %1904 = vmatpush.bf16.msra.mxu3 %v6048_v1 }
 0x10b   :  { %1916 = vmatpush.bf16.msrb.mxu0 %v5684_v52  ;;  %1929 = vmatpush.bf16.msrb.mxu1 %v5812_v4  ;;  %v7793_v52 = vld [vmem:[#allocation5 + $0x524] sm:$0xf]  ;;  %v223_v4 = vperm.slane %v8462_v55, 0 }
 0x10c   :  { %v5732_v3 = vor.u32 %v7793_v52, %v5729_v2 }
 0x10d   :  { %1942 = vmatpush.bf16.msrb.mxu2 %v5940_v45  ;;  %v6081_v45 = vld [vmem:[#allocation5 + $0x7f0] sm:$0xf0] }
 0x10e   :  { %1905 = vmatpush.bf16.msra.mxu3 %v6032_v60  ;;  %v6084_v1 = vor.u32 %v7881_v42, %v6081_v45  ;;  %v5655_v60 = vld [vmem:[#allocation5 + $0x488] sm:$0xf] }
 0x10f   :  { %1917 = vmatpush.bf16.msrb.mxu0 %v5668_v54  ;;  %1930 = vmatpush.bf16.msrb.mxu1 %v5796_v47  ;;  %v5921_v54 = vld [vmem:[#allocation5 + $0x6b0] sm:$0xf0]  ;;  %v5999_v47 = vld [vmem:[#allocation5 + $0x740] sm:$0xf] }
 0x110   :  { %v5924_v56 = vor.u32 %v7841_v53, %v5921_v54  ;;  %v6000_v48 = vor.u32 %v7863_v16, %v5999_v47  ;;  %v5671_v53 = vld [vmem:[#allocation5 + $0x4a8] sm:$0xf]  ;;  %v7877_v54 = vld [vmem:[#allocation5 + $0x7c4] sm:$0xf]  ;;  %v6033_v16 = vld [vmem:[#allocation5 + $0x790] sm:$0xf0] }
 0x111   :  { %v7869_v47 = vld [vmem:[#allocation5 + $0x784] sm:$0xf] }
 0x112   :  { %1943 = vmatpush.bf16.msrb.mxu2 %v5924_v56  ;;  %1906 = vmatpush.bf16.msra.mxu3 %v6016_v11  ;;  %v6065_v56 = vld [vmem:[#allocation5 + $0x7d0] sm:$0xf0] }
 0x113   :  { %1918 = vmatpush.bf16.msrb.mxu0 %v5652_v5  ;;  %1931 = vmatpush.bf16.msrb.mxu1 %v5780_v21  ;;  %v5716_v5 = vor.u32 %v7789_v59, %v5713_v61  ;;  %v5703_v21 = vld [vmem:[#allocation5 + $0x4e8] sm:$0xf]  ;;  %v6068_v58 = vor.u32 %v7877_v54, %v6065_v56  ;;  %v7776_v61 = vld [vmem:[#allocation5 + $0x494] sm:$0xf0] }
 0x114   :  { %v5704_v33 = vor.u32 %v7788_v25, %v5703_v21  ;;  %v5656_v8 = vor.u32 %v7776_v61, %v5655_v60  ;;  %v5815_v21 = vld [vmem:[#allocation5 + $0x5c8] sm:$0xf]  ;;  %v7782_v60 = vld [vmem:[#allocation5 + $0x4cc] sm:$0xf] }
 0x116   :  { %1944 = vmatpush.bf16.msrb.mxu2 %v5908_v6  ;;  %1907 = vmatpush.bf16.msra.mxu3 %v6000_v48 }
 0x117   :  { %1919 = vmatpush.bf16.msrb.mxu0 %v5636_v12  ;;  %1932 = vmatpush.bf16.msrb.mxu1 %v5764_v34  ;;  %v7833_v12 = vld [vmem:[#allocation5 + $0x664] sm:$0xf]  ;;  %v5687_v34 = vld [vmem:[#allocation5 + $0x4c8] sm:$0xf] }
 0x118   :  { %v5892_v15 = vor.u32 %v7833_v12, %v5889_v13  ;;  %v5688_v51 = vor.u32 %v7784_v36, %v5687_v34  ;;  %v7772_v13 = vld [vmem:[#allocation5 + $0x474] sm:$0xf0]  ;;  %v7861_v36 = vld [vmem:[#allocation5 + $0x744] sm:$0xf] }
 0x119   :  { %v7812_v34 = vld [vmem:[#allocation5 + $0x5b4] sm:$0xf0] }
 0x11a   :  { %1945 = vmatpush.bf16.msrb.mxu2 %v5892_v15  ;;  %1908 = vmatpush.bf16.msra.mxu3 %v5984_v28  ;;  %v7820_v15 = vld [vmem:[#allocation5 + $0x5f4] sm:$0xf0]  ;;  %v225_v28 = vperm.slane %v8462_v55, 2 }
 0x11b   :  { %1920 = vmatpush.bf16.msrb.mxu0 %v5620_v19  ;;  %1933 = vmatpush.bf16.msrb.mxu1 %v5748_v44  ;;  %v5876_v19 = vor.u32 %v7829_v17, %v5873_v18  ;;  %v5844_v44 = vor.u32 %v7821_v40, %v5841_v41  ;;  %v6036_v17 = vor.u32 %v7869_v47, %v6033_v16  ;;  %v7800_v47 = vld [vmem:[#allocation5 + $0x554] sm:$0xf0] }
 0x11c   :  { %v6004_v40 = vor.u32 %v7861_v36, %v6001_v37  ;;  %v7770_v36 = vld [vmem:[#allocation5 + $0x46c] sm:$0xf] }
 0x11e   :  { %1946 = vmatpush.bf16.msrb.mxu2 %v5876_v19  ;;  %1909 = vmatpush.bf16.msra.mxu3 %v5968_v39  ;;  %v5623_v19 = vld [vmem:[#allocation5 + $0x448] sm:$0xf] }
 0x11f   :  { %1921 = vmatpush.bf16.msrb.mxu0 %v5604_v31  ;;  %1934 = vmatpush.bf16.msrb.mxu1 %v5732_v3  ;;  %v7780_v3 = vld [vmem:[#allocation5 + $0x4b4] sm:$0xf0] }
 0x120   :  { %v5672_v59 = vor.u32 %v7780_v3, %v5671_v53 }
 0x122   :  { %v880_v9 = vpop.f32.mrf.mxu0  ;;  %v893_v10 = vpop.f32.mrf.mxu1  ;;  %1947 = vmatpush.bf16.msrb.mxu2 %v5860_v32  ;;  %1954 = vmatpush.bf16.msrb.mxu3 %v6084_v1  ;;  %v7764_v32 = vld [vmem:[#allocation5 + $0x434] sm:$0xf0]  ;;  %v5705_v1 = vld [vmem:[#allocation5 + $0x4f8] sm:$0xf0] }
 0x123   :  { %1922 = vmatpush.bf16.msrb.mxu0 %v5588_v46  ;;  %1935 = vmatpush.bf16.msrb.mxu1 %v5716_v5  ;;  %v881_v14 = vadd.f32 %v880_v9, %v223_v4  ;;  %v6052_v5 = vor.u32 %v7873_v62, %v6049_v63  ;;  %v5639_v9 = vld [vmem:[#allocation5 + $0x468] sm:$0xf]  ;;  %v5689_v63 = vld [vmem:[#allocation5 + $0x4d8] sm:$0xf0] }
 0x124   :  { %v5640_v18 = vor.u32 %v7772_v13, %v5639_v9  ;;  %v5959_v9 = vld [vmem:[#allocation5 + $0x6e8] sm:$0xf] }
 0x125   :  { %v894_v49 = vadd.f32 %v893_v10, %v881_v14  ;;  %v5831_v14 = vld [vmem:[#allocation5 + $0x5e8] sm:$0xf] }
 0x126   :  { %1948 = vmatpush.bf16.msrb.mxu2 %v5844_v44  ;;  %1955 = vmatpush.bf16.msrb.mxu3 %v6068_v58  ;;  %v7760_v44 = vld [vmem:[#allocation5 + $0x414] sm:$0xf0]  ;;  %v5767_v58 = vld [vmem:[#allocation5 + $0x568] sm:$0xf] }
 0x129   :  { %v906_v50 = vpop.f32.mrf.mxu2  ;;  %v919_v20 = vpop.f32.mrf.mxu3 }
 0x12a   :  { %v907_v22 = vadd.f32 %v906_v50, %v894_v49  ;;  %v882_v23 = vpop.f32.mrf.mxu0  ;;  %v895_v24 = vpop.f32.mrf.mxu1  ;;  %1956 = vmatpush.bf16.msrb.mxu3 %v6052_v5  ;;  %v5832_v49 = vor.u32 %v7820_v15, %v5831_v14  ;;  %v5969_v5 = vld [vmem:[#allocation5 + $0x710] sm:$0xf0]  ;;  %v5692_v14 = vor.u32 %v7782_v60, %v5689_v63  ;;  %v5751_v15 = vld [vmem:[#allocation5 + $0x548] sm:$0xf]  ;;  %v5609_v60 = vld [vmem:[#allocation5 + $0x438] sm:$0xf0] }
 0x12b   :  { %v7865_v23 = vld [vmem:[#allocation5 + $0x764] sm:$0xf]  ;;  %v6017_v24 = vld [vmem:[#allocation5 + $0x770] sm:$0xf0]  ;;  %v5801_v63 = vld [vmem:[#allocation5 + $0x5b8] sm:$0xf0] }
 0x12c   :  { %v920_v31 = vadd.f32 %v919_v20, %v907_v22  ;;  %v7768_v20 = vld [vmem:[#allocation5 + $0x454] sm:$0xf0]  ;;  %v6020_v25 = vor.u32 %v7865_v23, %v6017_v24 }
 0x12d   :  { %v7816_v22 = vld [vmem:[#allocation5 + $0x5d4] sm:$0xf0]  ;;  %v5624_v29 = vor.u32 %v7768_v20, %v5623_v19  ;;  %v5752_v20 = vor.u32 %v7800_v47, %v5751_v15 }
 0x12e   :  { %v8465_v35 = vpack.c.bf16 %v920_v31, %v920_v31  ;;  %1957 = vmatpush.bf16.msrb.mxu3 %v6036_v17  ;;  %v5816_v30 = vor.u32 %v7816_v22, %v5815_v21  ;;  %v5607_v31 = vld [vmem:[#allocation5 + $0x428] sm:$0xf]  ;;  %v5673_v17 = vld [vmem:[#allocation5 + $0x4b8] sm:$0xf0]  ;;  %v7848_v19 = vld [vmem:[#allocation5 + $0x6d4] sm:$0xf0] }
 0x12f   :  { %v5608_v41 = vor.u32 %v7764_v32, %v5607_v31  ;;  %v5735_v22 = vld [vmem:[#allocation5 + $0x528] sm:$0xf]  ;;  %v7796_v23 = vld [vmem:[#allocation5 + $0x534] sm:$0xf0] }
 0x130   :  { %1871 = vmatmul.bf16.vlgmr.msra.gmra.mxu0 %v8465_v35  ;;  %v5736_v31 = vor.u32 %v7796_v23, %v5735_v22 }
 0x131   :  { %1967 = vmatpush.bf16.msra.mxu0 %v5704_v33  ;;  %v908_v46 = vpop.f32.mrf.mxu2  ;;  %v921_v0 = vpop.f32.mrf.mxu3  ;;  %v5799_v33 = vld [vmem:[#allocation5 + $0x5a8] sm:$0xf] }
 0x132   :  { %v932_v52 = vpop.f32.mrf.mxu0  ;;  %v945_v2 = vpop.f32.mrf.mxu1  ;;  %1958 = vmatpush.bf16.msrb.mxu3 %v6020_v25  ;;  %v5800_v42 = vor.u32 %v7812_v34, %v5799_v33  ;;  %v5783_v46 = vld [vmem:[#allocation5 + $0x588] sm:$0xf]  ;;  %v7808_v0 = vld [vmem:[#allocation5 + $0x594] sm:$0xf0] }
 0x133   :  { %v933_v57 = vadd.f32 %v932_v52, %v224_v43  ;;  %v5591_v43 = vld [vmem:[#allocation5 + $0x408] sm:$0xf]  ;;  %v7857_v52 = vld [vmem:[#allocation5 + $0x724] sm:$0xf]  ;;  %v5784_v54 = vor.u32 %v7808_v0, %v5783_v46  ;;  %v7792_v34 = vld [vmem:[#allocation5 + $0x514] sm:$0xf0] }
 0x134   :  { %v5592_v3 = vor.u32 %v7760_v44, %v5591_v43  ;;  %v5719_v33 = vld [vmem:[#allocation5 + $0x508] sm:$0xf] }
 0x135   :  { %1968 = vmatpush.bf16.msra.mxu0 %v5688_v51  ;;  %v946_v4 = vadd.f32 %v945_v2, %v933_v57  ;;  %v7786_v51 = vld [vmem:[#allocation5 + $0x4ec] sm:$0xf]  ;;  %v5985_v2 = vld [vmem:[#allocation5 + $0x730] sm:$0xf0]  ;;  %v5720_v43 = vor.u32 %v7792_v34, %v5719_v33  ;;  %v5895_v0 = vld [vmem:[#allocation5 + $0x668] sm:$0xf] }
 0x136   :  { %1959 = vmatpush.bf16.msrb.mxu3 %v6004_v40  ;;  %v5988_v53 = vor.u32 %v7857_v52, %v5985_v2  ;;  %v5708_v57 = vor.u32 %v7786_v51, %v5705_v1  ;;  %v5833_v40 = vld [vmem:[#allocation5 + $0x5f8] sm:$0xf0]  ;;  %v7766_v51 = vld [vmem:[#allocation5 + $0x44c] sm:$0xf]  ;;  %v7836_v52 = vld [vmem:[#allocation5 + $0x674] sm:$0xf0] }
 0x137   :  { %v5625_v1 = vld [vmem:[#allocation5 + $0x458] sm:$0xf0]  ;;  %v7814_v2 = vld [vmem:[#allocation5 + $0x5cc] sm:$0xf]  ;;  %v6071_v34 = vld [vmem:[#allocation5 + $0x7c8] sm:$0xf] }
 0x139   :  { %1969 = vmatpush.bf16.msra.mxu0 %v5672_v59  ;;  %v958_v6 = vpop.f32.mrf.mxu2  ;;  %v971_v7 = vpop.f32.mrf.mxu3  ;;  %v7804_v59 = vld [vmem:[#allocation5 + $0x574] sm:$0xf0] }
 0x13a   :  { %v959_v10 = vadd.f32 %v958_v6, %v946_v4  ;;  %v934_v11 = vpop.f32.mrf.mxu0  ;;  %v947_v12 = vpop.f32.mrf.mxu1  ;;  %1960 = vmatpush.bf16.msrb.mxu3 %v5988_v53  ;;  %v7853_v4 = vld [vmem:[#allocation5 + $0x704] sm:$0xf]  ;;  %v5817_v53 = vld [vmem:[#allocation5 + $0x5d8] sm:$0xf0] }
 0x13b   :  { %v5972_v11 = vor.u32 %v7853_v4, %v5969_v5  ;;  %v5768_v12 = vor.u32 %v7804_v59, %v5767_v58  ;;  %v5879_v58 = vld [vmem:[#allocation5 + $0x648] sm:$0xf]  ;;  %v7762_v59 = vld [vmem:[#allocation5 + $0x42c] sm:$0xf] }
 0x13c   :  { %v972_v48 = vadd.f32 %v971_v7, %v959_v10  ;;  %v7852_v10 = vld [vmem:[#allocation5 + $0x6f4] sm:$0xf0] }
 0x13d   :  { %1970 = vmatpush.bf16.msra.mxu0 %v5656_v8  ;;  %v5960_v16 = vor.u32 %v7852_v10, %v5959_v9  ;;  %v5863_v9 = vld [vmem:[#allocation5 + $0x628] sm:$0xf]  ;;  %v7758_v10 = vld [vmem:[#allocation5 + $0x40c] sm:$0xf] }
 0x13e   :  { %v8469_v50 = vpack.c.bf16 %v972_v48, %v972_v48  ;;  %v7778_v48 = vld [vmem:[#allocation5 + $0x4ac] sm:$0xf]  ;;  %1961 = vmatpush.bf16.msrb.mxu3 %v5972_v11  ;;  %v5593_v11 = vld [vmem:[#allocation5 + $0x418] sm:$0xf0] }
 0x13f   :  { %v5676_v21 = vor.u32 %v7778_v48, %v5673_v17  ;;  %v5596_v15 = vor.u32 %v7758_v10, %v5593_v11  ;;  %v6007_v11 = vld [vmem:[#allocation5 + $0x748] sm:$0xf] }
 0x140   :  { %1884 = vmatmul.bf16.vlgmr.msra.gmra.mxu1 %v8469_v50  ;;  %1923 = vmatmul.bf16.vlgmr.msrb.gmra.mxu0 %v8465_v35 }
 0x141   :  { %1971 = vmatpush.bf16.msra.mxu0 %v5640_v18  ;;  %1980 = vmatpush.bf16.msra.mxu1 %v5832_v49  ;;  %v960_v26 = vpop.f32.mrf.mxu2  ;;  %v973_v27 = vpop.f32.mrf.mxu3  ;;  %v5943_v49 = vld [vmem:[#allocation5 + $0x6c8] sm:$0xf] }
 0x142   :  { %v5944_v26 = vor.u32 %v7848_v19, %v5943_v49  ;;  %v7774_v27 = vld [vmem:[#allocation5 + $0x48c] sm:$0xf]  ;;  %v5847_v19 = vld [vmem:[#allocation5 + $0x608] sm:$0xf] }
 0x143   :  { %v984_v38 = vpop.f32.mrf.mxu0  ;;  %v997_v39 = vpop.f32.mrf.mxu1 }
 0x144   :  { %v985_v45 = vadd.f32 %v984_v38, %v225_v28  ;;  %v5657_v28 = vld [vmem:[#allocation5 + $0x498] sm:$0xf0] }
 0x145   :  { %1972 = vmatpush.bf16.msra.mxu0 %v5624_v29  ;;  %1981 = vmatpush.bf16.msra.mxu1 %v5816_v30  ;;  %v5927_v29 = vld [vmem:[#allocation5 + $0x6a8] sm:$0xf]  ;;  %v7844_v30 = vld [vmem:[#allocation5 + $0x6b4] sm:$0xf0]  ;;  %v5660_v32 = vor.u32 %v7774_v27, %v5657_v28  ;;  %v5641_v38 = vld [vmem:[#allocation5 + $0x478] sm:$0xf0] }
 0x146   :  { %v998_v56 = vadd.f32 %v997_v39, %v985_v45  ;;  %v5928_v37 = vor.u32 %v7844_v30, %v5927_v29  ;;  %v7818_v39 = vld [vmem:[#allocation5 + $0x5ec] sm:$0xf]  ;;  %v5644_v44 = vor.u32 %v7770_v36, %v5641_v38  ;;  %v5769_v27 = vld [vmem:[#allocation5 + $0x578] sm:$0xf0]  ;;  %v7880_v38 = vld [vmem:[#allocation5 + $0x7d4] sm:$0xf0] }
 0x147   :  { %v5836_v45 = vor.u32 %v7818_v39, %v5833_v40  ;;  %v7850_v28 = vld [vmem:[#allocation5 + $0x6ec] sm:$0xf]  ;;  %v5961_v29 = vld [vmem:[#allocation5 + $0x6f8] sm:$0xf0] }
 0x148   :  { %v7798_v39 = vld [vmem:[#allocation5 + $0x54c] sm:$0xf]  ;;  %v5753_v40 = vld [vmem:[#allocation5 + $0x558] sm:$0xf0] }
 0x149   :  { %1973 = vmatpush.bf16.msra.mxu0 %v5608_v41  ;;  %1982 = vmatpush.bf16.msra.mxu1 %v5800_v42  ;;  %v5911_v41 = vld [vmem:[#allocation5 + $0x688] sm:$0xf]  ;;  %v7840_v42 = vld [vmem:[#allocation5 + $0x694] sm:$0xf0] }
 0x14a   :  { %v5912_v46 = vor.u32 %v7840_v42, %v5911_v41  ;;  %v7846_v41 = vld [vmem:[#allocation5 + $0x6cc] sm:$0xf]  ;;  %v5945_v42 = vld [vmem:[#allocation5 + $0x6d8] sm:$0xf0] }
 0x14b   :  { %v986_v7 = vpop.f32.mrf.mxu0  ;;  %v999_v8 = vpop.f32.mrf.mxu1 }
 0x14c   :  { %v1010_v61 = vpop.f32.mrf.mxu2  ;;  %v1023_v62 = vpop.f32.mrf.mxu3 }
 0x14d   :  { %v1011_v6 = vadd.f32 %v1010_v61, %v998_v56  ;;  %1974 = vmatpush.bf16.msra.mxu0 %v5592_v3  ;;  %1983 = vmatpush.bf16.msra.mxu1 %v5784_v54  ;;  %v226_v3 = vperm.slane %v8462_v55, 3  ;;  %v5628_v54 = vor.u32 %v7766_v51, %v5625_v1  ;;  %v5896_v56 = vor.u32 %v7836_v52, %v5895_v0  ;;  %v7832_v61 = vld [vmem:[#allocation5 + $0x654] sm:$0xf0]  ;;  %v6055_v0 = vld [vmem:[#allocation5 + $0x7a8] sm:$0xf] }
 0x14e   :  { %v5880_v55 = vor.u32 %v7832_v61, %v5879_v58  ;;  %v5948_v51 = vor.u32 %v7846_v41, %v5945_v42  ;;  %v7876_v1 = vld [vmem:[#allocation5 + $0x7b4] sm:$0xf0]  ;;  %v5737_v52 = vld [vmem:[#allocation5 + $0x538] sm:$0xf0]  ;;  %v7838_v61 = vld [vmem:[#allocation5 + $0x68c] sm:$0xf] }
 0x14f   :  { %v1024_v13 = vadd.f32 %v1023_v62, %v1011_v6  ;;  %v7810_v62 = vld [vmem:[#allocation5 + $0x5ac] sm:$0xf]  ;;  %v5612_v6 = vor.u32 %v7762_v59, %v5609_v60  ;;  %v7872_v58 = vld [vmem:[#allocation5 + $0x794] sm:$0xf0]  ;;  %v5721_v60 = vld [vmem:[#allocation5 + $0x518] sm:$0xf0] }
 0x150   :  { %1936 = vmatmul.bf16.vlgmr.msrb.gmra.mxu1 %v8469_v50  ;;  %1975 = vmatmul.bf16.vlgmr.msra.gmra.mxu0 %v8465_v35  ;;  %v5804_v8 = vor.u32 %v7810_v62, %v5801_v63  ;;  %v7790_v59 = vld [vmem:[#allocation5 + $0x50c] sm:$0xf]  ;;  %v5913_v62 = vld [vmem:[#allocation5 + $0x698] sm:$0xf0]  ;;  %v7915_v41 = vld [vmem:[#allocation5 + $0x8ec] sm:$0xf0] }
 0x151   :  { %2019 = vmatpush.bf16.msrb.mxu0 %v5708_v57  ;;  %v8474_v18 = vpack.c.bf16 %v1024_v13, %v1024_v13  ;;  %1984 = vmatpush.bf16.msra.mxu1 %v5768_v12  ;;  %v5820_v57 = vor.u32 %v7814_v2, %v5817_v53  ;;  %v7828_v12 = vld [vmem:[#allocation5 + $0x634] sm:$0xf0]  ;;  %v7806_v13 = vld [vmem:[#allocation5 + $0x58c] sm:$0xf]  ;;  %v5929_v53 = vld [vmem:[#allocation5 + $0x6b8] sm:$0xf0] }
 0x152   :  { %v7842_v2 = vld [vmem:[#allocation5 + $0x6ac] sm:$0xf] }
 0x153   :  { %1897 = vmatmul.bf16.vlgmr.msra.gmra.mxu2 %v8474_v18  ;;  %v7866_v42 = vld [vmem:[#allocation5 + $0x76c] sm:$0xf] }
 0x154   :  { %1993 = vmatpush.bf16.msra.mxu2 %v5960_v16  ;;  %v1012_v24 = vpop.f32.mrf.mxu2  ;;  %v1025_v25 = vpop.f32.mrf.mxu3  ;;  %v5864_v16 = vor.u32 %v7828_v12, %v5863_v9  ;;  %v7864_v12 = vld [vmem:[#allocation5 + $0x754] sm:$0xf0] }
 0x155   :  { %2020 = vmatpush.bf16.msrb.mxu0 %v5692_v14  ;;  %1985 = vmatpush.bf16.msra.mxu1 %v5752_v20  ;;  %v5785_v14 = vld [vmem:[#allocation5 + $0x598] sm:$0xf0]  ;;  %v7824_v20 = vld [vmem:[#allocation5 + $0x614] sm:$0xf0] }
 0x156   :  { %v5788_v48 = vor.u32 %v7806_v13, %v5785_v14  ;;  %v7884_v25 = vld [vmem:[#allocation5 + $0x7f4] sm:$0xf0]  ;;  %v7830_v13 = vld [vmem:[#allocation5 + $0x64c] sm:$0xf]  ;;  %v5881_v14 = vld [vmem:[#allocation5 + $0x658] sm:$0xf0] }
 0x158   :  { %1994 = vmatpush.bf16.msra.mxu2 %v5944_v26  ;;  %v7802_v26 = vld [vmem:[#allocation5 + $0x56c] sm:$0xf] }
 0x159   :  { %2021 = vmatpush.bf16.msrb.mxu0 %v5676_v21  ;;  %1986 = vmatpush.bf16.msra.mxu1 %v5736_v31  ;;  %v6087_v21 = vld [vmem:[#allocation5 + $0x7e8] sm:$0xf]  ;;  %v5848_v31 = vor.u32 %v7824_v20, %v5847_v19  ;;  %v5772_v33 = vor.u32 %v7802_v26, %v5769_v27  ;;  %v6089_v26 = vld [vmem:[#allocation5 + $0x7f8] sm:$0xf0] }
 0x15c   :  { %1995 = vmatpush.bf16.msra.mxu2 %v5928_v37  ;;  %v5964_v37 = vor.u32 %v7850_v28, %v5961_v29  ;;  %v7878_v29 = vld [vmem:[#allocation5 + $0x7cc] sm:$0xf] }
 0x15d   :  { %2022 = vmatpush.bf16.msrb.mxu0 %v5660_v32  ;;  %1987 = vmatpush.bf16.msra.mxu1 %v5720_v43  ;;  %v6088_v32 = vor.u32 %v7884_v25, %v6087_v21  ;;  %v5975_v21 = vld [vmem:[#allocation5 + $0x708] sm:$0xf]  ;;  %v7882_v25 = vld [vmem:[#allocation5 + $0x7ec] sm:$0xf] }
 0x15e   :  { %v6092_v28 = vor.u32 %v7882_v25, %v6089_v26  ;;  %v6209_v25 = vld [vmem:[#allocation5 + $0x8f0] sm:$0xf0] }
 0x160   :  { %1996 = vmatpush.bf16.msra.mxu2 %v5912_v46  ;;  %1988 = vmatmul.bf16.vlgmr.msra.gmra.mxu1 %v8469_v50  ;;  %v5756_v46 = vor.u32 %v7798_v39, %v5753_v40  ;;  %v6207_v40 = vld [vmem:[#allocation5 + $0x8e0] sm:$0xf] }
 0x161   :  { %2023 = vmatpush.bf16.msrb.mxu0 %v5644_v44  ;;  %2032 = vmatpush.bf16.msrb.mxu1 %v5836_v45  ;;  %v6072_v45 = vor.u32 %v7880_v38, %v6071_v34  ;;  %v6041_v38 = vld [vmem:[#allocation5 + $0x798] sm:$0xf0] }
 0x163   :  { %v1036_v4 = vpop.f32.mrf.mxu0  ;;  %v1049_v5 = vpop.f32.mrf.mxu1  ;;  %1949 = vmatmul.bf16.vlgmr.msrb.gmra.mxu2 %v8474_v18 }
 0x164   :  { %v1037_v7 = vadd.f32 %v1036_v4, %v226_v3  ;;  %1997 = vmatpush.bf16.msra.mxu2 %v5896_v56  ;;  %v6056_v3 = vor.u32 %v7876_v1, %v6055_v0  ;;  %v6039_v56 = vld [vmem:[#allocation5 + $0x788] sm:$0xf]  ;;  %v5724_v4 = vor.u32 %v7790_v59, %v5721_v60  ;;  %v6009_v0 = vld [vmem:[#allocation5 + $0x758] sm:$0xf0]  ;;  %v7858_v1 = vld [vmem:[#allocation5 + $0x72c] sm:$0xf] }
 0x165   :  { %2024 = vmatpush.bf16.msrb.mxu0 %v5628_v54  ;;  %2033 = vmatpush.bf16.msrb.mxu1 %v5820_v57  ;;  %v5932_v57 = vor.u32 %v7842_v2, %v5929_v53  ;;  %v6040_v63 = vor.u32 %v7872_v58, %v6039_v56  ;;  %v6175_v53 = vld [vmem:[#allocation5 + $0x8a0] sm:$0xf]  ;;  %v5977_v58 = vld [vmem:[#allocation5 + $0x718] sm:$0xf0] }
 0x166   :  { %v1050_v47 = vadd.f32 %v1049_v5, %v1037_v7  ;;  %v5916_v5 = vor.u32 %v7838_v61, %v5913_v62  ;;  %v7868_v7 = vld [vmem:[#allocation5 + $0x774] sm:$0xf0]  ;;  %v6159_v60 = vld [vmem:[#allocation5 + $0x880] sm:$0xf]  ;;  %v7903_v61 = vld [vmem:[#allocation5 + $0x88c] sm:$0xf0] }
 0x167   :  { %v6143_v62 = vld [vmem:[#allocation5 + $0x860] sm:$0xf] }
 0x168   :  { %1998 = vmatpush.bf16.msra.mxu2 %v5880_v55  ;;  %v7834_v55 = vld [vmem:[#allocation5 + $0x66c] sm:$0xf] }
 0x169   :  { %2025 = vmatpush.bf16.msrb.mxu0 %v5612_v6  ;;  %2034 = vmatpush.bf16.msrb.mxu1 %v5804_v8  ;;  %v6023_v6 = vld [vmem:[#allocation5 + $0x768] sm:$0xf]  ;;  %v5897_v8 = vld [vmem:[#allocation5 + $0x678] sm:$0xf0] }
 0x16a   :  { %v6024_v9 = vor.u32 %v7868_v7, %v6023_v6  ;;  %v5900_v10 = vor.u32 %v7834_v55, %v5897_v8  ;;  %v7947_v6 = vld [vmem:[#allocation5 + $0x9ec] sm:$0xf0] }
 0x16b   :  { %v1062_v17 = vpop.f32.mrf.mxu2  ;;  %v1075_v49 = vpop.f32.mrf.mxu3 }
 0x16c   :  { %v1063_v22 = vadd.f32 %v1062_v17, %v1050_v47  ;;  %v1038_v23 = vpop.f32.mrf.mxu0  ;;  %v1051_v24 = vpop.f32.mrf.mxu1  ;;  %1999 = vmatpush.bf16.msra.mxu2 %v5864_v16  ;;  %v5884_v47 = vor.u32 %v7830_v13, %v5881_v14  ;;  %v5991_v16 = vld [vmem:[#allocation5 + $0x728] sm:$0xf]  ;;  %v7826_v17 = vld [vmem:[#allocation5 + $0x62c] sm:$0xf]  ;;  %v7943_v13 = vld [vmem:[#allocation5 + $0x9cc] sm:$0xf0] }
 0x16d   :  { %2026 = vmatpush.bf16.msrb.mxu0 %v5596_v15  ;;  %2035 = vmatpush.bf16.msrb.mxu1 %v5788_v48  ;;  %v6008_v15 = vor.u32 %v7864_v12, %v6007_v11  ;;  %v7860_v48 = vld [vmem:[#allocation5 + $0x734] sm:$0xf0]  ;;  %v7822_v23 = vld [vmem:[#allocation5 + $0x60c] sm:$0xf]  ;;  %v5849_v24 = vld [vmem:[#allocation5 + $0x618] sm:$0xf0] }
 0x16e   :  { %v1076_v30 = vadd.f32 %v1075_v49, %v1063_v22  ;;  %v5865_v49 = vld [vmem:[#allocation5 + $0x638] sm:$0xf0]  ;;  %v5992_v19 = vor.u32 %v7860_v48, %v5991_v16  ;;  %v7856_v22 = vld [vmem:[#allocation5 + $0x714] sm:$0xf0]  ;;  %v5852_v27 = vor.u32 %v7822_v23, %v5849_v24  ;;  %v6319_v12 = vld [vmem:[#allocation5 + $0x9c0] sm:$0xf] }
 0x16f   :  { %v5868_v20 = vor.u32 %v7826_v17, %v5865_v49  ;;  %v6111_v14 = vld [vmem:[#allocation5 + $0x820] sm:$0xf]  ;;  %v7939_v48 = vld [vmem:[#allocation5 + $0x9ac] sm:$0xf0]  ;;  %v7913_v24 = vld [vmem:[#allocation5 + $0x8e4] sm:$0xf] }
 0x170   :  { %v8482_v36 = vpack.c.bf16 %v1076_v30, %v1076_v30  ;;  %2027 = vmatmul.bf16.vlgmr.msrb.gmra.mxu0 %v8465_v35  ;;  %2000 = vmatpush.bf16.msra.mxu2 %v5848_v31  ;;  %v7794_v35 = vld [vmem:[#allocation5 + $0x52c] sm:$0xf]  ;;  %v6073_v30 = vld [vmem:[#allocation5 + $0x7d8] sm:$0xf0]  ;;  %v6303_v16 = vld [vmem:[#allocation5 + $0x9a0] sm:$0xf] }
 0x171   :  { %2036 = vmatpush.bf16.msrb.mxu1 %v5772_v33  ;;  %v5740_v54 = vor.u32 %v7794_v35, %v5737_v52  ;;  %v6076_v31 = vor.u32 %v7878_v29, %v6073_v30  ;;  %v6057_v33 = vld [vmem:[#allocation5 + $0x7b8] sm:$0xf0]  ;;  %v6191_v35 = vld [vmem:[#allocation5 + $0x8c0] sm:$0xf]  ;;  %v7911_v52 = vld [vmem:[#allocation5 + $0x8cc] sm:$0xf0]  ;;  %v6304_v49 = vor.u32 %v7939_v48, %v6303_v16 }
 0x172   :  { %1910 = vmatmul.bf16.vlgmr.msra.gmra.mxu3 %v8482_v36  ;;  %v6192_v2 = vor.u32 %v7911_v52, %v6191_v35  ;;  %v7935_v23 = vld [vmem:[#allocation5 + $0x98c] sm:$0xf0]  ;;  %v6463_v29 = vld [vmem:[#allocation5 + $0xae0] sm:$0xf] }
 0x173   :  { %2006 = vmatpush.bf16.msra.mxu3 %v6088_v32  ;;  %v1064_v43 = vpop.f32.mrf.mxu2  ;;  %v1077_v44 = vpop.f32.mrf.mxu3  ;;  %2001 = vmatmul.bf16.vlgmr.msra.gmra.mxu2 %v8474_v18  ;;  %v7874_v32 = vld [vmem:[#allocation5 + $0x7ac] sm:$0xf]  ;;  %v7979_v30 = vld [vmem:[#allocation5 + $0xaec] sm:$0xf0]  ;;  %v6431_v35 = vld [vmem:[#allocation5 + $0xaa0] sm:$0xf] }
 0x174   :  { %2045 = vmatpush.bf16.msrb.mxu2 %v5964_v37  ;;  %v6060_v34 = vor.u32 %v7874_v32, %v6057_v33  ;;  %v7870_v37 = vld [vmem:[#allocation5 + $0x78c] sm:$0xf]  ;;  %v6025_v43 = vld [vmem:[#allocation5 + $0x778] sm:$0xf0]  ;;  %v6208_v44 = vor.u32 %v7915_v41, %v6207_v40  ;;  %v6464_v32 = vor.u32 %v7979_v30, %v6463_v29  ;;  %v7909_v33 = vld [vmem:[#allocation5 + $0x8c4] sm:$0xf] }
 0x175   :  { %2037 = vmatpush.bf16.msrb.mxu1 %v5756_v46  ;;  %v6044_v39 = vor.u32 %v7870_v37, %v6041_v38  ;;  %v7862_v46 = vld [vmem:[#allocation5 + $0x74c] sm:$0xf]  ;;  %v6255_v40 = vld [vmem:[#allocation5 + $0x940] sm:$0xf]  ;;  %v7927_v41 = vld [vmem:[#allocation5 + $0x94c] sm:$0xf0] }
 0x176   :  { %2855 = vmatpush.bf16.msra.mxu0 %v6208_v44  ;;  %v7975_v44 = vld [vmem:[#allocation5 + $0xacc] sm:$0xf0]  ;;  %v7885_v30 = vld [vmem:[#allocation5 + $0x804] sm:$0xf] }
 0x177   :  { %2007 = vmatpush.bf16.msra.mxu3 %v6072_v45  ;;  %v6028_v45 = vor.u32 %v7866_v42, %v6025_v43  ;;  %v6447_v42 = vld [vmem:[#allocation5 + $0xac0] sm:$0xf]  ;;  %v6256_v43 = vor.u32 %v7927_v41, %v6255_v40  ;;  %v7971_v52 = vld [vmem:[#allocation5 + $0xaac] sm:$0xf0]  ;;  %v6289_v40 = vld [vmem:[#allocation5 + $0x990] sm:$0xf0] }
 0x178   :  { %2046 = vmatpush.bf16.msrb.mxu2 %v5948_v51  ;;  %v6012_v51 = vor.u32 %v7862_v46, %v6009_v0  ;;  %v6177_v46 = vld [vmem:[#allocation5 + $0x8b0] sm:$0xf0]  ;;  %v6448_v0 = vor.u32 %v7975_v44, %v6447_v42  ;;  %v7951_v44 = vld [vmem:[#allocation5 + $0xa0c] sm:$0xf0] }
 0x179   :  { %2038 = vmatpush.bf16.msrb.mxu1 %v5740_v54 }
 0x17a   :  { %2856 = vmatpush.bf16.msra.mxu0 %v6192_v2 }
 0x17b   :  { %2008 = vmatpush.bf16.msra.mxu3 %v6056_v3  ;;  %v7907_v3 = vld [vmem:[#allocation5 + $0x8ac] sm:$0xf0] }
 0x17c   :  { %2047 = vmatpush.bf16.msrb.mxu2 %v5932_v57  ;;  %v6176_v56 = vor.u32 %v7907_v3, %v6175_v53  ;;  %v7854_v57 = vld [vmem:[#allocation5 + $0x70c] sm:$0xf]  ;;  %v6432_v53 = vor.u32 %v7971_v52, %v6431_v35  ;;  %v7901_v3 = vld [vmem:[#allocation5 + $0x884] sm:$0xf] }
 0x17d   :  { %2039 = vmatpush.bf16.msrb.mxu1 %v5724_v4  ;;  %v5980_v59 = vor.u32 %v7854_v57, %v5977_v58  ;;  %v7899_v4 = vld [vmem:[#allocation5 + $0x86c] sm:$0xf0]  ;;  %v7977_v52 = vld [vmem:[#allocation5 + $0xae4] sm:$0xf] }
 0x17e   :  { %2857 = vmatpush.bf16.msra.mxu0 %v6176_v56  ;;  %v6144_v55 = vor.u32 %v7899_v4, %v6143_v62  ;;  %v7897_v4 = vld [vmem:[#allocation5 + $0x864] sm:$0xf] }
 0x17f   :  { %2009 = vmatpush.bf16.msra.mxu3 %v6040_v63  ;;  %v6160_v63 = vor.u32 %v7903_v61, %v6159_v60  ;;  %v7919_v60 = vld [vmem:[#allocation5 + $0x90c] sm:$0xf0]  ;;  %v6415_v61 = vld [vmem:[#allocation5 + $0xa80] sm:$0xf] }
 0x180   :  { %2048 = vmatpush.bf16.msrb.mxu2 %v5916_v5  ;;  %2040 = vmatmul.bf16.vlgmr.msrb.gmra.mxu1 %v8469_v50  ;;  %v5976_v50 = vor.u32 %v7856_v22, %v5975_v21  ;;  %v6335_v5 = vld [vmem:[#allocation5 + $0x9e0] sm:$0xf] }
 0x181   :  { %v6336_v7 = vor.u32 %v7947_v6, %v6335_v5  ;;  %v6287_v21 = vld [vmem:[#allocation5 + $0x980] sm:$0xf]  ;;  %v6145_v5 = vld [vmem:[#allocation5 + $0x870] sm:$0xf0] }
 0x182   :  { %1962 = vmatmul.bf16.vlgmr.msrb.gmra.mxu3 %v8482_v36  ;;  %2858 = vmatpush.bf16.msra.mxu0 %v6160_v63  ;;  %v6288_v26 = vor.u32 %v7935_v23, %v6287_v21  ;;  %v7967_v63 = vld [vmem:[#allocation5 + $0xa8c] sm:$0xf0]  ;;  %v6113_v23 = vld [vmem:[#allocation5 + $0x830] sm:$0xf0] }
 0x183   :  { %2010 = vmatpush.bf16.msra.mxu3 %v6024_v9  ;;  %2868 = vmatpush.bf16.msra.mxu1 %v6336_v7  ;;  %v6127_v9 = vld [vmem:[#allocation5 + $0x840] sm:$0xf]  ;;  %v6416_v6 = vor.u32 %v7967_v63, %v6415_v61  ;;  %v6148_v7 = vor.u32 %v7897_v4, %v6145_v5  ;;  %v6449_v63 = vld [vmem:[#allocation5 + $0xad0] sm:$0xf0] }
 0x184   :  { %2049 = vmatpush.bf16.msrb.mxu2 %v5900_v10  ;;  %v7895_v10 = vld [vmem:[#allocation5 + $0x84c] sm:$0xf0]  ;;  %v6559_v5 = vld [vmem:[#allocation5 + $0xba0] sm:$0xf] }
 0x185   :  { %v6128_v11 = vor.u32 %v7895_v10, %v6127_v9  ;;  %v6337_v9 = vld [vmem:[#allocation5 + $0x9f0] sm:$0xf0] }
 0x186   :  { %2859 = vmatpush.bf16.msra.mxu0 %v6144_v55  ;;  %v7945_v55 = vld [vmem:[#allocation5 + $0x9e4] sm:$0xf] }
 0x187   :  { %2011 = vmatpush.bf16.msra.mxu3 %v6008_v15  ;;  %v6320_v15 = vor.u32 %v7943_v13, %v6319_v12  ;;  %v6340_v10 = vor.u32 %v7945_v55, %v6337_v9  ;;  %v7963_v12 = vld [vmem:[#allocation5 + $0xa6c] sm:$0xf0]  ;;  %v7921_v55 = vld [vmem:[#allocation5 + $0x924] sm:$0xf]  ;;  %v6241_v9 = vld [vmem:[#allocation5 + $0x930] sm:$0xf0] }
 0x188   :  { %2050 = vmatpush.bf16.msrb.mxu2 %v5884_v47  ;;  %v7891_v47 = vld [vmem:[#allocation5 + $0x82c] sm:$0xf0] }
 0x189   :  { %v6112_v17 = vor.u32 %v7891_v47, %v6111_v14  ;;  %2869 = vmatpush.bf16.msra.mxu1 %v6320_v15  ;;  %v7893_v14 = vld [vmem:[#allocation5 + $0x844] sm:$0xf]  ;;  %v6129_v15 = vld [vmem:[#allocation5 + $0x850] sm:$0xf0] }
 0x18a   :  { %2860 = vmatpush.bf16.msra.mxu0 %v6128_v11  ;;  %v6399_v11 = vld [vmem:[#allocation5 + $0xa60] sm:$0xf]  ;;  %v7941_v47 = vld [vmem:[#allocation5 + $0x9c4] sm:$0xf] }
 0x18b   :  { %2012 = vmatpush.bf16.msra.mxu3 %v5992_v19  ;;  %v6400_v13 = vor.u32 %v7963_v12, %v6399_v11  ;;  %v6244_v11 = vor.u32 %v7921_v55, %v6241_v9  ;;  %v6433_v12 = vld [vmem:[#allocation5 + $0xab0] sm:$0xf0] }
 0x18c   :  { %2051 = vmatpush.bf16.msrb.mxu2 %v5868_v20  ;;  %v7887_v20 = vld [vmem:[#allocation5 + $0x80c] sm:$0xf0] }
 0x18d   :  { %2870 = vmatpush.bf16.msra.mxu1 %v6304_v49  ;;  %v6321_v49 = vld [vmem:[#allocation5 + $0x9d0] sm:$0xf0] }
 0x18e   :  { %2861 = vmatpush.bf16.msra.mxu0 %v6112_v17  ;;  %v6132_v17 = vor.u32 %v7893_v14, %v6129_v15  ;;  %v6543_v14 = vld [vmem:[#allocation5 + $0xb80] sm:$0xf]  ;;  %v7999_v15 = vld [vmem:[#allocation5 + $0xb8c] sm:$0xf0] }
 0x18f   :  { %2013 = vmatpush.bf16.msra.mxu3 %v5976_v50  ;;  %v6212_v50 = vor.u32 %v7913_v24, %v6209_v25  ;;  %v7937_v24 = vld [vmem:[#allocation5 + $0x9a4] sm:$0xf] }
 0x190   :  { %2052 = vmatpush.bf16.msrb.mxu2 %v5852_v27  ;;  %v6271_v27 = vld [vmem:[#allocation5 + $0x960] sm:$0xf] }
 0x191   :  { %2871 = vmatpush.bf16.msra.mxu1 %v6288_v26  ;;  %v6305_v26 = vld [vmem:[#allocation5 + $0x9b0] sm:$0xf0] }
 0x192   :  { %2014 = vmatmul.bf16.vlgmr.msra.gmra.mxu3 %v8482_v36 }
 0x193   :  { %2058 = vmatpush.bf16.msrb.mxu3 %v6092_v28  ;;  %2053 = vmatmul.bf16.vlgmr.msrb.gmra.mxu2 %v8474_v18  ;;  %v5993_v18 = vld [vmem:[#allocation5 + $0x738] sm:$0xf0]  ;;  %v7931_v28 = vld [vmem:[#allocation5 + $0x96c] sm:$0xf0] }
 0x194   :  { %v5996_v54 = vor.u32 %v7858_v1, %v5993_v18  ;;  %2881 = vmatpush.bf16.msra.mxu2 %v6464_v32  ;;  %v6239_v1 = vld [vmem:[#allocation5 + $0x920] sm:$0xf]  ;;  %v7923_v18 = vld [vmem:[#allocation5 + $0x92c] sm:$0xf0]  ;;  %v7933_v32 = vld [vmem:[#allocation5 + $0x984] sm:$0xf] }
 0x195   :  { %v6240_v2 = vor.u32 %v7923_v18, %v6239_v1  ;;  %v6292_v42 = vor.u32 %v7933_v32, %v6289_v40  ;;  %v6273_v1 = vld [vmem:[#allocation5 + $0x970] sm:$0xf0]  ;;  %v6511_v32 = vld [vmem:[#allocation5 + $0xb40] sm:$0xf]  ;;  %v7957_v40 = vld [vmem:[#allocation5 + $0xa44] sm:$0xf] }
 0x197   :  { %2059 = vmatpush.bf16.msrb.mxu3 %v6076_v31  ;;  %v6272_v31 = vor.u32 %v7931_v28, %v6271_v27  ;;  %v6367_v27 = vld [vmem:[#allocation5 + $0xa20] sm:$0xf]  ;;  %v7955_v28 = vld [vmem:[#allocation5 + $0xa2c] sm:$0xf0] }
 0x198   :  { %2882 = vmatpush.bf16.msra.mxu2 %v6448_v0  ;;  %v6368_v29 = vor.u32 %v7955_v28, %v6367_v27  ;;  %v8011_v0 = vld [vmem:[#allocation5 + $0xbec] sm:$0xf0]  ;;  %v7961_v27 = vld [vmem:[#allocation5 + $0xa64] sm:$0xf]  ;;  %v6401_v28 = vld [vmem:[#allocation5 + $0xa70] sm:$0xf0] }
 0x199   :  { %2872 = vmatpush.bf16.msra.mxu1 %v6272_v31  ;;  %v6097_v31 = vld [vmem:[#allocation5 + $0x810] sm:$0xf0] }
 0x19b   :  { %2060 = vmatpush.bf16.msrb.mxu3 %v6060_v34  ;;  %v6193_v34 = vld [vmem:[#allocation5 + $0x8d0] sm:$0xf0] }
 0x19c   :  { %2883 = vmatpush.bf16.msra.mxu2 %v6432_v53 }
 0x19d   :  { %2873 = vmatpush.bf16.msra.mxu1 %v6256_v43  ;;  %v6351_v43 = vld [vmem:[#allocation5 + $0xa00] sm:$0xf] }
 0x19f   :  { %2061 = vmatpush.bf16.msrb.mxu3 %v6044_v39  ;;  %v6196_v39 = vor.u32 %v7909_v33, %v6193_v34 }
 0x1a0   :  { %2884 = vmatpush.bf16.msra.mxu2 %v6416_v6  ;;  %v8003_v6 = vld [vmem:[#allocation5 + $0xbac] sm:$0xf0] }
 0x1a1   :  { %2874 = vmatpush.bf16.msra.mxu1 %v6240_v2  ;;  %v6465_v2 = vld [vmem:[#allocation5 + $0xaf0] sm:$0xf0] }
 0x1a2   :  { %v6468_v53 = vor.u32 %v7977_v52, %v6465_v2  ;;  %v6215_v52 = vld [vmem:[#allocation5 + $0x8e8] sm:$0xf]  ;;  %v7916_v2 = vld [vmem:[#allocation5 + $0x8f4] sm:$0xf0] }
 0x1a3   :  { %2062 = vmatpush.bf16.msrb.mxu3 %v6028_v45  ;;  %v7905_v45 = vld [vmem:[#allocation5 + $0x8a4] sm:$0xf] }
 0x1a4   :  { %2885 = vmatpush.bf16.msra.mxu2 %v6400_v13 }
 0x1a7   :  { %2063 = vmatpush.bf16.msrb.mxu3 %v6012_v51  ;;  %v6180_v51 = vor.u32 %v7905_v45, %v6177_v46  ;;  %v6591_v45 = vld [vmem:[#allocation5 + $0xbe0] sm:$0xf]  ;;  %v6352_v46 = vor.u32 %v7951_v44, %v6351_v43 }
 0x1a8   :  { %v6592_v18 = vor.u32 %v8011_v0, %v6591_v45  ;;  %v7987_v0 = vld [vmem:[#allocation5 + $0xb2c] sm:$0xf0] }
 0x1ab   :  { %2064 = vmatpush.bf16.msrb.mxu3 %v5996_v54  ;;  %v6161_v54 = vld [vmem:[#allocation5 + $0x890] sm:$0xf0] }
 0x1ac   :  { %v6164_v58 = vor.u32 %v7901_v3, %v6161_v54  ;;  %v6575_v3 = vld [vmem:[#allocation5 + $0xbc0] sm:$0xf]  ;;  %v8007_v54 = vld [vmem:[#allocation5 + $0xbcc] sm:$0xf0] }
 0x1ad   :  { %v8492_v8 = vpop.f32.mrf.mxu0 }
 0x1af   :  { %2065 = vmatpush.bf16.msrb.mxu3 %v5980_v59  ;;  %v6223_v59 = vld [vmem:[#allocation5 + $0x900] sm:$0xf] }
 0x1b0   :  { %v6224_v62 = vor.u32 %v7919_v60, %v6223_v59  ;;  %v7973_v59 = vld [vmem:[#allocation5 + $0xac4] sm:$0xf] }
 0x1b1   :  { %v6452_v4 = vor.u32 %v7973_v59, %v6449_v63  ;;  %v7949_v59 = vld [vmem:[#allocation5 + $0xa04] sm:$0xf] }
 0x1b2   :  { %2066 = vmatmul.bf16.vlgmr.msrb.gmra.mxu3 %v8482_v36  ;;  %v6095_v36 = vld [vmem:[#allocation5 + $0x800] sm:$0xf]  ;;  %2875 = vmatpush.bf16.msra.mxu1 %v6224_v62 }
 0x1b3   :  { %v6096_v22 = vor.u32 %v7887_v20, %v6095_v36  ;;  %v7959_v36 = vld [vmem:[#allocation5 + $0xa4c] sm:$0xf0]  ;;  %v6324_v20 = vor.u32 %v7941_v47, %v6321_v49  ;;  %2894 = vmatpush.bf16.msra.mxu3 %v6592_v18  ;;  %v6544_v47 = vor.u32 %v7999_v15, %v6543_v14  ;;  %v6225_v49 = vld [vmem:[#allocation5 + $0x910] sm:$0xf0] }
 0x1b4   :  { %v6369_v18 = vld [vmem:[#allocation5 + $0xa30] sm:$0xf0] }
 0x1b5   :  { %v1874_v19 = vpop.f32.mrf.mxu0  ;;  %2862 = vmatpush.bf16.msra.mxu0 %v6096_v22  ;;  %v7889_v22 = vld [vmem:[#allocation5 + $0x824] sm:$0xf]  ;;  %v6577_v14 = vld [vmem:[#allocation5 + $0xbd0] sm:$0xf0] }
 0x1b6   :  { %2920 = vmatpush.bf16.msrb.mxu1 %v6340_v10  ;;  %v6383_v19 = vld [vmem:[#allocation5 + $0xa40] sm:$0xf]  ;;  %v6116_v25 = vor.u32 %v7889_v22, %v6113_v23  ;;  %v7969_v10 = vld [vmem:[#allocation5 + $0xaa4] sm:$0xf]  ;;  %v6417_v22 = vld [vmem:[#allocation5 + $0xa90] sm:$0xf0] }
 0x1b7   :  { %v6384_v21 = vor.u32 %v7959_v36, %v6383_v19  ;;  %v6436_v13 = vor.u32 %v7969_v10, %v6433_v12  ;;  %v7965_v19 = vld [vmem:[#allocation5 + $0xa84] sm:$0xf]  ;;  %v7908_v12 = vld [vmem:[#allocation5 + $0x8b4] sm:$0xf0] }
 0x1b8   :  { %v8508_v23 = vld [vmem:[#allocation7 + $0x4] sm:$0xf] }
 0x1b9   :  { %2907 = vmatpush.bf16.msrb.mxu0 %v6212_v50  ;;  %2886 = vmatpush.bf16.msra.mxu2 %v6384_v21  ;;  %v6308_v50 = vor.u32 %v7937_v24, %v6305_v26  ;;  %v6420_v24 = vor.u32 %v7965_v19, %v6417_v22  ;;  %v7995_v26 = vld [vmem:[#allocation5 + $0xb6c] sm:$0xf0]  ;;  %v1216_v9 = vperm.slane %v8508_v23, 1  ;;  %v6167_v19 = vld [vmem:[#allocation5 + $0x888] sm:$0xf] }
 0x1ba   :  { %2921 = vmatpush.bf16.msrb.mxu1 %v6324_v20  ;;  %v7904_v22 = vld [vmem:[#allocation5 + $0x894] sm:$0xf0] }
 0x1bd   :  { %v8494_v37 = vpop.f32.mrf.mxu1  ;;  %v8496_v38 = vpop.f32.mrf.mxu0  ;;  %2908 = vmatpush.bf16.msrb.mxu0 %v6196_v39  ;;  %v6100_v39 = vor.u32 %v7885_v30, %v6097_v31  ;;  %2887 = vmatpush.bf16.msra.mxu2 %v6368_v29  ;;  %v1215_v29 = vperm.slane %v8508_v23, 0  ;;  %v6404_v30 = vor.u32 %v7961_v27, %v6401_v28  ;;  %v6168_v27 = vor.u32 %v7904_v22, %v6167_v19  ;;  %v6151_v28 = vld [vmem:[#allocation5 + $0x868] sm:$0xf]  ;;  %v7932_v19 = vld [vmem:[#allocation5 + $0x974] sm:$0xf0] }
 0x1be   :  { %2922 = vmatpush.bf16.msrb.mxu1 %v6308_v50  ;;  %v6471_v22 = vld [vmem:[#allocation5 + $0xae8] sm:$0xf] }
 0x1c1   :  { %2909 = vmatpush.bf16.msrb.mxu0 %v6180_v51  ;;  %v7929_v51 = vld [vmem:[#allocation5 + $0x964] sm:$0xf]  ;;  %2888 = vmatpush.bf16.msra.mxu2 %v6352_v46  ;;  %v6495_v46 = vld [vmem:[#allocation5 + $0xb20] sm:$0xf] }
 0x1c2   :  { %2923 = vmatpush.bf16.msrb.mxu1 %v6292_v42  ;;  %v6276_v35 = vor.u32 %v7929_v51, %v6273_v1  ;;  %v1873_v42 = vadd.f32 %v8492_v8, %v1215_v29  ;;  %v6496_v51 = vor.u32 %v7987_v0, %v6495_v46  ;;  %v7953_v1 = vld [vmem:[#allocation5 + $0xa24] sm:$0xf]  ;;  %v6479_v8 = vld [vmem:[#allocation5 + $0xb00] sm:$0xf]  ;;  %v7900_v29 = vld [vmem:[#allocation5 + $0x874] sm:$0xf0] }
 0x1c3   :  { %v6135_v46 = vld [vmem:[#allocation5 + $0x848] sm:$0xf] }
 0x1c4   :  { %v1886_v45 = vadd.f32 %v8494_v37, %v1873_v42  ;;  %v6327_v0 = vld [vmem:[#allocation5 + $0x9c8] sm:$0xf] }
 0x1c5   :  { %v1887_v56 = vpop.f32.mrf.mxu1  ;;  %v1926_v57 = vpop.f32.mrf.mxu0  ;;  %2910 = vmatpush.bf16.msrb.mxu0 %v6164_v58  ;;  %2933 = vmatpush.bf16.msrb.mxu2 %v6468_v53  ;;  %v6257_v58 = vld [vmem:[#allocation5 + $0x950] sm:$0xf0]  ;;  %v6372_v53 = vor.u32 %v7953_v1, %v6369_v18  ;;  %v7944_v1 = vld [vmem:[#allocation5 + $0x9d4] sm:$0xf0]  ;;  %v7993_v18 = vld [vmem:[#allocation5 + $0xb64] sm:$0xf] }
 0x1c6   :  { %2924 = vmatpush.bf16.msrb.mxu1 %v6276_v35  ;;  %v6576_v56 = vor.u32 %v8007_v54, %v6575_v3  ;;  %v7925_v57 = vld [vmem:[#allocation5 + $0x944] sm:$0xf] }
 0x1c7   :  { %v6260_v62 = vor.u32 %v7925_v57, %v6257_v58  ;;  %v7983_v57 = vld [vmem:[#allocation5 + $0xb0c] sm:$0xf0]  ;;  %v6216_v58 = vor.u32 %v7916_v2, %v6215_v52  ;;  %v1217_v52 = vperm.slane %v8508_v23, 2 }
 0x1c8   :  { %2895 = vmatpush.bf16.msra.mxu3 %v6576_v56  ;;  %v6480_v37 = vor.u32 %v7983_v57, %v6479_v8  ;;  %v7940_v8 = vld [vmem:[#allocation5 + $0x9b4] sm:$0xf0]  ;;  %v7989_v57 = vld [vmem:[#allocation5 + $0xb44] sm:$0xf] }
 0x1c9   :  { %2911 = vmatpush.bf16.msrb.mxu0 %v6148_v7  ;;  %2934 = vmatpush.bf16.msrb.mxu2 %v6452_v4  ;;  %v6560_v7 = vor.u32 %v8003_v6, %v6559_v5  ;;  %v7912_v5 = vld [vmem:[#allocation5 + $0x8d4] sm:$0xf0] }
 0x1ca   :  { %2925 = vmatpush.bf16.msrb.mxu1 %v6260_v62  ;;  %v8009_v62 = vld [vmem:[#allocation5 + $0xbe4] sm:$0xf] }
 0x1cc   :  { %2896 = vmatpush.bf16.msra.mxu3 %v6560_v7  ;;  %v6593_v7 = vld [vmem:[#allocation5 + $0xbf0] sm:$0xf0] }
 0x1cd   :  { %v8498_v16 = vpop.f32.mrf.mxu1  ;;  %v8500_v48 = vpop.f32.mrf.mxu0  ;;  %2912 = vmatpush.bf16.msrb.mxu0 %v6132_v17  ;;  %2935 = vmatpush.bf16.msrb.mxu2 %v6436_v13  ;;  %v7917_v17 = vld [vmem:[#allocation5 + $0x904] sm:$0xf]  ;;  %v6596_v55 = vor.u32 %v8009_v62, %v6593_v7 }
 0x1ce   :  { %2926 = vmatpush.bf16.msrb.mxu1 %v6244_v11  ;;  %v6228_v21 = vor.u32 %v7917_v17, %v6225_v49  ;;  %v6183_v11 = vld [vmem:[#allocation5 + $0x8a8] sm:$0xf]  ;;  %v8005_v13 = vld [vmem:[#allocation5 + $0xbc4] sm:$0xf]  ;;  %v1977_v7 = vadd.f32 %v8500_v48, %v1217_v52  ;;  %v6169_v52 = vld [vmem:[#allocation5 + $0x898] sm:$0xf0] }
 0x1cf   :  { %v6184_v49 = vor.u32 %v7908_v12, %v6183_v11  ;;  %v7914_v11 = vld [vmem:[#allocation5 + $0x8ec] sm:$0xf]  ;;  %v6217_v12 = vld [vmem:[#allocation5 + $0x8f8] sm:$0xf0]  ;;  %v7981_v48 = vld [vmem:[#allocation5 + $0xb04] sm:$0xf] }
 0x1d0   :  { %2897 = vmatpush.bf16.msra.mxu3 %v6544_v47  ;;  %v6580_v47 = vor.u32 %v8005_v13, %v6577_v14 }
 0x1d1   :  { %2913 = vmatpush.bf16.msrb.mxu0 %v6116_v25  ;;  %v6527_v25 = vld [vmem:[#allocation5 + $0xb60] sm:$0xf]  ;;  %2936 = vmatpush.bf16.msrb.mxu2 %v6420_v24  ;;  %v8001_v24 = vld [vmem:[#allocation5 + $0xba4] sm:$0xf] }
 0x1d2   :  { %2927 = vmatpush.bf16.msrb.mxu1 %v6228_v21  ;;  %v6528_v50 = vor.u32 %v7995_v26, %v6527_v25  ;;  %v6561_v25 = vld [vmem:[#allocation5 + $0xbb0] sm:$0xf0] }
 0x1d3   :  { %v6564_v26 = vor.u32 %v8001_v24, %v6561_v25  ;;  %v6481_v24 = vld [vmem:[#allocation5 + $0xb10] sm:$0xf0] }
 0x1d4   :  { %2898 = vmatpush.bf16.msra.mxu3 %v6528_v50 }
 0x1d5   :  { %v1939_v34 = vpop.f32.mrf.mxu1  ;;  %v1978_v41 = vpop.f32.mrf.mxu0  ;;  %2914 = vmatpush.bf16.msrb.mxu0 %v6100_v39  ;;  %2937 = vmatpush.bf16.msrb.mxu2 %v6404_v30  ;;  %v6343_v30 = vld [vmem:[#allocation5 + $0x9e8] sm:$0xf] }
 0x1d6   :  { %v8502_v33 = vpop.f32.mrf.mxu2  ;;  %v7991_v34 = vld [vmem:[#allocation5 + $0xb4c] sm:$0xf0]  ;;  %v6385_v41 = vld [vmem:[#allocation5 + $0xa50] sm:$0xf0] }
 0x1d7   :  { %v6512_v39 = vor.u32 %v7991_v34, %v6511_v32  ;;  %v6388_v44 = vor.u32 %v7957_v40, %v6385_v41  ;;  %v1899_v35 = vadd.f32 %v8502_v33, %v1886_v45  ;;  %v6199_v33 = vld [vmem:[#allocation5 + $0x8c8] sm:$0xf]  ;;  %v7948_v34 = vld [vmem:[#allocation5 + $0x9f4] sm:$0xf0]  ;;  %v6545_v40 = vld [vmem:[#allocation5 + $0xb90] sm:$0xf0] }
 0x1d8   :  { %v6200_v10 = vor.u32 %v7912_v5, %v6199_v33  ;;  %v6344_v45 = vor.u32 %v7948_v34, %v6343_v30  ;;  %v6103_v33 = vld [vmem:[#allocation5 + $0x808] sm:$0xf]  ;;  %v7888_v5 = vld [vmem:[#allocation5 + $0x814] sm:$0xf0] }
 0x1d9   :  { %2899 = vmatpush.bf16.msra.mxu3 %v6512_v39  ;;  %2938 = vmatpush.bf16.msrb.mxu2 %v6388_v44  ;;  %v7997_v39 = vld [vmem:[#allocation5 + $0xb84] sm:$0xf]  ;;  %v6152_v44 = vor.u32 %v7900_v29, %v6151_v28  ;;  %v6484_v28 = vor.u32 %v7981_v48, %v6481_v24  ;;  %v7938_v48 = vld [vmem:[#allocation5 + $0x9ac] sm:$0xf]  ;;  %v6313_v24 = vld [vmem:[#allocation5 + $0x9b8] sm:$0xf0] }
 0x1da   :  { %v6548_v41 = vor.u32 %v7997_v39, %v6545_v40  ;;  %v6263_v39 = vld [vmem:[#allocation5 + $0x948] sm:$0xf]  ;;  %v7928_v40 = vld [vmem:[#allocation5 + $0x954] sm:$0xf0] }
 0x1dd   :  { %v8504_v61 = vpop.f32.mrf.mxu1  ;;  %2900 = vmatpush.bf16.msra.mxu3 %v6496_v51  ;;  %2939 = vmatpush.bf16.msrb.mxu2 %v6372_v53  ;;  %v6328_v53 = vor.u32 %v7944_v1, %v6327_v0  ;;  %v7924_v0 = vld [vmem:[#allocation5 + $0x934] sm:$0xf0]  ;;  %v6439_v1 = vld [vmem:[#allocation5 + $0xaa8] sm:$0xf] }
 0x1de   :  { %v1900_v60 = vpop.f32.mrf.mxu2  ;;  %v1990_v14 = vadd.f32 %v8504_v61, %v1977_v7  ;;  %v6407_v7 = vld [vmem:[#allocation5 + $0xa68] sm:$0xf] }
 0x1df   :  { %v6353_v60 = vld [vmem:[#allocation5 + $0xa10] sm:$0xf0] }
 0x1e0   :  { %v6356_v6 = vor.u32 %v7949_v59, %v6353_v60 }
 0x1e1   :  { %2901 = vmatpush.bf16.msra.mxu3 %v6480_v37 }
 0x1e2   :  { %2940 = vmatpush.bf16.msrb.mxu2 %v6356_v6  ;;  %v6295_v6 = vld [vmem:[#allocation5 + $0x988] sm:$0xf] }
 0x1e5   :  { %v1991_v20 = vpop.f32.mrf.mxu1  ;;  %2946 = vmatpush.bf16.msrb.mxu3 %v6596_v55  ;;  %v7936_v55 = vld [vmem:[#allocation5 + $0x994] sm:$0xf0] }
 0x1e6   :  { %v8506_v36 = vpop.f32.mrf.mxu2  ;;  %v1925_v20 = vadd.f32 %v8496_v38, %v1216_v9  ;;  %v7985_v9 = vld [vmem:[#allocation5 + $0xb24] sm:$0xf] }
 0x1e8   :  { %v1938_v50 = vadd.f32 %v8498_v16, %v1925_v20  ;;  %v7896_v16 = vld [vmem:[#allocation5 + $0x854] sm:$0xf0] }
 0x1e9   :  { %2947 = vmatpush.bf16.msrb.mxu3 %v6580_v47  ;;  %v6136_v2 = vor.u32 %v7896_v16, %v6135_v46  ;;  %v6296_v47 = vor.u32 %v7936_v55, %v6295_v6  ;;  %v6247_v16 = vld [vmem:[#allocation5 + $0x928] sm:$0xf] }
 0x1ea   :  { %v1951_v32 = vadd.f32 %v8506_v36, %v1938_v50  ;;  %v6529_v36 = vld [vmem:[#allocation5 + $0xb70] sm:$0xf0]  ;;  %v7910_v50 = vld [vmem:[#allocation5 + $0x8cc] sm:$0xf] }
 0x1ed   :  { %v8511_v31 = vpop.f32.mrf.mxu0  ;;  %2948 = vmatpush.bf16.msrb.mxu3 %v6564_v26  ;;  %v7980_v26 = vld [vmem:[#allocation5 + $0xaf4] sm:$0xf0] }
 0x1ee   :  { %v1952_v43 = vpop.f32.mrf.mxu2 }
 0x1f1   :  { %2949 = vmatpush.bf16.msrb.mxu3 %v6548_v41  ;;  %v7976_v41 = vld [vmem:[#allocation5 + $0xad4] sm:$0xf0] }
 0x1f5   :  { %v1911_v3 = vpop.f32.mrf.mxu3  ;;  %v2030_v54 = vpop.f32.mrf.mxu0 }
 0x1f6   :  { %v1912_v56 = vadd.f32 %v1911_v3, %v1899_v35  ;;  %v8518_v4 = vpop.f32.mrf.mxu2  ;;  %v6532_v35 = vor.u32 %v7993_v18, %v6529_v36  ;;  %v6119_v3 = vld [vmem:[#allocation5 + $0x828] sm:$0xf]  ;;  %v7892_v54 = vld [vmem:[#allocation5 + $0x834] sm:$0xf0] }
 0x1f7   :  { %v6120_v60 = vor.u32 %v7892_v54, %v6119_v3  ;;  %v2003_v20 = vadd.f32 %v8518_v4, %v1990_v14  ;;  %v6472_v4 = vor.u32 %v7980_v26, %v6471_v22  ;;  %v7972_v36 = vld [vmem:[#allocation5 + $0xab4] sm:$0xf0]  ;;  %v1218_v14 = vperm.slane %v8508_v23, 3  ;;  %v6121_v22 = vld [vmem:[#allocation5 + $0x838] sm:$0xf0] }
 0x1f8   :  { %v8516_v63 = vpack.c.bf16 %v1912_v56, %v1912_v56  ;;  %v6311_v56 = vld [vmem:[#allocation5 + $0x9a8] sm:$0xf]  ;;  %2950 = vmatpush.bf16.msrb.mxu3 %v6532_v35  ;;  %v7902_v35 = vld [vmem:[#allocation5 + $0x88c] sm:$0xf]  ;;  %v6440_v3 = vor.u32 %v7972_v36, %v6439_v1 }
 0x1f9   :  { %v6312_v62 = vor.u32 %v7940_v8, %v6311_v56  ;;  %v6172_v54 = vor.u32 %v7902_v35, %v6169_v52  ;;  %v6231_v56 = vld [vmem:[#allocation5 + $0x908] sm:$0xf]  ;;  %v7920_v8 = vld [vmem:[#allocation5 + $0x914] sm:$0xf0]  ;;  %v7978_v1 = vld [vmem:[#allocation5 + $0xaec] sm:$0xf] }
 0x1fa   :  { %2863 = vmatmul.bf16.vlgmr.msra.gmra.mxu0 %v8516_v63  ;;  %v6375_v26 = vld [vmem:[#allocation5 + $0xa28] sm:$0xf] }
 0x1fb   :  { %2959 = vmatpush.bf16.msra.mxu0 %v6216_v58  ;;  %v6513_v58 = vld [vmem:[#allocation5 + $0xb50] sm:$0xf0] }
 0x1fc   :  { %v6516_v59 = vor.u32 %v7989_v57, %v6513_v58  ;;  %v6423_v57 = vld [vmem:[#allocation5 + $0xa88] sm:$0xf]  ;;  %v7968_v58 = vld [vmem:[#allocation5 + $0xa94] sm:$0xf0] }
 0x1fd   :  { %v1913_v15 = vpop.f32.mrf.mxu3  ;;  %v8522_v17 = vpop.f32.mrf.mxu1 }
 0x1fe   :  { %v2004_v21 = vpop.f32.mrf.mxu2  ;;  %2951 = vmatpush.bf16.msrb.mxu3 %v6516_v59  ;;  %v6104_v15 = vor.u32 %v7888_v5, %v6103_v33  ;;  %v6153_v59 = vld [vmem:[#allocation5 + $0x878] sm:$0xf0]  ;;  %v6232_v33 = vor.u32 %v7920_v8, %v6231_v56  ;;  %v6424_v5 = vor.u32 %v7968_v58, %v6423_v57  ;;  %v7974_v8 = vld [vmem:[#allocation5 + $0xacc] sm:$0xf] }
 0x1ff   :  { %2960 = vmatpush.bf16.msra.mxu0 %v6200_v10  ;;  %v6497_v10 = vld [vmem:[#allocation5 + $0xb30] sm:$0xf0]  ;;  %v6220_v21 = vor.u32 %v7914_v11, %v6217_v12  ;;  %v6137_v11 = vld [vmem:[#allocation5 + $0x858] sm:$0xf0]  ;;  %v7942_v12 = vld [vmem:[#allocation5 + $0x9cc] sm:$0xf] }
 0x200   :  { %v6500_v13 = vor.u32 %v7985_v9, %v6497_v10  ;;  %v7964_v9 = vld [vmem:[#allocation5 + $0xa74] sm:$0xf0]  ;;  %v7894_v10 = vld [vmem:[#allocation5 + $0x84c] sm:$0xf]  ;;  %v6265_v56 = vld [vmem:[#allocation5 + $0x958] sm:$0xf0] }
 0x201   :  { %v6457_v57 = vld [vmem:[#allocation5 + $0xad8] sm:$0xf0] }
 0x202   :  { %2952 = vmatpush.bf16.msrb.mxu3 %v6500_v13  ;;  %v6329_v13 = vld [vmem:[#allocation5 + $0x9d8] sm:$0xf0] }
 0x203   :  { %2961 = vmatpush.bf16.msra.mxu0 %v6184_v49  ;;  %v6279_v49 = vld [vmem:[#allocation5 + $0x968] sm:$0xf] }
 0x204   :  { %v6280_v30 = vor.u32 %v7932_v19, %v6279_v49  ;;  %v6391_v49 = vld [vmem:[#allocation5 + $0xa48] sm:$0xf]  ;;  %v6332_v19 = vor.u32 %v7942_v12, %v6329_v13  ;;  %v8000_v12 = vld [vmem:[#allocation5 + $0xb94] sm:$0xf0]  ;;  %v7918_v13 = vld [vmem:[#allocation5 + $0x90c] sm:$0xf] }
 0x205   :  { %v1963_v38 = vpop.f32.mrf.mxu3  ;;  %v2043_v43 = vpop.f32.mrf.mxu1 }
 0x206   :  { %v1964_v42 = vadd.f32 %v1963_v38, %v1951_v32  ;;  %v6455_v38 = vld [vmem:[#allocation5 + $0xac8] sm:$0xf]  ;;  %2953 = vmatpush.bf16.msrb.mxu3 %v6484_v28  ;;  %v6185_v43 = vld [vmem:[#allocation5 + $0x8b8] sm:$0xf0]  ;;  %v7956_v28 = vld [vmem:[#allocation5 + $0xa34] sm:$0xf0] }
 0x207   :  { %2962 = vmatpush.bf16.msra.mxu0 %v6168_v27  ;;  %v6201_v27 = vld [vmem:[#allocation5 + $0x8d8] sm:$0xf0] }
 0x208   :  { %v8527_v51 = vpack.c.bf16 %v1964_v42, %v1964_v42  ;;  %v6204_v34 = vor.u32 %v7910_v50, %v6201_v27  ;;  %v7906_v42 = vld [vmem:[#allocation5 + $0x8ac] sm:$0xf]  ;;  %v2029_v50 = vadd.f32 %v8511_v31, %v1218_v14  ;;  %v6316_v27 = vor.u32 %v7938_v48, %v6313_v24  ;;  %v6599_v31 = vld [vmem:[#allocation5 + $0xbe8] sm:$0xf]  ;;  %v6233_v14 = vld [vmem:[#allocation5 + $0x918] sm:$0xf0] }
 0x209   :  { %v6188_v46 = vor.u32 %v7906_v42, %v6185_v43  ;;  %v7952_v42 = vld [vmem:[#allocation5 + $0xa14] sm:$0xf0]  ;;  %v7962_v48 = vld [vmem:[#allocation5 + $0xa6c] sm:$0xf]  ;;  %v6409_v24 = vld [vmem:[#allocation5 + $0xa78] sm:$0xf0] }
 0x20a   :  { %2876 = vmatmul.bf16.vlgmr.msra.gmra.mxu1 %v8527_v51  ;;  %2915 = vmatmul.bf16.vlgmr.msrb.gmra.mxu0 %v8516_v63 }
 0x20b   :  { %2963 = vmatpush.bf16.msra.mxu0 %v6152_v44  ;;  %2972 = vmatpush.bf16.msra.mxu1 %v6344_v45  ;;  %v6264_v44 = vor.u32 %v7928_v40, %v6263_v39  ;;  %v6456_v45 = vor.u32 %v7976_v41, %v6455_v38  ;;  %v2042_v39 = vadd.f32 %v8522_v17, %v2029_v50  ;;  %v6359_v41 = vld [vmem:[#allocation5 + $0xa08] sm:$0xf]  ;;  %v7992_v50 = vld [vmem:[#allocation5 + $0xb54] sm:$0xf0] }
 0x20c   :  { %v6376_v40 = vor.u32 %v7956_v28, %v6375_v26  ;;  %v6360_v17 = vor.u32 %v7952_v42, %v6359_v41  ;;  %v6519_v26 = vld [vmem:[#allocation5 + $0xb48] sm:$0xf]  ;;  %v6393_v28 = vld [vmem:[#allocation5 + $0xa58] sm:$0xf0] }
 0x20d   :  { %v1965_v37 = vpop.f32.mrf.mxu3  ;;  %v6487_v42 = vld [vmem:[#allocation5 + $0xb08] sm:$0xf] }
 0x20e   :  { %v7898_v37 = vld [vmem:[#allocation5 + $0x86c] sm:$0xf] }
 0x20f   :  { %2964 = vmatpush.bf16.msra.mxu0 %v6136_v2  ;;  %2973 = vmatpush.bf16.msra.mxu1 %v6328_v53  ;;  %v6248_v53 = vor.u32 %v7924_v0, %v6247_v16  ;;  %v6156_v6 = vor.u32 %v7898_v37, %v6153_v59  ;;  %v6281_v0 = vld [vmem:[#allocation5 + $0x978] sm:$0xf0]  ;;  %v6460_v59 = vor.u32 %v7974_v8, %v6457_v57  ;;  %v6719_v8 = vld [vmem:[#allocation5 + $0xce0] sm:$0xf]  ;;  %v8043_v57 = vld [vmem:[#allocation5 + $0xcec] sm:$0xf0] }
 0x213   :  { %2965 = vmatpush.bf16.msra.mxu0 %v6120_v60  ;;  %2974 = vmatpush.bf16.msra.mxu1 %v6312_v62  ;;  %v7946_v60 = vld [vmem:[#allocation5 + $0x9ec] sm:$0xf]  ;;  %v6345_v62 = vld [vmem:[#allocation5 + $0x9f8] sm:$0xf0] }
 0x214   :  { %v6348_v55 = vor.u32 %v7946_v60, %v6345_v62  ;;  %v6567_v60 = vld [vmem:[#allocation5 + $0xba8] sm:$0xf]  ;;  %v8004_v62 = vld [vmem:[#allocation5 + $0xbb4] sm:$0xf0] }
 0x215   :  { %v2015_v25 = vpop.f32.mrf.mxu3 }
 0x216   :  { %v2016_v29 = vadd.f32 %v2015_v25, %v2003_v20  ;;  %v8535_v61 = vpop.f32.mrf.mxu2  ;;  %v7960_v20 = vld [vmem:[#allocation5 + $0xa54] sm:$0xf0] }
 0x217   :  { %2966 = vmatpush.bf16.msra.mxu0 %v6104_v15  ;;  %2975 = vmatpush.bf16.msra.mxu1 %v6296_v47  ;;  %v6408_v15 = vor.u32 %v7964_v9, %v6407_v7  ;;  %v6140_v47 = vor.u32 %v7894_v10, %v6137_v11  ;;  %v6392_v25 = vor.u32 %v7960_v20, %v6391_v49  ;;  %v7970_v7 = vld [vmem:[#allocation5 + $0xaac] sm:$0xf]  ;;  %v6551_v11 = vld [vmem:[#allocation5 + $0xb88] sm:$0xf] }
 0x218   :  { %v8537_v32 = vpack.c.bf16 %v2016_v29, %v2016_v29  ;;  %v7886_v29 = vld [vmem:[#allocation5 + $0x80c] sm:$0xf]  ;;  %v2055_v43 = vadd.f32 %v8535_v61, %v2042_v39  ;;  %v6583_v61 = vld [vmem:[#allocation5 + $0xbc8] sm:$0xf]  ;;  %v6568_v9 = vor.u32 %v8004_v62, %v6567_v60  ;;  %v6552_v49 = vor.u32 %v8000_v12, %v6551_v11  ;;  %v6521_v60 = vld [vmem:[#allocation5 + $0xb58] sm:$0xf0] }
 0x219   :  { %v7954_v39 = vld [vmem:[#allocation5 + $0xa2c] sm:$0xf]  ;;  %v6489_v11 = vld [vmem:[#allocation5 + $0xb18] sm:$0xf0] }
 0x21a   :  { %2889 = vmatmul.bf16.vlgmr.msra.gmra.mxu2 %v8537_v32  ;;  %2928 = vmatmul.bf16.vlgmr.msrb.gmra.mxu1 %v8527_v51 }
 0x21b   :  { %3011 = vmatpush.bf16.msrb.mxu0 %v6220_v21  ;;  %2976 = vmatpush.bf16.msra.mxu1 %v6280_v30  ;;  %v7890_v21 = vld [vmem:[#allocation5 + $0x82c] sm:$0xf]  ;;  %v6105_v30 = vld [vmem:[#allocation5 + $0x818] sm:$0xf0] }
 0x21c   :  { %2967 = vmatmul.bf16.vlgmr.msra.gmra.mxu0 %v8516_v63  ;;  %2985 = vmatpush.bf16.msra.mxu2 %v6472_v4  ;;  %v6124_v23 = vor.u32 %v7890_v21, %v6121_v22  ;;  %v7934_v4 = vld [vmem:[#allocation5 + $0x98c] sm:$0xf]  ;;  %v6108_v38 = vor.u32 %v7886_v29, %v6105_v30  ;;  %v6535_v21 = vld [vmem:[#allocation5 + $0xb68] sm:$0xf]  ;;  %v7996_v22 = vld [vmem:[#allocation5 + $0xb74] sm:$0xf0]  ;;  %v6520_v29 = vor.u32 %v7992_v50, %v6519_v26 }
 0x21d   :  { %v2017_v18 = vpop.f32.mrf.mxu3  ;;  %v6831_v26 = vld [vmem:[#allocation5 + $0xdc0] sm:$0xf] }
 0x21e   :  { %v2056_v2 = vpop.f32.mrf.mxu2  ;;  %v6473_v18 = vld [vmem:[#allocation5 + $0xaf8] sm:$0xf0] }
 0x21f   :  { %3012 = vmatpush.bf16.msrb.mxu0 %v6204_v34  ;;  %2977 = vmatpush.bf16.msra.mxu1 %v6264_v44  ;;  %v6297_v34 = vld [vmem:[#allocation5 + $0x998] sm:$0xf0] }
 0x220   :  { %2986 = vmatpush.bf16.msra.mxu2 %v6456_v45  ;;  %v6300_v44 = vor.u32 %v7934_v4, %v6297_v34  ;;  %v8012_v45 = vld [vmem:[#allocation5 + $0xbf4] sm:$0xf0]  ;;  %v6503_v4 = vld [vmem:[#allocation5 + $0xb28] sm:$0xf] }
 0x221   :  { %v6600_v35 = vor.u32 %v8012_v45, %v6599_v31  ;;  %v7988_v34 = vld [vmem:[#allocation5 + $0xb34] sm:$0xf0]  ;;  %v6361_v31 = vld [vmem:[#allocation5 + $0xa18] sm:$0xf0]  ;;  %v8010_v45 = vld [vmem:[#allocation5 + $0xbec] sm:$0xf] }
 0x223   :  { %3013 = vmatpush.bf16.msrb.mxu0 %v6188_v46  ;;  %2978 = vmatpush.bf16.msra.mxu1 %v6248_v53  ;;  %v7930_v46 = vld [vmem:[#allocation5 + $0x96c] sm:$0xf]  ;;  %v6476_v53 = vor.u32 %v7978_v1, %v6473_v18  ;;  %v6585_v18 = vld [vmem:[#allocation5 + $0xbd8] sm:$0xf0] }
 0x224   :  { %2987 = vmatpush.bf16.msra.mxu2 %v6440_v3  ;;  %v6284_v2 = vor.u32 %v7930_v46, %v6281_v0  ;;  %v8008_v3 = vld [vmem:[#allocation5 + $0xbd4] sm:$0xf0]  ;;  %v6601_v46 = vld [vmem:[#allocation5 + $0xbf8] sm:$0xf0]  ;;  %v8006_v1 = vld [vmem:[#allocation5 + $0xbcc] sm:$0xf] }
 0x225   :  { %v6584_v58 = vor.u32 %v8008_v3, %v6583_v61  ;;  %v6604_v0 = vor.u32 %v8010_v45, %v6601_v46  ;;  %v6553_v61 = vld [vmem:[#allocation5 + $0xb98] sm:$0xf0]  ;;  %v6721_v45 = vld [vmem:[#allocation5 + $0xcf0] sm:$0xf0] }
 0x227   :  { %3014 = vmatpush.bf16.msrb.mxu0 %v6172_v54  ;;  %2979 = vmatpush.bf16.msra.mxu1 %v6232_v33  ;;  %v7926_v54 = vld [vmem:[#allocation5 + $0x94c] sm:$0xf] }
 0x228   :  { %2988 = vmatpush.bf16.msra.mxu2 %v6424_v5  ;;  %v6268_v37 = vor.u32 %v7926_v54, %v6265_v56  ;;  %v7922_v33 = vld [vmem:[#allocation5 + $0x92c] sm:$0xf]  ;;  %v6537_v56 = vld [vmem:[#allocation5 + $0xb78] sm:$0xf0] }
 0x229   :  { %v7994_v54 = vld [vmem:[#allocation5 + $0xb6c] sm:$0xf] }
 0x22a   :  { %2941 = vmatmul.bf16.vlgmr.msrb.gmra.mxu2 %v8537_v32  ;;  %2980 = vmatmul.bf16.vlgmr.msra.gmra.mxu1 %v8527_v51 }
 0x22b   :  { %3015 = vmatpush.bf16.msrb.mxu0 %v6156_v6  ;;  %3024 = vmatpush.bf16.msrb.mxu1 %v6348_v55  ;;  %v6249_v6 = vld [vmem:[#allocation5 + $0x938] sm:$0xf0] }
 0x22c   :  { %2989 = vmatpush.bf16.msra.mxu2 %v6408_v15  ;;  %v6441_v55 = vld [vmem:[#allocation5 + $0xab8] sm:$0xf0]  ;;  %v7966_v15 = vld [vmem:[#allocation5 + $0xa8c] sm:$0xf] }
 0x22d   :  { %v6444_v10 = vor.u32 %v7970_v7, %v6441_v55  ;;  %v6687_v55 = vld [vmem:[#allocation5 + $0xca0] sm:$0xf] }
 0x22f   :  { %3016 = vmatpush.bf16.msrb.mxu0 %v6140_v47  ;;  %3025 = vmatpush.bf16.msrb.mxu1 %v6332_v19  ;;  %v6425_v47 = vld [vmem:[#allocation5 + $0xa98] sm:$0xf0]  ;;  %v6236_v19 = vor.u32 %v7918_v13, %v6233_v14  ;;  %v6671_v14 = vld [vmem:[#allocation5 + $0xc80] sm:$0xf] }
 0x230   :  { %2990 = vmatpush.bf16.msra.mxu2 %v6392_v25  ;;  %v6428_v20 = vor.u32 %v7966_v15, %v6425_v47  ;;  %v6536_v25 = vor.u32 %v7996_v22, %v6535_v21  ;;  %v8031_v15 = vld [vmem:[#allocation5 + $0xc8c] sm:$0xf0]  ;;  %v6655_v47 = vld [vmem:[#allocation5 + $0xc60] sm:$0xf] }
 0x231   :  { %v8075_v21 = vld [vmem:[#allocation5 + $0xdec] sm:$0xf0] }
 0x233   :  { %3017 = vmatpush.bf16.msrb.mxu0 %v6124_v23  ;;  %3026 = vmatpush.bf16.msrb.mxu1 %v6316_v27  ;;  %v6412_v23 = vor.u32 %v7962_v48, %v6409_v24  ;;  %v7958_v27 = vld [vmem:[#allocation5 + $0xa4c] sm:$0xf] }
 0x234   :  { %2991 = vmatpush.bf16.msra.mxu2 %v6376_v40  ;;  %v6396_v30 = vor.u32 %v7958_v27, %v6393_v28  ;;  %v6377_v40 = vld [vmem:[#allocation5 + $0xa38] sm:$0xf0]  ;;  %v8071_v27 = vld [vmem:[#allocation5 + $0xdcc] sm:$0xf0] }
 0x235   :  { %v2067_v16 = vpop.f32.mrf.mxu3  ;;  %v6380_v41 = vor.u32 %v7954_v39, %v6377_v40  ;;  %v6832_v28 = vor.u32 %v8071_v27, %v6831_v26  ;;  %v8067_v39 = vld [vmem:[#allocation5 + $0xdac] sm:$0xf0]  ;;  %v6911_v26 = vld [vmem:[#allocation5 + $0xe60] sm:$0xf] }
 0x236   :  { %v2068_v36 = vadd.f32 %v2067_v16, %v2055_v43  ;;  %v7984_v43 = vld [vmem:[#allocation5 + $0xb14] sm:$0xf0] }
 0x237   :  { %3018 = vmatpush.bf16.msrb.mxu0 %v6108_v38  ;;  %3027 = vmatpush.bf16.msrb.mxu1 %v6300_v44  ;;  %v6504_v38 = vor.u32 %v7988_v34, %v6503_v4  ;;  %v7950_v44 = vld [vmem:[#allocation5 + $0xa0c] sm:$0xf]  ;;  %v6488_v16 = vor.u32 %v7984_v43, %v6487_v42  ;;  %v6815_v4 = vld [vmem:[#allocation5 + $0xda0] sm:$0xf] }
 0x238   :  { %v8548_v52 = vpack.c.bf16 %v2068_v36, %v2068_v36  ;;  %2992 = vmatpush.bf16.msra.mxu2 %v6360_v17  ;;  %v6588_v36 = vor.u32 %v8006_v1, %v6585_v18  ;;  %v8002_v17 = vld [vmem:[#allocation5 + $0xbac] sm:$0xf]  ;;  %v6816_v40 = vor.u32 %v8067_v39, %v6815_v4  ;;  %v6799_v42 = vld [vmem:[#allocation5 + $0xd80] sm:$0xf]  ;;  %v8107_v18 = vld [vmem:[#allocation5 + $0xeec] sm:$0xf0] }
 0x239   :  { %v6975_v1 = vld [vmem:[#allocation5 + $0xee0] sm:$0xf] }
 0x23a   :  { %2902 = vmatmul.bf16.vlgmr.msra.gmra.mxu3 %v8548_v52  ;;  %3019 = vmatmul.bf16.vlgmr.msrb.gmra.mxu0 %v8516_v63  ;;  %v6252_v63 = vor.u32 %v7922_v33, %v6249_v6  ;;  %v7986_v33 = vld [vmem:[#allocation5 + $0xb2c] sm:$0xf]  ;;  %v8039_v6 = vld [vmem:[#allocation5 + $0xccc] sm:$0xf0]  ;;  %v6895_v39 = vld [vmem:[#allocation5 + $0xe40] sm:$0xf] }
 0x23b   :  { %2998 = vmatpush.bf16.msra.mxu3 %v6600_v35  ;;  %3028 = vmatpush.bf16.msrb.mxu1 %v6284_v2  ;;  %v6569_v35 = vld [vmem:[#allocation5 + $0xbb8] sm:$0xf0] }
 0x23c   :  { %3037 = vmatpush.bf16.msrb.mxu2 %v6476_v53  ;;  %v6572_v2 = vor.u32 %v8002_v17, %v6569_v35  ;;  %v7998_v53 = vld [vmem:[#allocation5 + $0xb8c] sm:$0xf]  ;;  %v6976_v17 = vor.u32 %v8107_v18, %v6975_v1  ;;  %v8037_v35 = vld [vmem:[#allocation5 + $0xcc4] sm:$0xf] }
 0x23d   :  { %v2069_v5 = vpop.f32.mrf.mxu3  ;;  %2993 = vmatmul.bf16.vlgmr.msra.gmra.mxu2 %v8537_v32  ;;  %v6556_v3 = vor.u32 %v7998_v53, %v6553_v61  ;;  %v8013_v18 = vld [vmem:[#allocation5 + $0xc04] sm:$0xf] }
 0x23e   :  { %v6703_v5 = vld [vmem:[#allocation5 + $0xcc0] sm:$0xf] }
 0x23f   :  { %2999 = vmatpush.bf16.msra.mxu3 %v6584_v58  ;;  %3029 = vmatpush.bf16.msrb.mxu1 %v6268_v37  ;;  %v6720_v58 = vor.u32 %v8043_v57, %v6719_v8  ;;  %v6540_v37 = vor.u32 %v7994_v54, %v6537_v56  ;;  %v6704_v7 = vor.u32 %v8039_v6, %v6703_v5  ;;  %v6767_v54 = vld [vmem:[#allocation5 + $0xd40] sm:$0xf]  ;;  %v8055_v56 = vld [vmem:[#allocation5 + $0xd4c] sm:$0xf0] }
 0x240   :  { %3038 = vmatpush.bf16.msrb.mxu2 %v6460_v59  ;;  %v7990_v59 = vld [vmem:[#allocation5 + $0xb4c] sm:$0xf]  ;;  %v6959_v8 = vld [vmem:[#allocation5 + $0xec0] sm:$0xf]  ;;  %v6768_v57 = vor.u32 %v8055_v56, %v6767_v54  ;;  %v8099_v6 = vld [vmem:[#allocation5 + $0xeac] sm:$0xf0] }
 0x241   :  { %3847 = vmatpush.bf16.msra.mxu0 %v6720_v58  ;;  %v6524_v62 = vor.u32 %v7990_v59, %v6521_v60  ;;  %v8103_v58 = vld [vmem:[#allocation5 + $0xecc] sm:$0xf0]  ;;  %v6689_v59 = vld [vmem:[#allocation5 + $0xcb0] sm:$0xf0]  ;;  %v6943_v5 = vld [vmem:[#allocation5 + $0xea0] sm:$0xf] }
 0x242   :  { %v6960_v60 = vor.u32 %v8103_v58, %v6959_v8  ;;  %v6863_v8 = vld [vmem:[#allocation5 + $0xe00] sm:$0xf] }
 0x243   :  { %3000 = vmatpush.bf16.msra.mxu3 %v6568_v9  ;;  %3030 = vmatpush.bf16.msrb.mxu1 %v6252_v63  ;;  %v8035_v9 = vld [vmem:[#allocation5 + $0xcac] sm:$0xf0]  ;;  %v7103_v58 = vld [vmem:[#allocation5 + $0xfe0] sm:$0xf] }
 0x244   :  { %3039 = vmatpush.bf16.msrb.mxu2 %v6444_v10  ;;  %v7982_v10 = vld [vmem:[#allocation5 + $0xb0c] sm:$0xf]  ;;  %v6688_v12 = vor.u32 %v8035_v9, %v6687_v55  ;;  %v6944_v55 = vor.u32 %v8099_v6, %v6943_v5  ;;  %v8029_v9 = vld [vmem:[#allocation5 + $0xc84] sm:$0xf] }
 0x245   :  { %3848 = vmatpush.bf16.msra.mxu0 %v6704_v7  ;;  %v6492_v13 = vor.u32 %v7982_v10, %v6489_v11  ;;  %v8105_v6 = vld [vmem:[#allocation5 + $0xee4] sm:$0xf] }
 0x247   :  { %3001 = vmatpush.bf16.msra.mxu3 %v6552_v49  ;;  %3031 = vmatpush.bf16.msrb.mxu1 %v6236_v19  ;;  %v6672_v49 = vor.u32 %v8031_v15, %v6671_v14  ;;  %v8027_v19 = vld [vmem:[#allocation5 + $0xc6c] sm:$0xf0]  ;;  %v6927_v15 = vld [vmem:[#allocation5 + $0xe80] sm:$0xf] }
 0x248   :  { %3040 = vmatpush.bf16.msrb.mxu2 %v6428_v20  ;;  %v6847_v20 = vld [vmem:[#allocation5 + $0xde0] sm:$0xf]  ;;  %v6656_v48 = vor.u32 %v8027_v19, %v6655_v47  ;;  %v8047_v14 = vld [vmem:[#allocation5 + $0xd0c] sm:$0xf0]  ;;  %v8025_v19 = vld [vmem:[#allocation5 + $0xc64] sm:$0xf] }
 0x249   :  { %3849 = vmatpush.bf16.msra.mxu0 %v6688_v12  ;;  %v6848_v22 = vor.u32 %v8075_v21, %v6847_v20  ;;  %v6657_v20 = vld [vmem:[#allocation5 + $0xc70] sm:$0xf0] }
 0x24a   :  { %2954 = vmatmul.bf16.vlgmr.msrb.gmra.mxu3 %v8548_v52  ;;  %3032 = vmatmul.bf16.vlgmr.msrb.gmra.mxu1 %v8527_v51  ;;  %v6364_v51 = vor.u32 %v7950_v44, %v6361_v31  ;;  %v8063_v44 = vld [vmem:[#allocation5 + $0xd8c] sm:$0xf0]  ;;  %v8041_v31 = vld [vmem:[#allocation5 + $0xce4] sm:$0xf] }
 0x24b   :  { %3002 = vmatpush.bf16.msra.mxu3 %v6536_v25  ;;  %3860 = vmatpush.bf16.msra.mxu1 %v6848_v22  ;;  %v6639_v25 = vld [vmem:[#allocation5 + $0xc40] sm:$0xf]  ;;  %v6800_v46 = vor.u32 %v8063_v44, %v6799_v42  ;;  %v6660_v22 = vor.u32 %v8025_v19, %v6657_v20  ;;  %v6625_v44 = vld [vmem:[#allocation5 + $0xc30] sm:$0xf0] }
 0x24c   :  { %3041 = vmatpush.bf16.msrb.mxu2 %v6412_v23  ;;  %v8023_v23 = vld [vmem:[#allocation5 + $0xc4c] sm:$0xf0]  ;;  %v7071_v20 = vld [vmem:[#allocation5 + $0xfa0] sm:$0xf] }
 0x24d   :  { %3850 = vmatpush.bf16.msra.mxu0 %v6672_v49  ;;  %v6640_v50 = vor.u32 %v8023_v23, %v6639_v25  ;;  %v8095_v49 = vld [vmem:[#allocation5 + $0xe8c] sm:$0xf0]  ;;  %v6849_v25 = vld [vmem:[#allocation5 + $0xdf0] sm:$0xf0] }
 0x24e   :  { %v6928_v21 = vor.u32 %v8095_v49, %v6927_v15 }
 0x24f   :  { %3003 = vmatpush.bf16.msra.mxu3 %v6520_v29  ;;  %v6623_v29 = vld [vmem:[#allocation5 + $0xc20] sm:$0xf]  ;;  %3861 = vmatpush.bf16.msra.mxu1 %v6832_v28  ;;  %v8021_v28 = vld [vmem:[#allocation5 + $0xc44] sm:$0xf] }
 0x250   :  { %3042 = vmatpush.bf16.msrb.mxu2 %v6396_v30  ;;  %v8019_v30 = vld [vmem:[#allocation5 + $0xc2c] sm:$0xf0] }
 0x251   :  { %3851 = vmatpush.bf16.msra.mxu0 %v6656_v48  ;;  %v6624_v34 = vor.u32 %v8019_v30, %v6623_v29  ;;  %v8073_v48 = vld [vmem:[#allocation5 + $0xde4] sm:$0xf]  ;;  %v6641_v29 = vld [vmem:[#allocation5 + $0xc50] sm:$0xf0] }
 0x252   :  { %v6852_v23 = vor.u32 %v8073_v48, %v6849_v25  ;;  %v8069_v30 = vld [vmem:[#allocation5 + $0xdc4] sm:$0xf]  ;;  %v6644_v4 = vor.u32 %v8021_v28, %v6641_v29  ;;  %v6753_v25 = vld [vmem:[#allocation5 + $0xd30] sm:$0xf0]  ;;  %v7055_v28 = vld [vmem:[#allocation5 + $0xf80] sm:$0xf] }
 0x253   :  { %3004 = vmatpush.bf16.msra.mxu3 %v6504_v38  ;;  %3862 = vmatpush.bf16.msra.mxu1 %v6816_v40  ;;  %v8087_v40 = vld [vmem:[#allocation5 + $0xe4c] sm:$0xf0]  ;;  %v8049_v48 = vld [vmem:[#allocation5 + $0xd24] sm:$0xf] }
 0x254   :  { %3043 = vmatpush.bf16.msrb.mxu2 %v6380_v41  ;;  %v8015_v41 = vld [vmem:[#allocation5 + $0xc0c] sm:$0xf0] }
 0x255   :  { %3852 = vmatpush.bf16.msra.mxu0 %v6640_v50  ;;  %v8091_v50 = vld [vmem:[#allocation5 + $0xe6c] sm:$0xf0] }
 0x256   :  { %v6912_v27 = vor.u32 %v8091_v50, %v6911_v26  ;;  %v6756_v26 = vor.u32 %v8049_v48, %v6753_v25  ;;  %v6945_v50 = vld [vmem:[#allocation5 + $0xeb0] sm:$0xf0]  ;;  %v8127_v29 = vld [vmem:[#allocation5 + $0xf8c] sm:$0xf0] }
 0x257   :  { %3005 = vmatpush.bf16.msra.mxu3 %v6488_v16  ;;  %v6724_v16 = vor.u32 %v8041_v31, %v6721_v45  ;;  %3863 = vmatpush.bf16.msra.mxu1 %v6800_v46  ;;  %v8065_v31 = vld [vmem:[#allocation5 + $0xda4] sm:$0xf]  ;;  %v6817_v46 = vld [vmem:[#allocation5 + $0xdb0] sm:$0xf0] }
 0x258   :  { %3044 = vmatpush.bf16.msrb.mxu2 %v6364_v51  ;;  %v6783_v51 = vld [vmem:[#allocation5 + $0xd60] sm:$0xf] }
 0x259   :  { %3853 = vmatpush.bf16.msra.mxu0 %v6624_v34  ;;  %v6833_v34 = vld [vmem:[#allocation5 + $0xdd0] sm:$0xf0] }
 0x25a   :  { %3006 = vmatmul.bf16.vlgmr.msra.gmra.mxu3 %v8548_v52 }
 0x25b   :  { %3050 = vmatpush.bf16.msrb.mxu3 %v6604_v0  ;;  %3045 = vmatmul.bf16.vlgmr.msrb.gmra.mxu2 %v8537_v32  ;;  %v6505_v32 = vld [vmem:[#allocation5 + $0xb38] sm:$0xf0]  ;;  %v8059_v0 = vld [vmem:[#allocation5 + $0xd6c] sm:$0xf0] }
 0x25c   :  { %v6508_v63 = vor.u32 %v7986_v33, %v6505_v32  ;;  %3873 = vmatpush.bf16.msra.mxu2 %v6976_v17  ;;  %v6751_v33 = vld [vmem:[#allocation5 + $0xd20] sm:$0xf]  ;;  %v8051_v32 = vld [vmem:[#allocation5 + $0xd2c] sm:$0xf0]  ;;  %v8061_v17 = vld [vmem:[#allocation5 + $0xd84] sm:$0xf] }
 0x25d   :  { %v6752_v7 = vor.u32 %v8051_v32, %v6751_v33  ;;  %v6785_v33 = vld [vmem:[#allocation5 + $0xd70] sm:$0xf0] }
 0x25f   :  { %3051 = vmatpush.bf16.msrb.mxu3 %v6588_v36  ;;  %v6784_v36 = vor.u32 %v8059_v0, %v6783_v51  ;;  %v6879_v51 = vld [vmem:[#allocation5 + $0xe20] sm:$0xf]  ;;  %v8083_v0 = vld [vmem:[#allocation5 + $0xe2c] sm:$0xf0] }
 0x260   :  { %3874 = vmatpush.bf16.msra.mxu2 %v6960_v60  ;;  %v6880_v1 = vor.u32 %v8083_v0, %v6879_v51  ;;  %v8139_v60 = vld [vmem:[#allocation5 + $0xfec] sm:$0xf0]  ;;  %v8089_v51 = vld [vmem:[#allocation5 + $0xe64] sm:$0xf]  ;;  %v6913_v0 = vld [vmem:[#allocation5 + $0xe70] sm:$0xf0] }
 0x261   :  { %3864 = vmatpush.bf16.msra.mxu1 %v6784_v36  ;;  %v6609_v36 = vld [vmem:[#allocation5 + $0xc10] sm:$0xf0]  ;;  %v7104_v32 = vor.u32 %v8139_v60, %v7103_v58  ;;  %v8115_v60 = vld [vmem:[#allocation5 + $0xf2c] sm:$0xf0] }
 0x263   :  { %3052 = vmatpush.bf16.msrb.mxu3 %v6572_v2  ;;  %v6705_v2 = vld [vmem:[#allocation5 + $0xcd0] sm:$0xf0] }
 0x264   :  { %v6708_v53 = vor.u32 %v8037_v35, %v6705_v2  ;;  %3875 = vmatpush.bf16.msra.mxu2 %v6944_v55  ;;  %v6612_v2 = vor.u32 %v8013_v18, %v6609_v36  ;;  %v6916_v18 = vor.u32 %v8089_v51, %v6913_v0  ;;  %v7023_v36 = vld [vmem:[#allocation5 + $0xf40] sm:$0xf]  ;;  %v6663_v0 = vld [vmem:[#allocation5 + $0xc68] sm:$0xf] }
 0x265   :  { %3865 = vmatpush.bf16.msra.mxu1 %v6768_v57  ;;  %v8079_v57 = vld [vmem:[#allocation5 + $0xe0c] sm:$0xf0] }
 0x267   :  { %3053 = vmatpush.bf16.msrb.mxu3 %v6556_v3 }
 0x268   :  { %3876 = vmatpush.bf16.msra.mxu2 %v6928_v21  ;;  %v8131_v21 = vld [vmem:[#allocation5 + $0xfac] sm:$0xf0] }
 0x269   :  { %3866 = vmatpush.bf16.msra.mxu1 %v6752_v7  ;;  %v6977_v7 = vld [vmem:[#allocation5 + $0xef0] sm:$0xf0] }
 0x26a   :  { %v6980_v55 = vor.u32 %v8105_v6, %v6977_v7  ;;  %v6727_v6 = vld [vmem:[#allocation5 + $0xce8] sm:$0xf]  ;;  %v8044_v7 = vld [vmem:[#allocation5 + $0xcf4] sm:$0xf0] }
 0x26b   :  { %3054 = vmatpush.bf16.msrb.mxu3 %v6540_v37  ;;  %v8033_v37 = vld [vmem:[#allocation5 + $0xca4] sm:$0xf] }
 0x26c   :  { %3877 = vmatpush.bf16.msra.mxu2 %v6912_v27 }
 0x26f   :  { %3055 = vmatpush.bf16.msrb.mxu3 %v6524_v62  ;;  %v6692_v62 = vor.u32 %v8033_v37, %v6689_v59  ;;  %v6864_v59 = vor.u32 %v8079_v57, %v6863_v8 }
 0x273   :  { %3056 = vmatpush.bf16.msrb.mxu3 %v6508_v63  ;;  %v6673_v63 = vld [vmem:[#allocation5 + $0xc90] sm:$0xf0] }
 0x274   :  { %v6676_v10 = vor.u32 %v8029_v9, %v6673_v63  ;;  %v7087_v9 = vld [vmem:[#allocation5 + $0xfc0] sm:$0xf]  ;;  %v8135_v63 = vld [vmem:[#allocation5 + $0xfcc] sm:$0xf0] }
 0x277   :  { %3057 = vmatpush.bf16.msrb.mxu3 %v6492_v13  ;;  %v8558_v24 = vpop.f32.mrf.mxu0  ;;  %v6735_v13 = vld [vmem:[#allocation5 + $0xd00] sm:$0xf] }
 0x278   :  { %v6736_v47 = vor.u32 %v8047_v14, %v6735_v13  ;;  %v8101_v13 = vld [vmem:[#allocation5 + $0xec4] sm:$0xf] }
 0x27a   :  { %3058 = vmatmul.bf16.vlgmr.msrb.gmra.mxu3 %v8548_v52  ;;  %v6607_v52 = vld [vmem:[#allocation5 + $0xc00] sm:$0xf]  ;;  %3867 = vmatpush.bf16.msra.mxu1 %v6736_v47  ;;  %v6961_v47 = vld [vmem:[#allocation5 + $0xed0] sm:$0xf0] }
 0x27b   :  { %v6608_v43 = vor.u32 %v8015_v41, %v6607_v52  ;;  %v6896_v41 = vor.u32 %v8087_v40, %v6895_v39  ;;  %3886 = vmatpush.bf16.msra.mxu3 %v7104_v32  ;;  %v6964_v49 = vor.u32 %v8101_v13, %v6961_v47  ;;  %v8093_v39 = vld [vmem:[#allocation5 + $0xe84] sm:$0xf]  ;;  %v6881_v32 = vld [vmem:[#allocation5 + $0xe30] sm:$0xf0] }
 0x27c   :  { %v8077_v13 = vld [vmem:[#allocation5 + $0xe04] sm:$0xf] }
 0x27d   :  { %3854 = vmatpush.bf16.msra.mxu0 %v6608_v43  ;;  %v8017_v43 = vld [vmem:[#allocation5 + $0xc24] sm:$0xf]  ;;  %3878 = vmatpush.bf16.msra.mxu2 %v6896_v41  ;;  %v6929_v41 = vld [vmem:[#allocation5 + $0xe90] sm:$0xf0] }
 0x27e   :  { %3912 = vmatpush.bf16.msrb.mxu1 %v6852_v23  ;;  %v6628_v45 = vor.u32 %v8017_v43, %v6625_v44  ;;  %v8097_v23 = vld [vmem:[#allocation5 + $0xea4] sm:$0xf]  ;;  %v8574_v43 = vld [vmem:[#allocation7 + $0x8] sm:$0xf]  ;;  %v6932_v44 = vor.u32 %v8093_v39, %v6929_v41  ;;  %v8032_v41 = vld [vmem:[#allocation5 + $0xc94] sm:$0xf0] }
 0x27f   :  { %v2866_v38 = vpop.f32.mrf.mxu0  ;;  %v6948_v27 = vor.u32 %v8097_v23, %v6945_v50  ;;  %v2208_v25 = vperm.slane %v8574_v43, 1  ;;  %v8036_v50 = vld [vmem:[#allocation5 + $0xcb4] sm:$0xf0] }
 0x280   :  { %v6836_v38 = vor.u32 %v8069_v30, %v6833_v34  ;;  %v7056_v30 = vor.u32 %v8127_v29, %v7055_v28  ;;  %v6737_v34 = vld [vmem:[#allocation5 + $0xd10] sm:$0xf0] }
 0x281   :  { %3899 = vmatpush.bf16.msrb.mxu0 %v6724_v16  ;;  %v6820_v16 = vor.u32 %v8065_v31, %v6817_v46  ;;  %3879 = vmatpush.bf16.msra.mxu2 %v6880_v1  ;;  %v8123_v46 = vld [vmem:[#allocation5 + $0xf6c] sm:$0xf0]  ;;  %v2207_v1 = vperm.slane %v8574_v43, 0  ;;  %v7089_v28 = vld [vmem:[#allocation5 + $0xfd0] sm:$0xf0] }
 0x282   :  { %3913 = vmatpush.bf16.msrb.mxu1 %v6836_v38 }
 0x283   :  { %v2865_v8 = vadd.f32 %v8558_v24, %v2207_v1  ;;  %v6991_v24 = vld [vmem:[#allocation5 + $0xf00] sm:$0xf]  ;;  %v8028_v1 = vld [vmem:[#allocation5 + $0xc74] sm:$0xf0] }
 0x285   :  { %3900 = vmatpush.bf16.msrb.mxu0 %v6708_v53  ;;  %v6801_v53 = vld [vmem:[#allocation5 + $0xd90] sm:$0xf0]  ;;  %3880 = vmatpush.bf16.msra.mxu2 %v6864_v59  ;;  %v7007_v59 = vld [vmem:[#allocation5 + $0xf20] sm:$0xf] }
 0x286   :  { %3914 = vmatpush.bf16.msrb.mxu1 %v6820_v16  ;;  %v6804_v54 = vor.u32 %v8061_v17, %v6801_v53  ;;  %v8119_v17 = vld [vmem:[#allocation5 + $0xf4c] sm:$0xf0] }
 0x287   :  { %v8560_v61 = vpop.f32.mrf.mxu1  ;;  %v8562_v3 = vpop.f32.mrf.mxu0  ;;  %v7024_v53 = vor.u32 %v8119_v17, %v7023_v36  ;;  %v8076_v17 = vld [vmem:[#allocation5 + $0xdf4] sm:$0xf0] }
 0x288   :  { %v2917_v39 = vadd.f32 %v8562_v3, %v2208_v25  ;;  %v8125_v3 = vld [vmem:[#allocation5 + $0xf84] sm:$0xf] }
 0x289   :  { %3901 = vmatpush.bf16.msrb.mxu0 %v6692_v62  ;;  %v8057_v62 = vld [vmem:[#allocation5 + $0xd64] sm:$0xf]  ;;  %3925 = vmatpush.bf16.msrb.mxu2 %v6980_v55 }
 0x28a   :  { %3915 = vmatpush.bf16.msrb.mxu1 %v6804_v54  ;;  %v6788_v5 = vor.u32 %v8057_v62, %v6785_v33  ;;  %v8085_v54 = vld [vmem:[#allocation5 + $0xe44] sm:$0xf]  ;;  %v7008_v62 = vor.u32 %v8115_v60, %v7007_v59  ;;  %v8024_v59 = vld [vmem:[#allocation5 + $0xc54] sm:$0xf0] }
 0x28b   :  { %v8081_v33 = vld [vmem:[#allocation5 + $0xe24] sm:$0xf] }
 0x28c   :  { %v6884_v55 = vor.u32 %v8081_v33, %v6881_v32  ;;  %v8072_v33 = vld [vmem:[#allocation5 + $0xdd4] sm:$0xf0]  ;;  %v8121_v32 = vld [vmem:[#allocation5 + $0xf64] sm:$0xf] }
 0x28d   :  { %3902 = vmatpush.bf16.msrb.mxu0 %v6676_v10  ;;  %v7088_v10 = vor.u32 %v8135_v63, %v7087_v9  ;;  %3926 = vmatpush.bf16.msrb.mxu2 %v6964_v49  ;;  %v6711_v49 = vld [vmem:[#allocation5 + $0xcc8] sm:$0xf]  ;;  %v8113_v25 = vld [vmem:[#allocation5 + $0xf24] sm:$0xf] }
 0x28e   :  { %3916 = vmatpush.bf16.msrb.mxu1 %v6788_v5 }
 0x28f   :  { %v2879_v11 = vpop.f32.mrf.mxu1  ;;  %v2918_v12 = vpop.f32.mrf.mxu0  ;;  %3887 = vmatpush.bf16.msra.mxu3 %v7088_v10  ;;  %v8111_v10 = vld [vmem:[#allocation5 + $0xf0c] sm:$0xf0] }
 0x290   :  { %v8053_v11 = vld [vmem:[#allocation5 + $0xd44] sm:$0xf]  ;;  %v6769_v12 = vld [vmem:[#allocation5 + $0xd50] sm:$0xf0] }
 0x291   :  { %3903 = vmatpush.bf16.msrb.mxu0 %v6660_v22  ;;  %v6772_v15 = vor.u32 %v8053_v11, %v6769_v12  ;;  %v7072_v22 = vor.u32 %v8131_v21, %v7071_v20  ;;  %3927 = vmatpush.bf16.msrb.mxu2 %v6948_v27  ;;  %v6728_v12 = vor.u32 %v8044_v7, %v6727_v6  ;;  %v8040_v20 = vld [vmem:[#allocation5 + $0xcd4] sm:$0xf0]  ;;  %v7105_v21 = vld [vmem:[#allocation5 + $0xff0] sm:$0xf0]  ;;  %v8133_v27 = vld [vmem:[#allocation5 + $0xfc4] sm:$0xf] }
 0x292   :  { %v6712_v23 = vor.u32 %v8040_v20, %v6711_v49  ;;  %v2209_v6 = vperm.slane %v8574_v43, 2  ;;  %v6615_v49 = vld [vmem:[#allocation5 + $0xc08] sm:$0xf]  ;;  %v8016_v20 = vld [vmem:[#allocation5 + $0xc14] sm:$0xf0] }
 0x293   :  { %3917 = vmatpush.bf16.msrb.mxu1 %v6772_v15  ;;  %3888 = vmatpush.bf16.msra.mxu3 %v7072_v22  ;;  %v8137_v15 = vld [vmem:[#allocation5 + $0xfe4] sm:$0xf] }
 0x294   :  { %v7108_v48 = vor.u32 %v8137_v15, %v7105_v21 }
 0x295   :  { %3904 = vmatpush.bf16.msrb.mxu0 %v6644_v4  ;;  %v8045_v4 = vld [vmem:[#allocation5 + $0xd04] sm:$0xf]  ;;  %3928 = vmatpush.bf16.msrb.mxu2 %v6932_v44 }
 0x296   :  { %v6740_v38 = vor.u32 %v8045_v4, %v6737_v34  ;;  %v6679_v34 = vld [vmem:[#allocation5 + $0xc88] sm:$0xf]  ;;  %v8129_v44 = vld [vmem:[#allocation5 + $0xfa4] sm:$0xf] }
 0x297   :  { %v8564_v52 = vpop.f32.mrf.mxu1  ;;  %3918 = vmatpush.bf16.msrb.mxu1 %v6756_v26  ;;  %3889 = vmatpush.bf16.msra.mxu3 %v7056_v30  ;;  %v6695_v26 = vld [vmem:[#allocation5 + $0xca8] sm:$0xf]  ;;  %v7092_v30 = vor.u32 %v8133_v27, %v7089_v28  ;;  %v6680_v51 = vor.u32 %v8032_v41, %v6679_v34  ;;  %v8060_v34 = vld [vmem:[#allocation5 + $0xd74] sm:$0xf0] }
 0x298   :  { %v6696_v4 = vor.u32 %v8036_v50, %v6695_v26  ;;  %v8042_v26 = vld [vmem:[#allocation5 + $0xcec] sm:$0xf]  ;;  %v6729_v50 = vld [vmem:[#allocation5 + $0xcf8] sm:$0xf0] }
 0x299   :  { %v8566_v42 = vpop.f32.mrf.mxu0  ;;  %3905 = vmatpush.bf16.msrb.mxu0 %v6628_v45  ;;  %v7039_v45 = vld [vmem:[#allocation5 + $0xf60] sm:$0xf]  ;;  %3929 = vmatpush.bf16.msrb.mxu2 %v6916_v18  ;;  %v6855_v18 = vld [vmem:[#allocation5 + $0xde8] sm:$0xf]  ;;  %v6732_v41 = vor.u32 %v8042_v26, %v6729_v50  ;;  %v6649_v26 = vld [vmem:[#allocation5 + $0xc58] sm:$0xf0] }
 0x29a   :  { %v7040_v16 = vor.u32 %v8123_v46, %v7039_v45  ;;  %v2969_v21 = vadd.f32 %v8566_v42, %v2209_v6  ;;  %v8109_v42 = vld [vmem:[#allocation5 + $0xf04] sm:$0xf]  ;;  %v6681_v6 = vld [vmem:[#allocation5 + $0xc98] sm:$0xf0]  ;;  %v8070_v50 = vld [vmem:[#allocation5 + $0xdcc] sm:$0xf] }
 0x29b   :  { %3919 = vmatpush.bf16.msrb.mxu1 %v6740_v38 }
 0x29c   :  { %3890 = vmatpush.bf16.msra.mxu3 %v7040_v16  ;;  %v2930_v16 = vadd.f32 %v8564_v52, %v2917_v39  ;;  %v6839_v52 = vld [vmem:[#allocation5 + $0xdc8] sm:$0xf] }
 0x29d   :  { %v8568_v35 = vpop.f32.mrf.mxu2  ;;  %3906 = vmatpush.bf16.msrb.mxu0 %v6612_v2 }
 0x29f   :  { %v2931_v56 = vpop.f32.mrf.mxu1 }
 0x2a0   :  { %v6897_v56 = vld [vmem:[#allocation5 + $0xe50] sm:$0xf0]  ;;  %3891 = vmatpush.bf16.msra.mxu3 %v7024_v53 }
 0x2a1   :  { %v2970_v37 = vpop.f32.mrf.mxu0  ;;  %v6900_v58 = vor.u32 %v8085_v54, %v6897_v56  ;;  %v7057_v53 = vld [vmem:[#allocation5 + $0xf90] sm:$0xf0] }
 0x2a2   :  { %v2878_v37 = vadd.f32 %v8560_v61, %v2865_v8  ;;  %v6992_v61 = vor.u32 %v8111_v10, %v6991_v24  ;;  %v7060_v56 = vor.u32 %v8125_v3, %v7057_v53  ;;  %v6823_v24 = vld [vmem:[#allocation5 + $0xda8] sm:$0xf]  ;;  %v8068_v10 = vld [vmem:[#allocation5 + $0xdb4] sm:$0xf0] }
 0x2a3   :  { %3930 = vmatpush.bf16.msrb.mxu2 %v6900_v58  ;;  %v6856_v58 = vor.u32 %v8076_v17, %v6855_v18  ;;  %v6824_v15 = vor.u32 %v8068_v10, %v6823_v24  ;;  %v6775_v3 = vld [vmem:[#allocation5 + $0xd48] sm:$0xf]  ;;  %v8056_v53 = vld [vmem:[#allocation5 + $0xd54] sm:$0xf0] }
 0x2a4   :  { %v2891_v5 = vadd.f32 %v8568_v35, %v2878_v37  ;;  %3892 = vmatpush.bf16.msra.mxu3 %v7008_v62  ;;  %v6647_v37 = vld [vmem:[#allocation5 + $0xc48] sm:$0xf]  ;;  %v8048_v10 = vld [vmem:[#allocation5 + $0xd14] sm:$0xf0] }
 0x2a5   :  { %v2892_v14 = vpop.f32.mrf.mxu2  ;;  %v6648_v7 = vor.u32 %v8024_v59, %v6647_v37  ;;  %v6743_v24 = vld [vmem:[#allocation5 + $0xd08] sm:$0xf] }
 0x2a6   :  { %v6865_v14 = vld [vmem:[#allocation5 + $0xe10] sm:$0xf0] }
 0x2a7   :  { %v8570_v19 = vpop.f32.mrf.mxu1  ;;  %3931 = vmatpush.bf16.msrb.mxu2 %v6884_v55  ;;  %v6868_v35 = vor.u32 %v8077_v13, %v6865_v14  ;;  %v6840_v55 = vor.u32 %v8072_v33, %v6839_v52  ;;  %v6759_v52 = vld [vmem:[#allocation5 + $0xd28] sm:$0xf] }
 0x2a8   :  { %3893 = vmatpush.bf16.msra.mxu3 %v6992_v61  ;;  %v2982_v28 = vadd.f32 %v8570_v19, %v2969_v21  ;;  %v6951_v33 = vld [vmem:[#allocation5 + $0xea8] sm:$0xf] }
 0x2a9   :  { %v6919_v21 = vld [vmem:[#allocation5 + $0xe68] sm:$0xf] }
 0x2ab   :  { %3932 = vmatpush.bf16.msrb.mxu2 %v6868_v35  ;;  %v6807_v35 = vld [vmem:[#allocation5 + $0xd88] sm:$0xf] }
 0x2ac   :  { %3938 = vmatpush.bf16.msrb.mxu3 %v7108_v48  ;;  %v8064_v48 = vld [vmem:[#allocation5 + $0xd94] sm:$0xf0] }
 0x2ad   :  { %v8572_v40 = vpop.f32.mrf.mxu2 }
 0x2ae   :  { %v2943_v36 = vadd.f32 %v8572_v40, %v2930_v16  ;;  %v7041_v40 = vld [vmem:[#allocation5 + $0xf70] sm:$0xf0]  ;;  %v8038_v16 = vld [vmem:[#allocation5 + $0xccc] sm:$0xf] }
 0x2af   :  { %v2983_v31 = vpop.f32.mrf.mxu1 }
 0x2b0   :  { %3939 = vmatpush.bf16.msrb.mxu3 %v7092_v30  ;;  %v7073_v31 = vld [vmem:[#allocation5 + $0xfb0] sm:$0xf0]  ;;  %v6808_v30 = vor.u32 %v8064_v48, %v6807_v35 }
 0x2b1   :  { %v7076_v46 = vor.u32 %v8129_v44, %v7073_v31  ;;  %v6983_v44 = vld [vmem:[#allocation5 + $0xee8] sm:$0xf]  ;;  %v6993_v31 = vld [vmem:[#allocation5 + $0xf10] sm:$0xf0] }
 0x2b4   :  { %3940 = vmatpush.bf16.msrb.mxu3 %v7076_v46  ;;  %v8108_v46 = vld [vmem:[#allocation5 + $0xef4] sm:$0xf0] }
 0x2b5   :  { %v2944_v57 = vpop.f32.mrf.mxu2 }
 0x2b6   :  { %v6664_v57 = vor.u32 %v8028_v1, %v6663_v0  ;;  %v6996_v0 = vor.u32 %v8109_v42, %v6993_v31  ;;  %v8066_v42 = vld [vmem:[#allocation5 + $0xdac] sm:$0xf]  ;;  %v6825_v31 = vld [vmem:[#allocation5 + $0xdb8] sm:$0xf0] }
 0x2b7   :  { %v8577_v2 = vpop.f32.mrf.mxu0 }
 0x2b8   :  { %3941 = vmatpush.bf16.msrb.mxu3 %v7060_v56  ;;  %v8104_v56 = vld [vmem:[#allocation5 + $0xed4] sm:$0xf0] }
 0x2bd   :  { %v2903_v9 = vpop.f32.mrf.mxu3 }
 0x2be   :  { %v2904_v63 = vadd.f32 %v2903_v9, %v2891_v5  ;;  %v7044_v5 = vor.u32 %v8121_v32, %v7041_v40  ;;  %v6631_v9 = vld [vmem:[#allocation5 + $0xc28] sm:$0xf]  ;;  %v8100_v40 = vld [vmem:[#allocation5 + $0xeb4] sm:$0xf0] }
 0x2bf   :  { %v3022_v11 = vpop.f32.mrf.mxu0 }
 0x2c0   :  { %v8582_v47 = vpack.c.bf16 %v2904_v63, %v2904_v63  ;;  %v8584_v22 = vpop.f32.mrf.mxu2  ;;  %v8020_v63 = vld [vmem:[#allocation5 + $0xc34] sm:$0xf0]  ;;  %3942 = vmatpush.bf16.msrb.mxu3 %v7044_v5  ;;  %v8117_v11 = vld [vmem:[#allocation5 + $0xf44] sm:$0xf]  ;;  %v8030_v5 = vld [vmem:[#allocation5 + $0xc8c] sm:$0xf] }
 0x2c1   :  { %v6632_v14 = vor.u32 %v8020_v63, %v6631_v9  ;;  %v2995_v39 = vadd.f32 %v8584_v22, %v2982_v28  ;;  %v6984_v22 = vor.u32 %v8108_v46, %v6983_v44  ;;  %v6952_v9 = vor.u32 %v8100_v40, %v6951_v33  ;;  %v6633_v44 = vld [vmem:[#allocation5 + $0xc38] sm:$0xf0]  ;;  %v6887_v46 = vld [vmem:[#allocation5 + $0xe28] sm:$0xf]  ;;  %v8106_v33 = vld [vmem:[#allocation5 + $0xeec] sm:$0xf] }
 0x2c2   :  { %3855 = vmatmul.bf16.vlgmr.msra.gmra.mxu0 %v8582_v47  ;;  %v6684_v63 = vor.u32 %v8030_v5, %v6681_v6  ;;  %v2210_v28 = vperm.slane %v8574_v43, 3 }
 0x2c3   :  { %3951 = vmatpush.bf16.msra.mxu0 %v6728_v12  ;;  %v7025_v12 = vld [vmem:[#allocation5 + $0xf50] sm:$0xf0] }
 0x2c4   :  { %v7028_v13 = vor.u32 %v8117_v11, %v7025_v12  ;;  %v6935_v11 = vld [vmem:[#allocation5 + $0xe88] sm:$0xf]  ;;  %v8096_v12 = vld [vmem:[#allocation5 + $0xe94] sm:$0xf0] }
 0x2c5   :  { %v2905_v29 = vpop.f32.mrf.mxu3 }
 0x2c6   :  { %3943 = vmatpush.bf16.msrb.mxu3 %v7028_v13  ;;  %v6616_v29 = vor.u32 %v8016_v20, %v6615_v49  ;;  %v6665_v13 = vld [vmem:[#allocation5 + $0xc78] sm:$0xf0]  ;;  %v6744_v49 = vor.u32 %v8048_v10, %v6743_v24  ;;  %v6936_v20 = vor.u32 %v8096_v12, %v6935_v11  ;;  %v8102_v10 = vld [vmem:[#allocation5 + $0xecc] sm:$0xf] }
 0x2c7   :  { %3952 = vmatpush.bf16.msra.mxu0 %v6712_v23  ;;  %v8589_v38 = vpop.f32.mrf.mxu1  ;;  %v7009_v23 = vld [vmem:[#allocation5 + $0xf30] sm:$0xf0]  ;;  %v6777_v24 = vld [vmem:[#allocation5 + $0xd58] sm:$0xf0] }
 0x2c8   :  { %v2996_v45 = vpop.f32.mrf.mxu2  ;;  %v7012_v27 = vor.u32 %v8113_v25, %v7009_v23  ;;  %v8092_v25 = vld [vmem:[#allocation5 + $0xe74] sm:$0xf0]  ;;  %v8022_v23 = vld [vmem:[#allocation5 + $0xc4c] sm:$0xf]  ;;  %v6969_v11 = vld [vmem:[#allocation5 + $0xed8] sm:$0xf0] }
 0x2ca   :  { %3944 = vmatpush.bf16.msrb.mxu3 %v7012_v27  ;;  %v6841_v27 = vld [vmem:[#allocation5 + $0xdd8] sm:$0xf0] }
 0x2cb   :  { %3953 = vmatpush.bf16.msra.mxu0 %v6696_v4  ;;  %v6791_v4 = vld [vmem:[#allocation5 + $0xd68] sm:$0xf] }
 0x2cc   :  { %v6792_v18 = vor.u32 %v8060_v34, %v6791_v4  ;;  %v6903_v4 = vld [vmem:[#allocation5 + $0xe48] sm:$0xf]  ;;  %v6844_v34 = vor.u32 %v8070_v50, %v6841_v27  ;;  %v8128_v50 = vld [vmem:[#allocation5 + $0xf94] sm:$0xf0]  ;;  %v8046_v27 = vld [vmem:[#allocation5 + $0xd0c] sm:$0xf] }
 0x2cd   :  { %v2955_v54 = vpop.f32.mrf.mxu3 }
 0x2ce   :  { %v2956_v8 = vadd.f32 %v2955_v54, %v2943_v36  ;;  %v6967_v54 = vld [vmem:[#allocation5 + $0xec8] sm:$0xf]  ;;  %3945 = vmatpush.bf16.msrb.mxu3 %v6996_v0  ;;  %v8084_v0 = vld [vmem:[#allocation5 + $0xe34] sm:$0xf0] }
 0x2cf   :  { %3954 = vmatpush.bf16.msra.mxu0 %v6680_v51  ;;  %v3035_v62 = vpop.f32.mrf.mxu1  ;;  %v6713_v51 = vld [vmem:[#allocation5 + $0xcd8] sm:$0xf0]  ;;  %v6968_v37 = vor.u32 %v8104_v56, %v6967_v54  ;;  %v6871_v56 = vld [vmem:[#allocation5 + $0xe08] sm:$0xf] }
 0x2d0   :  { %v8593_v60 = vpack.c.bf16 %v2956_v8, %v2956_v8  ;;  %v6716_v17 = vor.u32 %v8038_v16, %v6713_v51  ;;  %v8034_v8 = vld [vmem:[#allocation5 + $0xcac] sm:$0xf]  ;;  %v8052_v62 = vld [vmem:[#allocation5 + $0xd34] sm:$0xf0]  ;;  %v3021_v16 = vadd.f32 %v8577_v2, %v2210_v28  ;;  %v6828_v51 = vor.u32 %v8066_v42, %v6825_v31  ;;  %v7111_v2 = vld [vmem:[#allocation5 + $0xfe8] sm:$0xf] }
 0x2d1   :  { %v6745_v28 = vld [vmem:[#allocation5 + $0xd18] sm:$0xf0]  ;;  %v8090_v42 = vld [vmem:[#allocation5 + $0xe6c] sm:$0xf] }
 0x2d2   :  { %3868 = vmatmul.bf16.vlgmr.msra.gmra.mxu1 %v8593_v60  ;;  %3907 = vmatmul.bf16.vlgmr.msrb.gmra.mxu0 %v8582_v47  ;;  %v6921_v31 = vld [vmem:[#allocation5 + $0xe78] sm:$0xf0] }
 0x2d3   :  { %3955 = vmatpush.bf16.msra.mxu0 %v6664_v57  ;;  %3964 = vmatpush.bf16.msra.mxu1 %v6856_v58  ;;  %v6697_v57 = vld [vmem:[#allocation5 + $0xcb8] sm:$0xf0]  ;;  %v6776_v58 = vor.u32 %v8056_v53, %v6775_v3  ;;  %v3034_v3 = vadd.f32 %v8589_v38, %v3021_v16  ;;  %v6888_v53 = vor.u32 %v8084_v0, %v6887_v46  ;;  %v7031_v46 = vld [vmem:[#allocation5 + $0xf48] sm:$0xf]  ;;  %v8120_v16 = vld [vmem:[#allocation5 + $0xf54] sm:$0xf0] }
 0x2d4   :  { %v6700_v59 = vor.u32 %v8034_v8, %v6697_v57  ;;  %v8080_v8 = vld [vmem:[#allocation5 + $0xe14] sm:$0xf0]  ;;  %v6905_v0 = vld [vmem:[#allocation5 + $0xe58] sm:$0xf0] }
 0x2d5   :  { %v2957_v61 = vpop.f32.mrf.mxu3  ;;  %v6872_v38 = vor.u32 %v8080_v8, %v6871_v56  ;;  %v6999_v8 = vld [vmem:[#allocation5 + $0xf08] sm:$0xf] }
 0x2d6   :  { %v8026_v61 = vld [vmem:[#allocation5 + $0xc6c] sm:$0xf] }
 0x2d7   :  { %3956 = vmatpush.bf16.msra.mxu0 %v6648_v7  ;;  %3965 = vmatpush.bf16.msra.mxu1 %v6840_v55  ;;  %v6760_v55 = vor.u32 %v8052_v62, %v6759_v52  ;;  %v6668_v35 = vor.u32 %v8026_v61, %v6665_v13  ;;  %v6793_v62 = vld [vmem:[#allocation5 + $0xd78] sm:$0xf0]  ;;  %v6972_v13 = vor.u32 %v8102_v10, %v6969_v11  ;;  %v7231_v10 = vld [vmem:[#allocation5 + $0x10e0] sm:$0xf]  ;;  %v8171_v11 = vld [vmem:[#allocation5 + $0x10ec] sm:$0xf0] }
 0x2db   :  { %3957 = vmatpush.bf16.msra.mxu0 %v6632_v14  ;;  %3966 = vmatpush.bf16.msra.mxu1 %v6824_v15  ;;  %v8074_v14 = vld [vmem:[#allocation5 + $0xdec] sm:$0xf]  ;;  %v6857_v15 = vld [vmem:[#allocation5 + $0xdf8] sm:$0xf0] }
 0x2dc   :  { %v6860_v48 = vor.u32 %v8074_v14, %v6857_v15  ;;  %v7079_v14 = vld [vmem:[#allocation5 + $0xfa8] sm:$0xf]  ;;  %v8132_v15 = vld [vmem:[#allocation5 + $0xfb4] sm:$0xf0] }
 0x2dd   :  { %v3007_v45 = vpop.f32.mrf.mxu3 }
 0x2de   :  { %v3008_v1 = vadd.f32 %v3007_v45, %v2995_v39  ;;  %v8601_v19 = vpop.f32.mrf.mxu2  ;;  %v8088_v39 = vld [vmem:[#allocation5 + $0xe54] sm:$0xf0] }
 0x2df   :  { %3958 = vmatpush.bf16.msra.mxu0 %v6616_v29  ;;  %3967 = vmatpush.bf16.msra.mxu1 %v6808_v30  ;;  %v6920_v29 = vor.u32 %v8092_v25, %v6919_v21  ;;  %v6652_v30 = vor.u32 %v8022_v23, %v6649_v26  ;;  %v6904_v45 = vor.u32 %v8088_v39, %v6903_v4  ;;  %v8098_v21 = vld [vmem:[#allocation5 + $0xeac] sm:$0xf]  ;;  %v7063_v26 = vld [vmem:[#allocation5 + $0xf88] sm:$0xf] }
 0x2e0   :  { %v8603_v36 = vpack.c.bf16 %v3008_v1, %v3008_v1  ;;  %v8014_v1 = vld [vmem:[#allocation5 + $0xc0c] sm:$0xf]  ;;  %v3047_v57 = vadd.f32 %v8601_v19, %v3034_v3  ;;  %v7095_v19 = vld [vmem:[#allocation5 + $0xfc8] sm:$0xf]  ;;  %v7080_v25 = vor.u32 %v8132_v15, %v7079_v14  ;;  %v7064_v4 = vor.u32 %v8128_v50, %v7063_v26  ;;  %v7033_v14 = vld [vmem:[#allocation5 + $0xf58] sm:$0xf0] }
 0x2e1   :  { %v8082_v3 = vld [vmem:[#allocation5 + $0xe2c] sm:$0xf]  ;;  %v7001_v26 = vld [vmem:[#allocation5 + $0xf18] sm:$0xf0] }
 0x2e2   :  { %3881 = vmatmul.bf16.vlgmr.msra.gmra.mxu2 %v8603_v36  ;;  %3920 = vmatmul.bf16.vlgmr.msrb.gmra.mxu1 %v8593_v60 }
 0x2e3   :  { %4003 = vmatpush.bf16.msrb.mxu0 %v6732_v41  ;;  %3968 = vmatpush.bf16.msra.mxu1 %v6792_v18  ;;  %v8018_v41 = vld [vmem:[#allocation5 + $0xc2c] sm:$0xf]  ;;  %v6617_v18 = vld [vmem:[#allocation5 + $0xc18] sm:$0xf0] }
 0x2e4   :  { %3959 = vmatmul.bf16.vlgmr.msra.gmra.mxu0 %v8582_v47  ;;  %3977 = vmatpush.bf16.msra.mxu2 %v6984_v22  ;;  %v6636_v43 = vor.u32 %v8018_v41, %v6633_v44  ;;  %v8062_v22 = vld [vmem:[#allocation5 + $0xd8c] sm:$0xf]  ;;  %v6620_v54 = vor.u32 %v8014_v1, %v6617_v18  ;;  %v7047_v41 = vld [vmem:[#allocation5 + $0xf68] sm:$0xf]  ;;  %v8124_v44 = vld [vmem:[#allocation5 + $0xf74] sm:$0xf0]  ;;  %v7032_v1 = vor.u32 %v8120_v16, %v7031_v46 }
 0x2e5   :  { %v3009_v32 = vpop.f32.mrf.mxu3  ;;  %v7343_v46 = vld [vmem:[#allocation5 + $0x11c0] sm:$0xf] }
 0x2e6   :  { %v3048_v7 = vpop.f32.mrf.mxu2  ;;  %v6985_v32 = vld [vmem:[#allocation5 + $0xef8] sm:$0xf0] }
 0x2e7   :  { %4004 = vmatpush.bf16.msrb.mxu0 %v6716_v17  ;;  %3969 = vmatpush.bf16.msra.mxu1 %v6776_v58  ;;  %v6809_v17 = vld [vmem:[#allocation5 + $0xd98] sm:$0xf0] }
 0x2e8   :  { %3978 = vmatpush.bf16.msra.mxu2 %v6968_v37  ;;  %v6812_v58 = vor.u32 %v8062_v22, %v6809_v17  ;;  %v8140_v37 = vld [vmem:[#allocation5 + $0xff4] sm:$0xf0]  ;;  %v7015_v22 = vld [vmem:[#allocation5 + $0xf28] sm:$0xf] }
 0x2e9   :  { %v7112_v5 = vor.u32 %v8140_v37, %v7111_v2  ;;  %v8116_v17 = vld [vmem:[#allocation5 + $0xf34] sm:$0xf0]  ;;  %v6873_v2 = vld [vmem:[#allocation5 + $0xe18] sm:$0xf0]  ;;  %v8138_v37 = vld [vmem:[#allocation5 + $0xfec] sm:$0xf] }
 0x2eb   :  { %4005 = vmatpush.bf16.msrb.mxu0 %v6700_v59  ;;  %3970 = vmatpush.bf16.msra.mxu1 %v6760_v55  ;;  %v8058_v59 = vld [vmem:[#allocation5 + $0xd6c] sm:$0xf]  ;;  %v6988_v55 = vor.u32 %v8106_v33, %v6985_v32  ;;  %v7097_v32 = vld [vmem:[#allocation5 + $0xfd8] sm:$0xf0] }
 0x2ec   :  { %3979 = vmatpush.bf16.msra.mxu2 %v6952_v9  ;;  %v6796_v7 = vor.u32 %v8058_v59, %v6793_v62  ;;  %v8136_v9 = vld [vmem:[#allocation5 + $0xfd4] sm:$0xf0]  ;;  %v7113_v59 = vld [vmem:[#allocation5 + $0xff8] sm:$0xf0]  ;;  %v8134_v33 = vld [vmem:[#allocation5 + $0xfcc] sm:$0xf] }
 0x2ed   :  { %v7096_v12 = vor.u32 %v8136_v9, %v7095_v19  ;;  %v7116_v62 = vor.u32 %v8138_v37, %v7113_v59  ;;  %v7065_v19 = vld [vmem:[#allocation5 + $0xf98] sm:$0xf0]  ;;  %v7233_v37 = vld [vmem:[#allocation5 + $0x10f0] sm:$0xf0] }
 0x2ef   :  { %4006 = vmatpush.bf16.msrb.mxu0 %v6684_v63  ;;  %3971 = vmatpush.bf16.msra.mxu1 %v6744_v49  ;;  %v8054_v63 = vld [vmem:[#allocation5 + $0xd4c] sm:$0xf] }
 0x2f0   :  { %3980 = vmatpush.bf16.msra.mxu2 %v6936_v20  ;;  %v6780_v61 = vor.u32 %v8054_v63, %v6777_v24  ;;  %v8050_v49 = vld [vmem:[#allocation5 + $0xd2c] sm:$0xf]  ;;  %v7049_v24 = vld [vmem:[#allocation5 + $0xf78] sm:$0xf0] }
 0x2f1   :  { %v8122_v63 = vld [vmem:[#allocation5 + $0xf6c] sm:$0xf] }
 0x2f2   :  { %3933 = vmatmul.bf16.vlgmr.msrb.gmra.mxu2 %v8603_v36  ;;  %3972 = vmatmul.bf16.vlgmr.msra.gmra.mxu1 %v8593_v60 }
 0x2f3   :  { %4007 = vmatpush.bf16.msrb.mxu0 %v6668_v35  ;;  %4016 = vmatpush.bf16.msrb.mxu1 %v6860_v48  ;;  %v6761_v35 = vld [vmem:[#allocation5 + $0xd38] sm:$0xf0] }
 0x2f4   :  { %3981 = vmatpush.bf16.msra.mxu2 %v6920_v29  ;;  %v6953_v48 = vld [vmem:[#allocation5 + $0xeb8] sm:$0xf0]  ;;  %v8094_v29 = vld [vmem:[#allocation5 + $0xe8c] sm:$0xf] }
 0x2f5   :  { %v6956_v23 = vor.u32 %v8098_v21, %v6953_v48  ;;  %v7199_v48 = vld [vmem:[#allocation5 + $0x10a0] sm:$0xf] }
 0x2f7   :  { %4008 = vmatpush.bf16.msrb.mxu0 %v6652_v30  ;;  %4017 = vmatpush.bf16.msrb.mxu1 %v6844_v34  ;;  %v6937_v30 = vld [vmem:[#allocation5 + $0xe98] sm:$0xf0]  ;;  %v6748_v34 = vor.u32 %v8046_v27, %v6745_v28  ;;  %v7183_v28 = vld [vmem:[#allocation5 + $0x1080] sm:$0xf] }
 0x2f8   :  { %3982 = vmatpush.bf16.msra.mxu2 %v6904_v45  ;;  %v6940_v39 = vor.u32 %v8094_v29, %v6937_v30  ;;  %v7048_v45 = vor.u32 %v8124_v44, %v7047_v41  ;;  %v8159_v29 = vld [vmem:[#allocation5 + $0x108c] sm:$0xf0]  ;;  %v7167_v30 = vld [vmem:[#allocation5 + $0x1060] sm:$0xf] }
 0x2f9   :  { %v8203_v41 = vld [vmem:[#allocation5 + $0x11ec] sm:$0xf0] }
 0x2fb   :  { %4009 = vmatpush.bf16.msrb.mxu0 %v6636_v43  ;;  %4018 = vmatpush.bf16.msrb.mxu1 %v6828_v51  ;;  %v6924_v43 = vor.u32 %v8090_v42, %v6921_v31  ;;  %v8086_v51 = vld [vmem:[#allocation5 + $0xe4c] sm:$0xf] }
 0x2fc   :  { %3983 = vmatpush.bf16.msra.mxu2 %v6888_v53  ;;  %v6908_v18 = vor.u32 %v8086_v51, %v6905_v0  ;;  %v6889_v53 = vld [vmem:[#allocation5 + $0xe38] sm:$0xf0]  ;;  %v8199_v51 = vld [vmem:[#allocation5 + $0x11cc] sm:$0xf0] }
 0x2fd   :  { %v3059_v52 = vpop.f32.mrf.mxu3  ;;  %v6892_v56 = vor.u32 %v8082_v3, %v6889_v53  ;;  %v7344_v0 = vor.u32 %v8199_v51, %v7343_v46  ;;  %v8195_v3 = vld [vmem:[#allocation5 + $0x11ac] sm:$0xf0]  ;;  %v7423_v46 = vld [vmem:[#allocation5 + $0x1260] sm:$0xf] }
 0x2fe   :  { %v3060_v40 = vadd.f32 %v3059_v52, %v3047_v57  ;;  %v8112_v57 = vld [vmem:[#allocation5 + $0xf14] sm:$0xf0] }
 0x2ff   :  { %4010 = vmatpush.bf16.msrb.mxu0 %v6620_v54  ;;  %4019 = vmatpush.bf16.msrb.mxu1 %v6812_v58  ;;  %v7016_v54 = vor.u32 %v8116_v17, %v7015_v22  ;;  %v8078_v58 = vld [vmem:[#allocation5 + $0xe0c] sm:$0xf]  ;;  %v7000_v52 = vor.u32 %v8112_v57, %v6999_v8  ;;  %v7327_v22 = vld [vmem:[#allocation5 + $0x11a0] sm:$0xf] }
 0x300   :  { %v8614_v6 = vpack.c.bf16 %v3060_v40, %v3060_v40  ;;  %3984 = vmatpush.bf16.msra.mxu2 %v6872_v38  ;;  %v7100_v40 = vor.u32 %v8134_v33, %v7097_v32  ;;  %v8130_v38 = vld [vmem:[#allocation5 + $0xfac] sm:$0xf]  ;;  %v7328_v53 = vor.u32 %v8195_v3, %v7327_v22  ;;  %v7311_v8 = vld [vmem:[#allocation5 + $0x1180] sm:$0xf]  ;;  %v8235_v32 = vld [vmem:[#allocation5 + $0x12ec] sm:$0xf0] }
 0x301   :  { %v7487_v33 = vld [vmem:[#allocation5 + $0x12e0] sm:$0xf] }
 0x302   :  { %3894 = vmatmul.bf16.vlgmr.msra.gmra.mxu3 %v8614_v6  ;;  %4011 = vmatmul.bf16.vlgmr.msrb.gmra.mxu0 %v8582_v47  ;;  %v6764_v47 = vor.u32 %v8050_v49, %v6761_v35  ;;  %v8114_v49 = vld [vmem:[#allocation5 + $0xf2c] sm:$0xf]  ;;  %v8167_v35 = vld [vmem:[#allocation5 + $0x10cc] sm:$0xf0]  ;;  %v7407_v3 = vld [vmem:[#allocation5 + $0x1240] sm:$0xf] }
 0x303   :  { %3990 = vmatpush.bf16.msra.mxu3 %v7112_v5  ;;  %4020 = vmatpush.bf16.msrb.mxu1 %v6796_v7  ;;  %v7081_v5 = vld [vmem:[#allocation5 + $0xfb8] sm:$0xf0] }
 0x304   :  { %4029 = vmatpush.bf16.msrb.mxu2 %v6988_v55  ;;  %v7084_v7 = vor.u32 %v8130_v38, %v7081_v5  ;;  %v8126_v55 = vld [vmem:[#allocation5 + $0xf8c] sm:$0xf]  ;;  %v7488_v38 = vor.u32 %v8235_v32, %v7487_v33  ;;  %v8165_v5 = vld [vmem:[#allocation5 + $0x10c4] sm:$0xf] }
 0x305   :  { %v3061_v20 = vpop.f32.mrf.mxu3  ;;  %3985 = vmatmul.bf16.vlgmr.msra.gmra.mxu2 %v8603_v36  ;;  %v7068_v9 = vor.u32 %v8126_v55, %v7065_v19  ;;  %v8141_v32 = vld [vmem:[#allocation5 + $0x1004] sm:$0xf] }
 0x306   :  { %v7215_v20 = vld [vmem:[#allocation5 + $0x10c0] sm:$0xf] }
 0x307   :  { %3991 = vmatpush.bf16.msra.mxu3 %v7096_v12  ;;  %4021 = vmatpush.bf16.msrb.mxu1 %v6780_v61  ;;  %v7232_v12 = vor.u32 %v8171_v11, %v7231_v10  ;;  %v7052_v61 = vor.u32 %v8122_v63, %v7049_v24  ;;  %v7216_v21 = vor.u32 %v8167_v35, %v7215_v20  ;;  %v7279_v63 = vld [vmem:[#allocation5 + $0x1140] sm:$0xf]  ;;  %v8183_v24 = vld [vmem:[#allocation5 + $0x114c] sm:$0xf0] }
 0x308   :  { %4030 = vmatpush.bf16.msrb.mxu2 %v6972_v13  ;;  %v8118_v13 = vld [vmem:[#allocation5 + $0xf4c] sm:$0xf]  ;;  %v7471_v10 = vld [vmem:[#allocation5 + $0x12c0] sm:$0xf]  ;;  %v7280_v11 = vor.u32 %v8183_v24, %v7279_v63  ;;  %v8227_v35 = vld [vmem:[#allocation5 + $0x12ac] sm:$0xf0] }
 0x309   :  { %4839 = vmatpush.bf16.msra.mxu0 %v7232_v12  ;;  %v7036_v15 = vor.u32 %v8118_v13, %v7033_v14  ;;  %v8231_v12 = vld [vmem:[#allocation5 + $0x12cc] sm:$0xf0]  ;;  %v7201_v13 = vld [vmem:[#allocation5 + $0x10b0] sm:$0xf0]  ;;  %v7455_v20 = vld [vmem:[#allocation5 + $0x12a0] sm:$0xf] }
 0x30a   :  { %v7472_v14 = vor.u32 %v8231_v12, %v7471_v10  ;;  %v7375_v10 = vld [vmem:[#allocation5 + $0x1200] sm:$0xf] }
 0x30b   :  { %3992 = vmatpush.bf16.msra.mxu3 %v7080_v25  ;;  %4022 = vmatpush.bf16.msrb.mxu1 %v6764_v47  ;;  %v8163_v25 = vld [vmem:[#allocation5 + $0x10ac] sm:$0xf0]  ;;  %v7615_v12 = vld [vmem:[#allocation5 + $0x13e0] sm:$0xf] }
 0x30c   :  { %4031 = vmatpush.bf16.msrb.mxu2 %v6956_v23  ;;  %v8110_v23 = vld [vmem:[#allocation5 + $0xf0c] sm:$0xf]  ;;  %v7200_v50 = vor.u32 %v8163_v25, %v7199_v48  ;;  %v7456_v48 = vor.u32 %v8227_v35, %v7455_v20  ;;  %v8157_v25 = vld [vmem:[#allocation5 + $0x1084] sm:$0xf] }
 0x30d   :  { %4840 = vmatpush.bf16.msra.mxu0 %v7216_v21  ;;  %v7004_v27 = vor.u32 %v8110_v23, %v7001_v26  ;;  %v8233_v35 = vld [vmem:[#allocation5 + $0x12e4] sm:$0xf] }
 0x30f   :  { %3993 = vmatpush.bf16.msra.mxu3 %v7064_v4  ;;  %4023 = vmatpush.bf16.msrb.mxu1 %v6748_v34  ;;  %v7184_v4 = vor.u32 %v8159_v29, %v7183_v28  ;;  %v8155_v34 = vld [vmem:[#allocation5 + $0x106c] sm:$0xf0]  ;;  %v7439_v29 = vld [vmem:[#allocation5 + $0x1280] sm:$0xf] }
 0x310   :  { %4032 = vmatpush.bf16.msrb.mxu2 %v6940_v39  ;;  %v7359_v39 = vld [vmem:[#allocation5 + $0x11e0] sm:$0xf]  ;;  %v7168_v42 = vor.u32 %v8155_v34, %v7167_v30  ;;  %v8175_v28 = vld [vmem:[#allocation5 + $0x110c] sm:$0xf0]  ;;  %v8153_v34 = vld [vmem:[#allocation5 + $0x1064] sm:$0xf] }
 0x311   :  { %4841 = vmatpush.bf16.msra.mxu0 %v7200_v50  ;;  %v7360_v44 = vor.u32 %v8203_v41, %v7359_v39  ;;  %v7169_v39 = vld [vmem:[#allocation5 + $0x1070] sm:$0xf0] }
 0x312   :  { %3946 = vmatmul.bf16.vlgmr.msrb.gmra.mxu3 %v8614_v6  ;;  %4024 = vmatmul.bf16.vlgmr.msrb.gmra.mxu1 %v8593_v60  ;;  %v6876_v60 = vor.u32 %v8078_v58, %v6873_v2  ;;  %v8191_v58 = vld [vmem:[#allocation5 + $0x118c] sm:$0xf0]  ;;  %v8169_v2 = vld [vmem:[#allocation5 + $0x10e4] sm:$0xf] }
 0x313   :  { %3994 = vmatpush.bf16.msra.mxu3 %v7048_v45  ;;  %4852 = vmatpush.bf16.msra.mxu1 %v7360_v44  ;;  %v7151_v45 = vld [vmem:[#allocation5 + $0x1040] sm:$0xf]  ;;  %v7312_v59 = vor.u32 %v8191_v58, %v7311_v8  ;;  %v7172_v44 = vor.u32 %v8153_v34, %v7169_v39  ;;  %v7137_v58 = vld [vmem:[#allocation5 + $0x1030] sm:$0xf0] }
 0x314   :  { %4033 = vmatpush.bf16.msrb.mxu2 %v6924_v43  ;;  %v8151_v43 = vld [vmem:[#allocation5 + $0x104c] sm:$0xf0]  ;;  %v7583_v39 = vld [vmem:[#allocation5 + $0x13a0] sm:$0xf] }
 0x315   :  { %4842 = vmatpush.bf16.msra.mxu0 %v7184_v4  ;;  %v7152_v16 = vor.u32 %v8151_v43, %v7151_v45  ;;  %v8223_v4 = vld [vmem:[#allocation5 + $0x128c] sm:$0xf0]  ;;  %v7361_v45 = vld [vmem:[#allocation5 + $0x11f0] sm:$0xf0] }
 0x316   :  { %v7440_v41 = vor.u32 %v8223_v4, %v7439_v29 }
 0x317   :  { %3995 = vmatpush.bf16.msra.mxu3 %v7032_v1  ;;  %v7135_v1 = vld [vmem:[#allocation5 + $0x1020] sm:$0xf]  ;;  %4853 = vmatpush.bf16.msra.mxu1 %v7344_v0  ;;  %v8149_v0 = vld [vmem:[#allocation5 + $0x1044] sm:$0xf] }
 0x318   :  { %4034 = vmatpush.bf16.msrb.mxu2 %v6908_v18  ;;  %v8147_v18 = vld [vmem:[#allocation5 + $0x102c] sm:$0xf0] }
 0x319   :  { %4843 = vmatpush.bf16.msra.mxu0 %v7168_v42  ;;  %v7136_v17 = vor.u32 %v8147_v18, %v7135_v1  ;;  %v8201_v42 = vld [vmem:[#allocation5 + $0x11e4] sm:$0xf]  ;;  %v7153_v1 = vld [vmem:[#allocation5 + $0x1050] sm:$0xf0] }
 0x31a   :  { %v7364_v43 = vor.u32 %v8201_v42, %v7361_v45  ;;  %v8197_v18 = vld [vmem:[#allocation5 + $0x11c4] sm:$0xf]  ;;  %v7156_v22 = vor.u32 %v8149_v0, %v7153_v1  ;;  %v7265_v45 = vld [vmem:[#allocation5 + $0x1130] sm:$0xf0]  ;;  %v7567_v0 = vld [vmem:[#allocation5 + $0x1380] sm:$0xf] }
 0x31b   :  { %3996 = vmatpush.bf16.msra.mxu3 %v7016_v54  ;;  %4854 = vmatpush.bf16.msra.mxu1 %v7328_v53  ;;  %v8215_v53 = vld [vmem:[#allocation5 + $0x124c] sm:$0xf0]  ;;  %v8177_v42 = vld [vmem:[#allocation5 + $0x1124] sm:$0xf] }
 0x31c   :  { %4035 = vmatpush.bf16.msrb.mxu2 %v6892_v56  ;;  %v8143_v56 = vld [vmem:[#allocation5 + $0x100c] sm:$0xf0] }
 0x31d   :  { %4844 = vmatpush.bf16.msra.mxu0 %v7152_v16  ;;  %v8219_v16 = vld [vmem:[#allocation5 + $0x126c] sm:$0xf0] }
 0x31e   :  { %v7424_v51 = vor.u32 %v8219_v16, %v7423_v46  ;;  %v7268_v46 = vor.u32 %v8177_v42, %v7265_v45  ;;  %v7457_v16 = vld [vmem:[#allocation5 + $0x12b0] sm:$0xf0]  ;;  %v8255_v1 = vld [vmem:[#allocation5 + $0x138c] sm:$0xf0] }
 0x31f   :  { %3997 = vmatpush.bf16.msra.mxu3 %v7000_v52  ;;  %v7236_v52 = vor.u32 %v8169_v2, %v7233_v37  ;;  %4855 = vmatpush.bf16.msra.mxu1 %v7312_v59  ;;  %v8193_v2 = vld [vmem:[#allocation5 + $0x11a4] sm:$0xf]  ;;  %v7329_v59 = vld [vmem:[#allocation5 + $0x11b0] sm:$0xf0] }
 0x320   :  { %4036 = vmatpush.bf16.msrb.mxu2 %v6876_v60  ;;  %v7295_v60 = vld [vmem:[#allocation5 + $0x1160] sm:$0xf] }
 0x321   :  { %4845 = vmatpush.bf16.msra.mxu0 %v7136_v17  ;;  %v7345_v17 = vld [vmem:[#allocation5 + $0x11d0] sm:$0xf0] }
 0x322   :  { %3998 = vmatmul.bf16.vlgmr.msra.gmra.mxu3 %v8614_v6 }
 0x323   :  { %4042 = vmatpush.bf16.msrb.mxu3 %v7116_v62  ;;  %4037 = vmatmul.bf16.vlgmr.msrb.gmra.mxu2 %v8603_v36  ;;  %v7017_v36 = vld [vmem:[#allocation5 + $0xf38] sm:$0xf0]  ;;  %v8187_v62 = vld [vmem:[#allocation5 + $0x116c] sm:$0xf0] }
 0x324   :  { %v7020_v47 = vor.u32 %v8114_v49, %v7017_v36  ;;  %4865 = vmatpush.bf16.msra.mxu2 %v7488_v38  ;;  %v7263_v49 = vld [vmem:[#allocation5 + $0x1120] sm:$0xf]  ;;  %v8179_v36 = vld [vmem:[#allocation5 + $0x112c] sm:$0xf0]  ;;  %v8189_v38 = vld [vmem:[#allocation5 + $0x1184] sm:$0xf] }
 0x325   :  { %v7264_v21 = vor.u32 %v8179_v36, %v7263_v49  ;;  %v7297_v49 = vld [vmem:[#allocation5 + $0x1170] sm:$0xf0] }
 0x327   :  { %4043 = vmatpush.bf16.msrb.mxu3 %v7100_v40  ;;  %v7296_v40 = vor.u32 %v8187_v62, %v7295_v60  ;;  %v7391_v60 = vld [vmem:[#allocation5 + $0x1220] sm:$0xf]  ;;  %v8211_v62 = vld [vmem:[#allocation5 + $0x122c] sm:$0xf0] }
 0x328   :  { %4866 = vmatpush.bf16.msra.mxu2 %v7472_v14  ;;  %v7392_v33 = vor.u32 %v8211_v62, %v7391_v60  ;;  %v8267_v14 = vld [vmem:[#allocation5 + $0x13ec] sm:$0xf0]  ;;  %v8217_v60 = vld [vmem:[#allocation5 + $0x1264] sm:$0xf]  ;;  %v7425_v62 = vld [vmem:[#allocation5 + $0x1270] sm:$0xf0] }
 0x329   :  { %4856 = vmatpush.bf16.msra.mxu1 %v7296_v40  ;;  %v7121_v40 = vld [vmem:[#allocation5 + $0x1010] sm:$0xf0]  ;;  %v7616_v36 = vor.u32 %v8267_v14, %v7615_v12  ;;  %v8243_v14 = vld [vmem:[#allocation5 + $0x132c] sm:$0xf0] }
 0x32b   :  { %4044 = vmatpush.bf16.msrb.mxu3 %v7084_v7  ;;  %v7217_v7 = vld [vmem:[#allocation5 + $0x10d0] sm:$0xf0] }
 0x32c   :  { %v7220_v55 = vor.u32 %v8165_v5, %v7217_v7  ;;  %4867 = vmatpush.bf16.msra.mxu2 %v7456_v48  ;;  %v7124_v7 = vor.u32 %v8141_v32, %v7121_v40  ;;  %v7428_v32 = vor.u32 %v8217_v60, %v7425_v62  ;;  %v7535_v40 = vld [vmem:[#allocation5 + $0x1340] sm:$0xf]  ;;  %v7175_v62 = vld [vmem:[#allocation5 + $0x1068] sm:$0xf] }
 0x32d   :  { %4857 = vmatpush.bf16.msra.mxu1 %v7280_v11  ;;  %v8207_v11 = vld [vmem:[#allocation5 + $0x120c] sm:$0xf0] }
 0x32f   :  { %4045 = vmatpush.bf16.msrb.mxu3 %v7068_v9 }
 0x330   :  { %4868 = vmatpush.bf16.msra.mxu2 %v7440_v41  ;;  %v8259_v41 = vld [vmem:[#allocation5 + $0x13ac] sm:$0xf0] }
 0x331   :  { %4858 = vmatpush.bf16.msra.mxu1 %v7264_v21  ;;  %v7489_v21 = vld [vmem:[#allocation5 + $0x12f0] sm:$0xf0] }
 0x332   :  { %v7492_v48 = vor.u32 %v8233_v35, %v7489_v21  ;;  %v7239_v35 = vld [vmem:[#allocation5 + $0x10e8] sm:$0xf]  ;;  %v8172_v21 = vld [vmem:[#allocation5 + $0x10f4] sm:$0xf0] }
 0x333   :  { %4046 = vmatpush.bf16.msrb.mxu3 %v7052_v61  ;;  %v8161_v61 = vld [vmem:[#allocation5 + $0x10a4] sm:$0xf] }
 0x334   :  { %4869 = vmatpush.bf16.msra.mxu2 %v7424_v51 }
 0x337   :  { %4047 = vmatpush.bf16.msrb.mxu3 %v7036_v15  ;;  %v7204_v15 = vor.u32 %v8161_v61, %v7201_v13  ;;  %v7376_v13 = vor.u32 %v8207_v11, %v7375_v10 }
 0x33b   :  { %4048 = vmatpush.bf16.msrb.mxu3 %v7020_v47  ;;  %v7185_v47 = vld [vmem:[#allocation5 + $0x1090] sm:$0xf0] }
 0x33c   :  { %v7188_v23 = vor.u32 %v8157_v25, %v7185_v47  ;;  %v7599_v25 = vld [vmem:[#allocation5 + $0x13c0] sm:$0xf]  ;;  %v8263_v47 = vld [vmem:[#allocation5 + $0x13cc] sm:$0xf0] }
 0x33f   :  { %4049 = vmatpush.bf16.msrb.mxu3 %v7004_v27  ;;  %v8624_v31 = vpop.f32.mrf.mxu0  ;;  %v7247_v27 = vld [vmem:[#allocation5 + $0x1100] sm:$0xf] }
 0x340   :  { %v7248_v30 = vor.u32 %v8175_v28, %v7247_v27  ;;  %v8229_v27 = vld [vmem:[#allocation5 + $0x12c4] sm:$0xf] }
 0x342   :  { %4050 = vmatmul.bf16.vlgmr.msrb.gmra.mxu3 %v8614_v6  ;;  %v7119_v6 = vld [vmem:[#allocation5 + $0x1000] sm:$0xf]  ;;  %4859 = vmatpush.bf16.msra.mxu1 %v7248_v30  ;;  %v7473_v30 = vld [vmem:[#allocation5 + $0x12d0] sm:$0xf0] }
 0x343   :  { %v7120_v57 = vor.u32 %v8143_v56, %v7119_v6  ;;  %v7408_v56 = vor.u32 %v8215_v53, %v7407_v3  ;;  %4878 = vmatpush.bf16.msra.mxu3 %v7616_v36  ;;  %v7476_v4 = vor.u32 %v8229_v27, %v7473_v30  ;;  %v8221_v3 = vld [vmem:[#allocation5 + $0x1284] sm:$0xf]  ;;  %v7393_v36 = vld [vmem:[#allocation5 + $0x1230] sm:$0xf0] }
 0x344   :  { %v8205_v27 = vld [vmem:[#allocation5 + $0x1204] sm:$0xf] }
 0x345   :  { %4846 = vmatpush.bf16.msra.mxu0 %v7120_v57  ;;  %v8145_v57 = vld [vmem:[#allocation5 + $0x1024] sm:$0xf]  ;;  %4870 = vmatpush.bf16.msra.mxu2 %v7408_v56  ;;  %v7441_v56 = vld [vmem:[#allocation5 + $0x1290] sm:$0xf0] }
 0x346   :  { %4904 = vmatpush.bf16.msrb.mxu1 %v7364_v43  ;;  %v7140_v37 = vor.u32 %v8145_v57, %v7137_v58  ;;  %v8225_v43 = vld [vmem:[#allocation5 + $0x12a4] sm:$0xf]  ;;  %v8640_v57 = vld [vmem:[#allocation7 + $0xc] sm:$0xf]  ;;  %v7444_v58 = vor.u32 %v8221_v3, %v7441_v56  ;;  %v8160_v56 = vld [vmem:[#allocation5 + $0x1094] sm:$0xf0] }
 0x347   :  { %v3858_v54 = vpop.f32.mrf.mxu0  ;;  %v7460_v51 = vor.u32 %v8225_v43, %v7457_v16  ;;  %v3200_v45 = vperm.slane %v8640_v57, 1  ;;  %v8164_v16 = vld [vmem:[#allocation5 + $0x10b4] sm:$0xf0] }
 0x348   :  { %v7348_v54 = vor.u32 %v8197_v18, %v7345_v17  ;;  %v7568_v18 = vor.u32 %v8255_v1, %v7567_v0  ;;  %v7249_v17 = vld [vmem:[#allocation5 + $0x1110] sm:$0xf0] }
 0x349   :  { %4891 = vmatpush.bf16.msrb.mxu0 %v7236_v52  ;;  %v7332_v52 = vor.u32 %v8193_v2, %v7329_v59  ;;  %4871 = vmatpush.bf16.msra.mxu2 %v7392_v33  ;;  %v8251_v59 = vld [vmem:[#allocation5 + $0x136c] sm:$0xf0]  ;;  %v3199_v33 = vperm.slane %v8640_v57, 0  ;;  %v7601_v0 = vld [vmem:[#allocation5 + $0x13d0] sm:$0xf0] }
 0x34a   :  { %4905 = vmatpush.bf16.msrb.mxu1 %v7348_v54 }
 0x34b   :  { %v3857_v10 = vadd.f32 %v8624_v31, %v3199_v33  ;;  %v7503_v31 = vld [vmem:[#allocation5 + $0x1300] sm:$0xf]  ;;  %v8156_v33 = vld [vmem:[#allocation5 + $0x1074] sm:$0xf0] }
 0x34d   :  { %4892 = vmatpush.bf16.msrb.mxu0 %v7220_v55  ;;  %v7313_v55 = vld [vmem:[#allocation5 + $0x1190] sm:$0xf0]  ;;  %4872 = vmatpush.bf16.msra.mxu2 %v7376_v13  ;;  %v7519_v13 = vld [vmem:[#allocation5 + $0x1320] sm:$0xf] }
 0x34e   :  { %4906 = vmatpush.bf16.msrb.mxu1 %v7332_v52  ;;  %v7316_v63 = vor.u32 %v8189_v38, %v7313_v55  ;;  %v8247_v38 = vld [vmem:[#allocation5 + $0x134c] sm:$0xf0] }
 0x34f   :  { %v8626_v19 = vpop.f32.mrf.mxu1  ;;  %v8628_v9 = vpop.f32.mrf.mxu0  ;;  %v7536_v55 = vor.u32 %v8247_v38, %v7535_v40  ;;  %v8204_v38 = vld [vmem:[#allocation5 + $0x11f4] sm:$0xf0] }
 0x350   :  { %v3909_v3 = vadd.f32 %v8628_v9, %v3200_v45  ;;  %v8253_v9 = vld [vmem:[#allocation5 + $0x1384] sm:$0xf] }
 0x351   :  { %4893 = vmatpush.bf16.msrb.mxu0 %v7204_v15  ;;  %v8185_v15 = vld [vmem:[#allocation5 + $0x1164] sm:$0xf]  ;;  %4917 = vmatpush.bf16.msrb.mxu2 %v7492_v48 }
 0x352   :  { %4907 = vmatpush.bf16.msrb.mxu1 %v7316_v63  ;;  %v7300_v20 = vor.u32 %v8185_v15, %v7297_v49  ;;  %v8213_v63 = vld [vmem:[#allocation5 + $0x1244] sm:$0xf]  ;;  %v7520_v15 = vor.u32 %v8243_v14, %v7519_v13  ;;  %v8152_v13 = vld [vmem:[#allocation5 + $0x1054] sm:$0xf0] }
 0x353   :  { %v8209_v49 = vld [vmem:[#allocation5 + $0x1224] sm:$0xf] }
 0x354   :  { %v7396_v48 = vor.u32 %v8209_v49, %v7393_v36  ;;  %v8200_v49 = vld [vmem:[#allocation5 + $0x11d4] sm:$0xf0]  ;;  %v8249_v36 = vld [vmem:[#allocation5 + $0x1364] sm:$0xf] }
 0x355   :  { %4894 = vmatpush.bf16.msrb.mxu0 %v7188_v23  ;;  %v7600_v23 = vor.u32 %v8263_v47, %v7599_v25  ;;  %4918 = vmatpush.bf16.msrb.mxu2 %v7476_v4  ;;  %v7223_v4 = vld [vmem:[#allocation5 + $0x10c8] sm:$0xf]  ;;  %v8241_v45 = vld [vmem:[#allocation5 + $0x1324] sm:$0xf] }
 0x356   :  { %4908 = vmatpush.bf16.msrb.mxu1 %v7300_v20 }
 0x357   :  { %v3871_v26 = vpop.f32.mrf.mxu1  ;;  %v3910_v50 = vpop.f32.mrf.mxu0  ;;  %4879 = vmatpush.bf16.msra.mxu3 %v7600_v23  ;;  %v8239_v23 = vld [vmem:[#allocation5 + $0x130c] sm:$0xf0] }
 0x358   :  { %v8181_v26 = vld [vmem:[#allocation5 + $0x1144] sm:$0xf]  ;;  %v7281_v50 = vld [vmem:[#allocation5 + $0x1150] sm:$0xf0] }
 0x359   :  { %4895 = vmatpush.bf16.msrb.mxu0 %v7172_v44  ;;  %v7284_v29 = vor.u32 %v8181_v26, %v7281_v50  ;;  %v7584_v44 = vor.u32 %v8259_v41, %v7583_v39  ;;  %4919 = vmatpush.bf16.msrb.mxu2 %v7460_v51  ;;  %v7240_v50 = vor.u32 %v8172_v21, %v7239_v35  ;;  %v8168_v39 = vld [vmem:[#allocation5 + $0x10d4] sm:$0xf0]  ;;  %v7617_v41 = vld [vmem:[#allocation5 + $0x13f0] sm:$0xf0]  ;;  %v8261_v51 = vld [vmem:[#allocation5 + $0x13c4] sm:$0xf] }
 0x35a   :  { %v7224_v43 = vor.u32 %v8168_v39, %v7223_v4  ;;  %v3201_v35 = vperm.slane %v8640_v57, 2  ;;  %v7127_v4 = vld [vmem:[#allocation5 + $0x1008] sm:$0xf]  ;;  %v8144_v39 = vld [vmem:[#allocation5 + $0x1014] sm:$0xf0] }
 0x35b   :  { %4909 = vmatpush.bf16.msrb.mxu1 %v7284_v29  ;;  %4880 = vmatpush.bf16.msra.mxu3 %v7584_v44  ;;  %v8265_v29 = vld [vmem:[#allocation5 + $0x13e4] sm:$0xf] }
 0x35c   :  { %v7620_v42 = vor.u32 %v8265_v29, %v7617_v41 }
 0x35d   :  { %4896 = vmatpush.bf16.msrb.mxu0 %v7156_v22  ;;  %v8173_v22 = vld [vmem:[#allocation5 + $0x1104] sm:$0xf]  ;;  %4920 = vmatpush.bf16.msrb.mxu2 %v7444_v58 }
 0x35e   :  { %v7252_v54 = vor.u32 %v8173_v22, %v7249_v17  ;;  %v7191_v17 = vld [vmem:[#allocation5 + $0x1088] sm:$0xf]  ;;  %v8257_v58 = vld [vmem:[#allocation5 + $0x13a4] sm:$0xf] }
 0x35f   :  { %v8630_v6 = vpop.f32.mrf.mxu1  ;;  %4910 = vmatpush.bf16.msrb.mxu1 %v7268_v46  ;;  %4881 = vmatpush.bf16.msra.mxu3 %v7568_v18  ;;  %v7207_v46 = vld [vmem:[#allocation5 + $0x10a8] sm:$0xf]  ;;  %v7604_v18 = vor.u32 %v8261_v51, %v7601_v0  ;;  %v7192_v60 = vor.u32 %v8160_v56, %v7191_v17  ;;  %v8188_v17 = vld [vmem:[#allocation5 + $0x1174] sm:$0xf0] }
 0x360   :  { %v7208_v22 = vor.u32 %v8164_v16, %v7207_v46  ;;  %v8170_v46 = vld [vmem:[#allocation5 + $0x10ec] sm:$0xf]  ;;  %v7241_v16 = vld [vmem:[#allocation5 + $0x10f8] sm:$0xf0] }
 0x361   :  { %v8632_v8 = vpop.f32.mrf.mxu0  ;;  %4897 = vmatpush.bf16.msrb.mxu0 %v7140_v37  ;;  %v7551_v37 = vld [vmem:[#allocation5 + $0x1360] sm:$0xf]  ;;  %4921 = vmatpush.bf16.msrb.mxu2 %v7428_v32  ;;  %v7367_v32 = vld [vmem:[#allocation5 + $0x11e8] sm:$0xf]  ;;  %v7244_v56 = vor.u32 %v8170_v46, %v7241_v16  ;;  %v7161_v46 = vld [vmem:[#allocation5 + $0x1058] sm:$0xf0] }
 0x362   :  { %v7552_v52 = vor.u32 %v8251_v59, %v7551_v37  ;;  %v3961_v41 = vadd.f32 %v8632_v8, %v3201_v35  ;;  %v8237_v8 = vld [vmem:[#allocation5 + $0x1304] sm:$0xf]  ;;  %v7193_v35 = vld [vmem:[#allocation5 + $0x1098] sm:$0xf0]  ;;  %v8198_v16 = vld [vmem:[#allocation5 + $0x11cc] sm:$0xf] }
 0x363   :  { %4911 = vmatpush.bf16.msrb.mxu1 %v7252_v54 }
 0x364   :  { %4882 = vmatpush.bf16.msra.mxu3 %v7552_v52  ;;  %v3922_v52 = vadd.f32 %v8630_v6, %v3909_v3  ;;  %v7351_v6 = vld [vmem:[#allocation5 + $0x11c8] sm:$0xf] }
 0x365   :  { %v8634_v5 = vpop.f32.mrf.mxu2  ;;  %4898 = vmatpush.bf16.msrb.mxu0 %v7124_v7 }
 0x367   :  { %v3923_v24 = vpop.f32.mrf.mxu1 }
 0x368   :  { %v7409_v24 = vld [vmem:[#allocation5 + $0x1250] sm:$0xf0]  ;;  %4883 = vmatpush.bf16.msra.mxu3 %v7536_v55 }
 0x369   :  { %v3962_v61 = vpop.f32.mrf.mxu0  ;;  %v7412_v12 = vor.u32 %v8213_v63, %v7409_v24  ;;  %v7569_v55 = vld [vmem:[#allocation5 + $0x1390] sm:$0xf0] }
 0x36a   :  { %v3870_v61 = vadd.f32 %v8626_v19, %v3857_v10  ;;  %v7504_v19 = vor.u32 %v8239_v23, %v7503_v31  ;;  %v7572_v24 = vor.u32 %v8253_v9, %v7569_v55  ;;  %v7335_v31 = vld [vmem:[#allocation5 + $0x11a8] sm:$0xf]  ;;  %v8196_v23 = vld [vmem:[#allocation5 + $0x11b4] sm:$0xf0] }
 0x36b   :  { %4922 = vmatpush.bf16.msrb.mxu2 %v7412_v12  ;;  %v7368_v12 = vor.u32 %v8204_v38, %v7367_v32  ;;  %v7336_v29 = vor.u32 %v8196_v23, %v7335_v31  ;;  %v7287_v9 = vld [vmem:[#allocation5 + $0x1148] sm:$0xf]  ;;  %v8184_v55 = vld [vmem:[#allocation5 + $0x1154] sm:$0xf0] }
 0x36c   :  { %v3883_v20 = vadd.f32 %v8634_v5, %v3870_v61  ;;  %4884 = vmatpush.bf16.msra.mxu3 %v7520_v15  ;;  %v7159_v61 = vld [vmem:[#allocation5 + $0x1048] sm:$0xf]  ;;  %v8176_v23 = vld [vmem:[#allocation5 + $0x1114] sm:$0xf0] }
 0x36d   :  { %v3884_v28 = vpop.f32.mrf.mxu2  ;;  %v7160_v21 = vor.u32 %v8152_v13, %v7159_v61  ;;  %v7255_v31 = vld [vmem:[#allocation5 + $0x1108] sm:$0xf] }
 0x36e   :  { %v7377_v28 = vld [vmem:[#allocation5 + $0x1210] sm:$0xf0] }
 0x36f   :  { %v8636_v34 = vpop.f32.mrf.mxu1  ;;  %4923 = vmatpush.bf16.msrb.mxu2 %v7396_v48  ;;  %v7380_v5 = vor.u32 %v8205_v27, %v7377_v28  ;;  %v7352_v48 = vor.u32 %v8200_v49, %v7351_v6  ;;  %v7271_v6 = vld [vmem:[#allocation5 + $0x1128] sm:$0xf] }
 0x370   :  { %4885 = vmatpush.bf16.msra.mxu3 %v7504_v19  ;;  %v3974_v0 = vadd.f32 %v8636_v34, %v3961_v41  ;;  %v7463_v49 = vld [vmem:[#allocation5 + $0x12a8] sm:$0xf] }
 0x371   :  { %v7431_v41 = vld [vmem:[#allocation5 + $0x1268] sm:$0xf] }
 0x373   :  { %4924 = vmatpush.bf16.msrb.mxu2 %v7380_v5  ;;  %v7319_v5 = vld [vmem:[#allocation5 + $0x1188] sm:$0xf] }
 0x374   :  { %4930 = vmatpush.bf16.msrb.mxu3 %v7620_v42  ;;  %v8192_v42 = vld [vmem:[#allocation5 + $0x1194] sm:$0xf0] }
 0x375   :  { %v8638_v53 = vpop.f32.mrf.mxu2 }
 0x376   :  { %v3935_v40 = vadd.f32 %v8638_v53, %v3922_v52  ;;  %v7553_v53 = vld [vmem:[#allocation5 + $0x1370] sm:$0xf0]  ;;  %v8166_v52 = vld [vmem:[#allocation5 + $0x10cc] sm:$0xf] }
 0x377   :  { %v3975_v2 = vpop.f32.mrf.mxu1 }
 0x378   :  { %4931 = vmatpush.bf16.msrb.mxu3 %v7604_v18  ;;  %v7585_v2 = vld [vmem:[#allocation5 + $0x13b0] sm:$0xf0]  ;;  %v7320_v18 = vor.u32 %v8192_v42, %v7319_v5 }
 0x379   :  { %v7588_v59 = vor.u32 %v8257_v58, %v7585_v2  ;;  %v7495_v58 = vld [vmem:[#allocation5 + $0x12e8] sm:$0xf]  ;;  %v7505_v2 = vld [vmem:[#allocation5 + $0x1310] sm:$0xf0] }
 0x37c   :  { %4932 = vmatpush.bf16.msrb.mxu3 %v7588_v59  ;;  %v8236_v59 = vld [vmem:[#allocation5 + $0x12f4] sm:$0xf0] }
 0x37d   :  { %v3936_v11 = vpop.f32.mrf.mxu2 }
 0x37e   :  { %v7176_v11 = vor.u32 %v8156_v33, %v7175_v62  ;;  %v7508_v62 = vor.u32 %v8237_v8, %v7505_v2  ;;  %v8194_v8 = vld [vmem:[#allocation5 + $0x11ac] sm:$0xf]  ;;  %v7337_v2 = vld [vmem:[#allocation5 + $0x11b8] sm:$0xf0] }
 0x37f   :  { %v8643_v7 = vpop.f32.mrf.mxu0 }
 0x380   :  { %4933 = vmatpush.bf16.msrb.mxu3 %v7572_v24  ;;  %v8232_v24 = vld [vmem:[#allocation5 + $0x12d4] sm:$0xf0] }
 0x385   :  { %v3895_v25 = vpop.f32.mrf.mxu3 }
 0x386   :  { %v3896_v47 = vadd.f32 %v3895_v25, %v3883_v20  ;;  %v7556_v20 = vor.u32 %v8249_v36, %v7553_v53  ;;  %v7143_v25 = vld [vmem:[#allocation5 + $0x1028] sm:$0xf]  ;;  %v8228_v53 = vld [vmem:[#allocation5 + $0x12b4] sm:$0xf0] }
 0x387   :  { %v4014_v26 = vpop.f32.mrf.mxu0 }
 0x388   :  { %v8648_v30 = vpack.c.bf16 %v3896_v47, %v3896_v47  ;;  %v8650_v44 = vpop.f32.mrf.mxu2  ;;  %v8148_v47 = vld [vmem:[#allocation5 + $0x1034] sm:$0xf0]  ;;  %4934 = vmatpush.bf16.msrb.mxu3 %v7556_v20  ;;  %v8245_v26 = vld [vmem:[#allocation5 + $0x1344] sm:$0xf]  ;;  %v8158_v20 = vld [vmem:[#allocation5 + $0x108c] sm:$0xf] }
 0x389   :  { %v7144_v28 = vor.u32 %v8148_v47, %v7143_v25  ;;  %v3987_v3 = vadd.f32 %v8650_v44, %v3974_v0  ;;  %v7496_v44 = vor.u32 %v8236_v59, %v7495_v58  ;;  %v7464_v25 = vor.u32 %v8228_v53, %v7463_v49  ;;  %v7145_v58 = vld [vmem:[#allocation5 + $0x1038] sm:$0xf0]  ;;  %v7399_v59 = vld [vmem:[#allocation5 + $0x1228] sm:$0xf]  ;;  %v8234_v49 = vld [vmem:[#allocation5 + $0x12ec] sm:$0xf] }
 0x38a   :  { %4847 = vmatmul.bf16.vlgmr.msra.gmra.mxu0 %v8648_v30  ;;  %v7196_v47 = vor.u32 %v8158_v20, %v7193_v35  ;;  %v3202_v0 = vperm.slane %v8640_v57, 3 }
 0x38b   :  { %4943 = vmatpush.bf16.msra.mxu0 %v7240_v50  ;;  %v7537_v50 = vld [vmem:[#allocation5 + $0x1350] sm:$0xf0] }
 0x38c   :  { %v7540_v27 = vor.u32 %v8245_v26, %v7537_v50  ;;  %v7447_v26 = vld [vmem:[#allocation5 + $0x1288] sm:$0xf]  ;;  %v8224_v50 = vld [vmem:[#allocation5 + $0x1294] sm:$0xf0] }
 0x38d   :  { %v3897_v1 = vpop.f32.mrf.mxu3 }
 0x38e   :  { %4935 = vmatpush.bf16.msrb.mxu3 %v7540_v27  ;;  %v7128_v1 = vor.u32 %v8144_v39, %v7127_v4  ;;  %v7177_v27 = vld [vmem:[#allocation5 + $0x1078] sm:$0xf0]  ;;  %v7256_v4 = vor.u32 %v8176_v23, %v7255_v31  ;;  %v7448_v39 = vor.u32 %v8224_v50, %v7447_v26  ;;  %v8230_v23 = vld [vmem:[#allocation5 + $0x12cc] sm:$0xf] }
 0x38f   :  { %4944 = vmatpush.bf16.msra.mxu0 %v7224_v43  ;;  %v8655_v54 = vpop.f32.mrf.mxu1  ;;  %v7521_v43 = vld [vmem:[#allocation5 + $0x1330] sm:$0xf0]  ;;  %v7289_v31 = vld [vmem:[#allocation5 + $0x1158] sm:$0xf0] }
 0x390   :  { %v3988_v37 = vpop.f32.mrf.mxu2  ;;  %v7524_v51 = vor.u32 %v8241_v45, %v7521_v43  ;;  %v8220_v45 = vld [vmem:[#allocation5 + $0x1274] sm:$0xf0]  ;;  %v8150_v43 = vld [vmem:[#allocation5 + $0x104c] sm:$0xf]  ;;  %v7481_v26 = vld [vmem:[#allocation5 + $0x12d8] sm:$0xf0] }
 0x392   :  { %4936 = vmatpush.bf16.msrb.mxu3 %v7524_v51  ;;  %v7353_v51 = vld [vmem:[#allocation5 + $0x11d8] sm:$0xf0] }
 0x393   :  { %4945 = vmatpush.bf16.msra.mxu0 %v7208_v22  ;;  %v7303_v22 = vld [vmem:[#allocation5 + $0x1168] sm:$0xf] }
 0x394   :  { %v7304_v32 = vor.u32 %v8188_v17, %v7303_v22  ;;  %v7415_v22 = vld [vmem:[#allocation5 + $0x1248] sm:$0xf]  ;;  %v7356_v17 = vor.u32 %v8198_v16, %v7353_v51  ;;  %v8256_v16 = vld [vmem:[#allocation5 + $0x1394] sm:$0xf0]  ;;  %v8174_v51 = vld [vmem:[#allocation5 + $0x110c] sm:$0xf] }
 0x395   :  { %v3947_v63 = vpop.f32.mrf.mxu3 }
 0x396   :  { %v3948_v10 = vadd.f32 %v3947_v63, %v3935_v40  ;;  %v7479_v63 = vld [vmem:[#allocation5 + $0x12c8] sm:$0xf]  ;;  %4937 = vmatpush.bf16.msrb.mxu3 %v7508_v62  ;;  %v8212_v62 = vld [vmem:[#allocation5 + $0x1234] sm:$0xf0] }
 0x397   :  { %4946 = vmatpush.bf16.msra.mxu0 %v7192_v60  ;;  %v4027_v15 = vpop.f32.mrf.mxu1  ;;  %v7225_v60 = vld [vmem:[#allocation5 + $0x10d8] sm:$0xf0]  ;;  %v7480_v61 = vor.u32 %v8232_v24, %v7479_v63  ;;  %v7383_v24 = vld [vmem:[#allocation5 + $0x1208] sm:$0xf] }
 0x398   :  { %v8659_v14 = vpack.c.bf16 %v3948_v10, %v3948_v10  ;;  %v7228_v38 = vor.u32 %v8166_v52, %v7225_v60  ;;  %v8162_v10 = vld [vmem:[#allocation5 + $0x10ac] sm:$0xf]  ;;  %v8180_v15 = vld [vmem:[#allocation5 + $0x1134] sm:$0xf0]  ;;  %v4013_v52 = vadd.f32 %v8643_v7, %v3202_v0  ;;  %v7340_v60 = vor.u32 %v8194_v8, %v7337_v2  ;;  %v7623_v7 = vld [vmem:[#allocation5 + $0x13e8] sm:$0xf] }
 0x399   :  { %v7257_v0 = vld [vmem:[#allocation5 + $0x1118] sm:$0xf0]  ;;  %v8218_v8 = vld [vmem:[#allocation5 + $0x126c] sm:$0xf] }
 0x39a   :  { %4860 = vmatmul.bf16.vlgmr.msra.gmra.mxu1 %v8659_v14  ;;  %4899 = vmatmul.bf16.vlgmr.msrb.gmra.mxu0 %v8648_v30  ;;  %v7433_v2 = vld [vmem:[#allocation5 + $0x1278] sm:$0xf0] }
 0x39b   :  { %4947 = vmatpush.bf16.msra.mxu0 %v7176_v11  ;;  %4956 = vmatpush.bf16.msra.mxu1 %v7368_v12  ;;  %v7209_v11 = vld [vmem:[#allocation5 + $0x10b8] sm:$0xf0]  ;;  %v7288_v12 = vor.u32 %v8184_v55, %v7287_v9  ;;  %v4026_v9 = vadd.f32 %v8655_v54, %v4013_v52  ;;  %v7400_v55 = vor.u32 %v8212_v62, %v7399_v59  ;;  %v7543_v59 = vld [vmem:[#allocation5 + $0x1348] sm:$0xf]  ;;  %v8248_v52 = vld [vmem:[#allocation5 + $0x1354] sm:$0xf0] }
 0x39c   :  { %v7212_v13 = vor.u32 %v8162_v10, %v7209_v11  ;;  %v8208_v10 = vld [vmem:[#allocation5 + $0x1214] sm:$0xf0]  ;;  %v7417_v62 = vld [vmem:[#allocation5 + $0x1258] sm:$0xf0] }
 0x39d   :  { %v3949_v19 = vpop.f32.mrf.mxu3  ;;  %v7384_v54 = vor.u32 %v8208_v10, %v7383_v24  ;;  %v7511_v10 = vld [vmem:[#allocation5 + $0x1308] sm:$0xf] }
 0x39e   :  { %v8154_v19 = vld [vmem:[#allocation5 + $0x106c] sm:$0xf] }
 0x39f   :  { %4948 = vmatpush.bf16.msra.mxu0 %v7160_v21  ;;  %4957 = vmatpush.bf16.msra.mxu1 %v7352_v48  ;;  %v7272_v48 = vor.u32 %v8180_v15, %v7271_v6  ;;  %v7180_v5 = vor.u32 %v8154_v19, %v7177_v27  ;;  %v7305_v15 = vld [vmem:[#allocation5 + $0x1178] sm:$0xf0]  ;;  %v7484_v27 = vor.u32 %v8230_v23, %v7481_v26  ;;  %v8246_v26 = vld [vmem:[#allocation5 + $0x134c] sm:$0xf] }
 0x3a3   :  { %4949 = vmatpush.bf16.msra.mxu0 %v7144_v28  ;;  %4958 = vmatpush.bf16.msra.mxu1 %v7336_v29  ;;  %v8202_v28 = vld [vmem:[#allocation5 + $0x11ec] sm:$0xf]  ;;  %v7369_v29 = vld [vmem:[#allocation5 + $0x11f8] sm:$0xf0] }
 0x3a4   :  { %v7372_v42 = vor.u32 %v8202_v28, %v7369_v29  ;;  %v7591_v28 = vld [vmem:[#allocation5 + $0x13a8] sm:$0xf]  ;;  %v8260_v29 = vld [vmem:[#allocation5 + $0x13b4] sm:$0xf0] }
 0x3a5   :  { %v3999_v37 = vpop.f32.mrf.mxu3 }
 0x3a6   :  { %v4000_v33 = vadd.f32 %v3999_v37, %v3987_v3  ;;  %v8667_v34 = vpop.f32.mrf.mxu2  ;;  %v8216_v3 = vld [vmem:[#allocation5 + $0x1254] sm:$0xf0] }
 0x3a7   :  { %4950 = vmatpush.bf16.msra.mxu0 %v7128_v1  ;;  %4959 = vmatpush.bf16.msra.mxu1 %v7320_v18  ;;  %v7432_v1 = vor.u32 %v8220_v45, %v7431_v41  ;;  %v7164_v18 = vor.u32 %v8150_v43, %v7161_v46  ;;  %v7416_v37 = vor.u32 %v8216_v3, %v7415_v22  ;;  %v8226_v41 = vld [vmem:[#allocation5 + $0x12ac] sm:$0xf]  ;;  %v7575_v46 = vld [vmem:[#allocation5 + $0x1388] sm:$0xf] }
 0x3a8   :  { %v8669_v40 = vpack.c.bf16 %v4000_v33, %v4000_v33  ;;  %v8142_v33 = vld [vmem:[#allocation5 + $0x100c] sm:$0xf]  ;;  %v4039_v11 = vadd.f32 %v8667_v34, %v4026_v9  ;;  %v7607_v34 = vld [vmem:[#allocation5 + $0x13c8] sm:$0xf]  ;;  %v7592_v45 = vor.u32 %v8260_v29, %v7591_v28  ;;  %v7576_v22 = vor.u32 %v8256_v16, %v7575_v46  ;;  %v7529_v28 = vld [vmem:[#allocation5 + $0x1338] sm:$0xf0] }
 0x3a9   :  { %v8210_v9 = vld [vmem:[#allocation5 + $0x122c] sm:$0xf] }
 0x3aa   :  { %4873 = vmatmul.bf16.vlgmr.msra.gmra.mxu2 %v8669_v40  ;;  %4912 = vmatmul.bf16.vlgmr.msrb.gmra.mxu1 %v8659_v14 }
 0x3ab   :  { %4995 = vmatpush.bf16.msrb.mxu0 %v7244_v56  ;;  %4960 = vmatpush.bf16.msra.mxu1 %v7304_v32  ;;  %v8146_v56 = vld [vmem:[#allocation5 + $0x102c] sm:$0xf]  ;;  %v7129_v32 = vld [vmem:[#allocation5 + $0x1018] sm:$0xf0] }
 0x3ac   :  { %4951 = vmatmul.bf16.vlgmr.msra.gmra.mxu0 %v8648_v30  ;;  %4969 = vmatpush.bf16.msra.mxu2 %v7496_v44  ;;  %v7148_v57 = vor.u32 %v8146_v56, %v7145_v58  ;;  %v8190_v44 = vld [vmem:[#allocation5 + $0x118c] sm:$0xf]  ;;  %v7132_v63 = vor.u32 %v8142_v33, %v7129_v32  ;;  %v7559_v56 = vld [vmem:[#allocation5 + $0x1368] sm:$0xf]  ;;  %v8252_v58 = vld [vmem:[#allocation5 + $0x1374] sm:$0xf0]  ;;  %v7544_v33 = vor.u32 %v8248_v52, %v7543_v59 }
 0x3ad   :  { %v4001_v36 = vpop.f32.mrf.mxu3 }
 0x3ae   :  { %v4040_v21 = vpop.f32.mrf.mxu2  ;;  %v7497_v36 = vld [vmem:[#allocation5 + $0x12f8] sm:$0xf0] }
 0x3af   :  { %4996 = vmatpush.bf16.msrb.mxu0 %v7228_v38  ;;  %4961 = vmatpush.bf16.msra.mxu1 %v7288_v12  ;;  %v7321_v38 = vld [vmem:[#allocation5 + $0x1198] sm:$0xf0] }
 0x3b0   :  { %4970 = vmatpush.bf16.msra.mxu2 %v7480_v61  ;;  %v7324_v12 = vor.u32 %v8190_v44, %v7321_v38  ;;  %v8268_v61 = vld [vmem:[#allocation5 + $0x13f4] sm:$0xf0]  ;;  %v7527_v44 = vld [vmem:[#allocation5 + $0x1328] sm:$0xf] }
 0x3b1   :  { %v7624_v20 = vor.u32 %v8268_v61, %v7623_v7  ;;  %v8244_v38 = vld [vmem:[#allocation5 + $0x1334] sm:$0xf0]  ;;  %v7385_v7 = vld [vmem:[#allocation5 + $0x1218] sm:$0xf0]  ;;  %v8266_v61 = vld [vmem:[#allocation5 + $0x13ec] sm:$0xf] }
 0x3b3   :  { %4997 = vmatpush.bf16.msrb.mxu0 %v7212_v13  ;;  %4962 = vmatpush.bf16.msra.mxu1 %v7272_v48  ;;  %v8186_v13 = vld [vmem:[#allocation5 + $0x116c] sm:$0xf]  ;;  %v7500_v48 = vor.u32 %v8234_v49, %v7497_v36  ;;  %v7609_v36 = vld [vmem:[#allocation5 + $0x13d8] sm:$0xf0] }
 0x3b4   :  { %4971 = vmatpush.bf16.msra.mxu2 %v7464_v25  ;;  %v7308_v21 = vor.u32 %v8186_v13, %v7305_v15  ;;  %v8264_v25 = vld [vmem:[#allocation5 + $0x13d4] sm:$0xf0]  ;;  %v7625_v13 = vld [vmem:[#allocation5 + $0x13f8] sm:$0xf0]  ;;  %v8262_v49 = vld [vmem:[#allocation5 + $0x13cc] sm:$0xf] }
 0x3b5   :  { %v7608_v50 = vor.u32 %v8264_v25, %v7607_v34  ;;  %v7628_v15 = vor.u32 %v8266_v61, %v7625_v13  ;;  %v7577_v34 = vld [vmem:[#allocation5 + $0x1398] sm:$0xf0] }
 0x3b7   :  { %4998 = vmatpush.bf16.msrb.mxu0 %v7196_v47  ;;  %4963 = vmatpush.bf16.msra.mxu1 %v7256_v4  ;;  %v8182_v47 = vld [vmem:[#allocation5 + $0x114c] sm:$0xf] }
 0x3b8   :  { %4972 = vmatpush.bf16.msra.mxu2 %v7448_v39  ;;  %v7292_v19 = vor.u32 %v8182_v47, %v7289_v31  ;;  %v8178_v4 = vld [vmem:[#allocation5 + $0x112c] sm:$0xf]  ;;  %v7561_v31 = vld [vmem:[#allocation5 + $0x1378] sm:$0xf0] }
 0x3b9   :  { %v8250_v47 = vld [vmem:[#allocation5 + $0x136c] sm:$0xf] }
 0x3ba   :  { %4925 = vmatmul.bf16.vlgmr.msrb.gmra.mxu2 %v8669_v40  ;;  %4964 = vmatmul.bf16.vlgmr.msra.gmra.mxu1 %v8659_v14  ;;  %v7564_v23 = vor.u32 %v8250_v47, %v7561_v31 }
 0x3bb   :  { %4999 = vmatpush.bf16.msrb.mxu0 %v7180_v5  ;;  %5008 = vmatpush.bf16.msrb.mxu1 %v7372_v42  ;;  %v7273_v5 = vld [vmem:[#allocation5 + $0x1138] sm:$0xf0] }
 0x3bc   :  { %4973 = vmatpush.bf16.msra.mxu2 %v7432_v1  ;;  %v7465_v42 = vld [vmem:[#allocation5 + $0x12b8] sm:$0xf0]  ;;  %v8222_v1 = vld [vmem:[#allocation5 + $0x128c] sm:$0xf] }
 0x3bd   :  { %v7468_v43 = vor.u32 %v8226_v41, %v7465_v42 }
 0x3bf   :  { %5000 = vmatpush.bf16.msrb.mxu0 %v7164_v18  ;;  %5009 = vmatpush.bf16.msrb.mxu1 %v7356_v17  ;;  %v7449_v18 = vld [vmem:[#allocation5 + $0x1298] sm:$0xf0]  ;;  %v7260_v17 = vor.u32 %v8174_v51, %v7257_v0 }
 0x3c0   :  { %4974 = vmatpush.bf16.msra.mxu2 %v7416_v37  ;;  %v7452_v3 = vor.u32 %v8222_v1, %v7449_v18  ;;  %v7560_v37 = vor.u32 %v8252_v58, %v7559_v56 }
 0x3c3   :  { %5001 = vmatpush.bf16.msrb.mxu0 %v7148_v57  ;;  %5010 = vmatpush.bf16.msrb.mxu1 %v7340_v60  ;;  %v7436_v57 = vor.u32 %v8218_v8, %v7433_v2  ;;  %v8214_v60 = vld [vmem:[#allocation5 + $0x124c] sm:$0xf] }
 0x3c4   :  { %4975 = vmatpush.bf16.msra.mxu2 %v7400_v55  ;;  %v7420_v32 = vor.u32 %v8214_v60, %v7417_v62  ;;  %v7401_v55 = vld [vmem:[#allocation5 + $0x1238] sm:$0xf0] }
 0x3c5   :  { %v4051_v6 = vpop.f32.mrf.mxu3  ;;  %v7404_v24 = vor.u32 %v8210_v9, %v7401_v55 }
 0x3c6   :  { %v4052_v53 = vadd.f32 %v4051_v6, %v4039_v11  ;;  %v8240_v11 = vld [vmem:[#allocation5 + $0x1314] sm:$0xf0] }
 0x3c7   :  { %5002 = vmatpush.bf16.msrb.mxu0 %v7132_v63  ;;  %5011 = vmatpush.bf16.msrb.mxu1 %v7324_v12  ;;  %v7528_v63 = vor.u32 %v8244_v38, %v7527_v44  ;;  %v8206_v12 = vld [vmem:[#allocation5 + $0x120c] sm:$0xf]  ;;  %v7512_v6 = vor.u32 %v8240_v11, %v7511_v10 }
 0x3c8   :  { %v8680_v35 = vpack.c.bf16 %v4052_v53, %v4052_v53  ;;  %4976 = vmatpush.bf16.msra.mxu2 %v7384_v54  ;;  %v7612_v53 = vor.u32 %v8262_v49, %v7609_v36  ;;  %v8258_v54 = vld [vmem:[#allocation5 + $0x13ac] sm:$0xf] }
 0x3ca   :  { %4886 = vmatmul.bf16.vlgmr.msra.gmra.mxu3 %v8680_v35  ;;  %5003 = vmatmul.bf16.vlgmr.msrb.gmra.mxu0 %v8648_v30  ;;  %v7276_v30 = vor.u32 %v8178_v4, %v7273_v5  ;;  %v8238_v4 = vld [vmem:[#allocation5 + $0x130c] sm:$0xf] }
 0x3cb   :  { %4982 = vmatpush.bf16.msra.mxu3 %v7624_v20  ;;  %5012 = vmatpush.bf16.msrb.mxu1 %v7308_v21  ;;  %v7593_v20 = vld [vmem:[#allocation5 + $0x13b8] sm:$0xf0] }
 0x3cc   :  { %5021 = vmatpush.bf16.msrb.mxu2 %v7500_v48  ;;  %v7596_v21 = vor.u32 %v8258_v54, %v7593_v20  ;;  %v8254_v48 = vld [vmem:[#allocation5 + $0x138c] sm:$0xf] }
 0x3cd   :  { %v4053_v39 = vpop.f32.mrf.mxu3  ;;  %4977 = vmatmul.bf16.vlgmr.msra.gmra.mxu2 %v8669_v40  ;;  %v7580_v25 = vor.u32 %v8254_v48, %v7577_v34 }
 0x3cf   :  { %4983 = vmatpush.bf16.msra.mxu3 %v7608_v50  ;;  %5013 = vmatpush.bf16.msrb.mxu1 %v7292_v19  ;;  %v7545_v50 = vld [vmem:[#allocation5 + $0x1358] sm:$0xf0] }
 0x3d0   :  { %5022 = vmatpush.bf16.msrb.mxu2 %v7484_v27  ;;  %v7548_v19 = vor.u32 %v8246_v26, %v7545_v50  ;;  %v8242_v27 = vld [vmem:[#allocation5 + $0x132c] sm:$0xf] }
 0x3d1   :  { %v7532_v29 = vor.u32 %v8242_v27, %v7529_v28 }
 0x3d3   :  { %4984 = vmatpush.bf16.msra.mxu3 %v7592_v45  ;;  %5014 = vmatpush.bf16.msrb.mxu1 %v7276_v30 }
 0x3d4   :  { %5023 = vmatpush.bf16.msrb.mxu2 %v7468_v43 }
 0x3d7   :  { %4985 = vmatpush.bf16.msra.mxu3 %v7576_v22  ;;  %5015 = vmatpush.bf16.msrb.mxu1 %v7260_v17 }
 0x3d8   :  { %5024 = vmatpush.bf16.msrb.mxu2 %v7452_v3  ;;  %v4185_v3 = vld [vmem:[#allocation7 + $0x10] sm:$0xf] }
 0x3d9   :  { %v4191_v58 = vperm.slane %v4185_v3, 0  ;;  %v4194_v54 = vperm.slane %v4185_v3, 3 }
 0x3da   :  { %4938 = vmatmul.bf16.vlgmr.msrb.gmra.mxu3 %v8680_v35  ;;  %5016 = vmatmul.bf16.vlgmr.msrb.gmra.mxu1 %v8659_v14  ;;  %v7388_v14 = vor.u32 %v8206_v12, %v7385_v7  ;;  %v4193_v12 = vperm.slane %v4185_v3, 2 }
 0x3db   :  { %4986 = vmatpush.bf16.msra.mxu3 %v7560_v37 }
 0x3dc   :  { %5025 = vmatpush.bf16.msrb.mxu2 %v7436_v57 }
 0x3df   :  { %4987 = vmatpush.bf16.msra.mxu3 %v7544_v33  ;;  %v4192_v33 = vperm.slane %v4185_v3, 1 }
 0x3e0   :  { %5026 = vmatpush.bf16.msrb.mxu2 %v7420_v32 }
 0x3e3   :  { %4988 = vmatpush.bf16.msra.mxu3 %v7528_v63 }
 0x3e4   :  { %5027 = vmatpush.bf16.msrb.mxu2 %v7404_v24 }
 0x3e7   :  { %4989 = vmatpush.bf16.msra.mxu3 %v7512_v6 }
 0x3e8   :  { %5028 = vmatpush.bf16.msrb.mxu2 %v7388_v14 }
 0x3ea   :  { %4990 = vmatmul.bf16.vlgmr.msra.gmra.mxu3 %v8680_v35 }
 0x3eb   :  { %5034 = vmatpush.bf16.msrb.mxu3 %v7628_v15  ;;  %5029 = vmatmul.bf16.vlgmr.msrb.gmra.mxu2 %v8669_v40  ;;  %v7513_v40 = vld [vmem:[#allocation5 + $0x1318] sm:$0xf0] }
 0x3ec   :  { %v7516_v39 = vor.u32 %v8238_v4, %v7513_v40 }
 0x3ef   :  { %5035 = vmatpush.bf16.msrb.mxu3 %v7612_v53 }
 0x3f3   :  { %5036 = vmatpush.bf16.msrb.mxu3 %v7596_v21 }
 0x3f7   :  { %5037 = vmatpush.bf16.msrb.mxu3 %v7580_v25 }
 0x3fb   :  { %5038 = vmatpush.bf16.msrb.mxu3 %v7564_v23 }
 0x3ff   :  { %5039 = vmatpush.bf16.msrb.mxu3 %v7548_v19 }
 0x403   :  { %5040 = vmatpush.bf16.msrb.mxu3 %v7532_v29 }
 0x407   :  { %5041 = vmatpush.bf16.msrb.mxu3 %v7516_v39  ;;  %v4848_v5 = vpop.f32.mrf.mxu0 }
 0x408   :  { %v4849_v2 = vadd.f32 %v4848_v5, %v4191_v58 }
 0x40a   :  { %5042 = vmatmul.bf16.vlgmr.msrb.gmra.mxu3 %v8680_v35 }
 0x40f   :  { %v4850_v41 = vpop.f32.mrf.mxu0 }
 0x417   :  { %v4861_v42 = vpop.f32.mrf.mxu1  ;;  %v4900_v45 = vpop.f32.mrf.mxu0 }
 0x418   :  { %v4862_v37 = vadd.f32 %v4861_v42, %v4849_v2  ;;  %v4901_v44 = vadd.f32 %v4900_v45, %v4192_v33 }
 0x41f   :  { %v4863_v30 = vpop.f32.mrf.mxu1  ;;  %v4902_v43 = vpop.f32.mrf.mxu0 }
 0x427   :  { %v4913_v46 = vpop.f32.mrf.mxu1 }
 0x428   :  { %v4914_v55 = vadd.f32 %v4913_v46, %v4901_v44 }
 0x429   :  { %v4952_v16 = vpop.f32.mrf.mxu0 }
 0x42a   :  { %v4953_v61 = vadd.f32 %v4952_v16, %v4193_v12 }
 0x42d   :  { %v4874_v51 = vpop.f32.mrf.mxu2 }
 0x42e   :  { %v4875_v57 = vadd.f32 %v4874_v51, %v4862_v37 }
 0x42f   :  { %v4915_v0 = vpop.f32.mrf.mxu1 }
 0x431   :  { %v4954_v1 = vpop.f32.mrf.mxu0 }
 0x435   :  { %v4876_v18 = vpop.f32.mrf.mxu2 }
 0x437   :  { %v4965_v22 = vpop.f32.mrf.mxu1 }
 0x438   :  { %v4966_v13 = vadd.f32 %v4965_v22, %v4953_v61 }
 0x43d   :  { %v4926_v17 = vpop.f32.mrf.mxu2 }
 0x43e   :  { %v4927_v63 = vadd.f32 %v4926_v17, %v4914_v55 }
 0x43f   :  { %v4967_v56 = vpop.f32.mrf.mxu1 }
 0x445   :  { %v4928_v35 = vpop.f32.mrf.mxu2 }
 0x447   :  { %v5004_v8 = vpop.f32.mrf.mxu0 }
 0x448   :  { %v5005_v20 = vadd.f32 %v5004_v8, %v4194_v54 }
 0x44d   :  { %v4887_v59 = vpop.f32.mrf.mxu3 }
 0x44e   :  { %v4888_v52 = vadd.f32 %v4887_v59, %v4875_v57 }
 0x44f   :  { %v5006_v60 = vpop.f32.mrf.mxu0 }
 0x450   :  { %5047 = vst [vmem:[#allocation8] sm:$0xff] %v4888_v52  ;;  %v4978_v62 = vpop.f32.mrf.mxu2 }
 0x451   :  { %v4979_v6 = vadd.f32 %v4978_v62, %v4966_v13 }
 0x455   :  { %v4889_v32 = vpop.f32.mrf.mxu3 }
 0x457   :  { %v5017_v38 = vpop.f32.mrf.mxu1 }
 0x458   :  { %v4980_v9 = vpop.f32.mrf.mxu2  ;;  %v5018_v21 = vadd.f32 %v5017_v38, %v5005_v20 }
 0x45d   :  { %v4939_v24 = vpop.f32.mrf.mxu3 }
 0x45e   :  { %v4940_v10 = vadd.f32 %v4939_v24, %v4927_v63 }
 0x45f   :  { %v5019_v11 = vpop.f32.mrf.mxu1 }
 0x460   :  { %5048 = vst [vmem:[#allocation8 + $0x8] sm:$0xff] %v4940_v10 }
 0x465   :  { %v4941_v7 = vpop.f32.mrf.mxu3 }
 0x46d   :  { %v4991_v14 = vpop.f32.mrf.mxu3 }
 0x46e   :  { %v4992_v15 = vadd.f32 %v4991_v14, %v4979_v6  ;;  %v5030_v49 = vpop.f32.mrf.mxu2 }
 0x46f   :  { %v5031_v48 = vadd.f32 %v5030_v49, %v5018_v21 }
 0x470   :  { %5049 = vst [vmem:[#allocation8 + $0x10] sm:$0xff] %v4992_v15 }
 0x475   :  { %v4993_v36 = vpop.f32.mrf.mxu3 }
 0x476   :  { %v5032_v53 = vpop.f32.mrf.mxu2 }
 0x48d   :  { %v5043_v34 = vpop.f32.mrf.mxu3 }
 0x48e   :  { %v5044_v25 = vadd.f32 %v5043_v34, %v5031_v48 }
 0x490   :  { %5050 = vst [vmem:[#allocation8 + $0x18] sm:$0xff] %v5044_v25 }
 0x491   :  { %5061 = dma.vmem_to_hbm [thread:$0]  %s5057_s2, 512, %s5059_s5, [#allocation4]  }
 0x495   :  { %v5045_v47 = vpop.f32.mrf.mxu3 }
 0x496   :  { %8379 = dma.done.wait [#allocation4], 512  }
 0x497   :  { %8380 = vsyncadd [#allocation4], 4294966784 }
 0x498   :  { %5066 = vsyncpa [#allocation3], 1 }
 0x499   :  { %5067 = vsyncpa [#allocation6], 1 }
 0x49a   :  { %5068 = vsyncpa [#allocation4], 1 }

</bundles_post_ra>
